<compile_context>
chip_gen: v7x
topology: tpu7x:2x2x1
jax: 0.10.0
libtpu: 0.0.40
codegen_flags: <defaults>
</compile_context>

<pallas_src>
import functools

import jax
import jax.numpy as jnp
from jax.experimental import pallas as pl
from jax.experimental.pallas import tpu as pltpu

W_IN = 68          # input width  (forced by fc1 = Linear(64*1*17, 128))
W_P1 = 34          # after first maxpool(1,2)
W_P2 = 17          # after second maxpool(1,2)
C1 = 32            # CONV1_DEEP
C2 = 64            # CONV2_DEEP
KSZ = 5            # CONV*_SIZE2
FC1 = 128
FC2 = 64
NCLS = 2
CDT = jnp.bfloat16  # MXU operand dtype (accumulation stays float32)


def _round_up(x, m):
    return (x + m - 1) // m * m


def lenet5_kernel(xcat_ref, wbd_ref, b1_ref, w2_ref, b2_ref,
                  wfc1_ref, bfc1_ref, wfc2_ref, bfc2_ref, wfc3_ref, bfc3_ref,
                  out_ref, p1pad_s, col2_s, c2_s, p2_s):
    """One batch tile of B samples.

    xcat_ref : [34*B, 10]   conv1 im2col; cols 0:5 = even-width taps,
                            cols 5:10 = odd-width taps; rows are w-major
                            (row = w*B + b), bf16
    wbd_ref  : [10, 64]     block-diagonal conv1 weight (even|odd), bf16
    w2_ref   : [160, 64]    conv2 weight, row = k*32 + c_in, bf16
    wfc1_ref : [1088, 128]  fc1 weight, row = w*64 + c, bf16
    out_ref  : [B, 2]       float32
    p1pad_s  : [(34+4)*B, 32]  bf16 scratch, pool1 output width-padded by 2
    col2_s   : [34*B, 160]     bf16 scratch, conv2 im2col slab (K=160)
    c2_s     : [34*B, 64]      bf16 scratch, conv2 + relu output
    p2_s     : [B, 1088]       bf16 scratch, pool2 output (lane = w*64 + c)
    """
    f32 = jnp.float32
    B = out_ref.shape[0]

    # ---- conv1 (1->32ch, k=5, pad 2): even & odd output widths in ONE matmul
    # via the block-diagonal weight; pool1 = max of the two lane halves.
    # relu(max(a + b1, b + b1)) == relu(max(a, b) + b1), so bias is added once.
    c1 = jnp.dot(xcat_ref[...], wbd_ref[...], preferred_element_type=f32)  # [34B,64]
    p1 = jnp.maximum(jnp.maximum(c1[:, :C1], c1[:, C1:]) + b1_ref[...], 0.0)

    # ---- width-pad pool1 output by 2 zero positions on each side ------------
    zpad = jnp.zeros((2 * B, C1), CDT)
    p1pad_s[0:2 * B, :] = zpad
    p1pad_s[(W_P1 + 2) * B:(W_P1 + 4) * B, :] = zpad
    p1pad_s[2 * B:(W_P1 + 2) * B, :] = p1.astype(CDT)

    # ---- conv2 im2col slab: tap k at lane offset k*32 -> a single K=160 dot --
    for k in range(KSZ):
        col2_s[:, k * C1:(k + 1) * C1] = p1pad_s[k * B:(k + W_P1) * B, :]

    # ---- conv2 (32->64ch, k=5, pad 2) + bias + ReLU: one M=34B,K=160,N=64 dot
    c2 = jnp.dot(col2_s[...], w2_ref[...], preferred_element_type=f32) + b2_ref[...]
    c2_s[...] = jnp.maximum(c2, 0.0).astype(CDT)                 # [34B, 64]

    # ---- maxpool(1,2) -> [B, 1088] slab (lane = w*64 + c, matches wfc1 rows).
    # Width pairs give 128-lane-aligned stores; the last (odd) width is alone.
    for w in range(0, W_P2 - 1, 2):
        pa = jnp.maximum(c2_s[(2 * w) * B:(2 * w + 1) * B, :],
                         c2_s[(2 * w + 1) * B:(2 * w + 2) * B, :])
        pb = jnp.maximum(c2_s[(2 * w + 2) * B:(2 * w + 3) * B, :],
                         c2_s[(2 * w + 3) * B:(2 * w + 4) * B, :])
        p2_s[:, w * C2:(w + 2) * C2] = jnp.concatenate([pa, pb], axis=1)
    wl = W_P2 - 1
    p2_s[:, wl * C2:(wl + 1) * C2] = jnp.maximum(
        c2_s[(2 * wl) * B:(2 * wl + 1) * B, :],
        c2_s[(2 * wl + 1) * B:(2 * wl + 2) * B, :])

    # ---- fc1 (1088 -> 128): one K=1088 matmul; dropout(eval) == identity -----
    h1 = jnp.maximum(
        jnp.dot(p2_s[...], wfc1_ref[...], preferred_element_type=f32)
        + bfc1_ref[...], 0.0)                                    # [B, 128]

    # ---- fc2 (128 -> 64) + ReLU, fc3 (64 -> 2) ------------------------------
    h2 = jnp.maximum(
        jnp.dot(h1.astype(CDT), wfc2_ref[...], preferred_element_type=f32)
        + bfc2_ref[...], 0.0)                                    # [B, 64]
    out_ref[...] = (jnp.dot(h2.astype(CDT), wfc3_ref[...],
                            preferred_element_type=f32) + bfc3_ref[...])


@functools.partial(jax.jit, static_argnames=("b_tile",))
def lenet5_forward(x, params, b_tile=None):
    """x: [N, 1, 1, 68] float32 (NCHW, PyTorch convention).  Returns [N, 2]."""
    w1, b1, w2, b2, wfc1, bfc1, wfc2, bfc2, wfc3, bfc3 = params
    n = x.shape[0]

    if b_tile is None:
        # Multiple of 16 (bf16 sublane tile).  Aim for >=2 grid tiles for large
        # batches (feeds both v7x TensorCores) and cap at 256 so scratch +
        # double-buffered inputs + f32 temporaries stay well inside VMEM.
        b_tile = min(256, _round_up(max(1, (n + 1) // 2), 16))
    n_pad = _round_up(n, b_tile)
    t = n_pad // b_tile

    # -------- glue: layout / padding of inputs and parameters (jit-fused) ----
    xw = jnp.pad(x[:, 0, 0, :], ((0, n_pad - n), (0, 0)))            # [Np, 68]
    xp = jnp.pad(xw, ((0, 0), (2, 2)))                               # [Np, 72]
    # 10 taps per (sample, half-width w): even output width 2w uses xp[2w+k],
    # odd output width 2w+1 uses xp[2w+1+k], k = 0..4.
    taps = ([xp[:, k:k + 2 * W_P1:2] for k in range(KSZ)]
            + [xp[:, k + 1:k + 1 + 2 * W_P1:2] for k in range(KSZ)])
    cols = jnp.stack(taps, axis=-1)                                  # [Np,34,10]
    cols = cols.reshape(t, b_tile, W_P1, 2 * KSZ)
    # w-major per tile: row = w*B + b
    xcat = cols.transpose(0, 2, 1, 3).reshape(t * W_P1 * b_tile, 2 * KSZ).astype(CDT)

    w1k = jnp.transpose(w1.reshape(C1, KSZ))                         # [5, 32]
    wbd = jnp.zeros((2 * KSZ, 2 * C1), jnp.float32)
    wbd = wbd.at[0:KSZ, 0:C1].set(w1k).at[KSZ:, C1:].set(w1k).astype(CDT)
    b1k = b1.reshape(1, C1)
    # conv2 weight -> [k*32 + c_in, c_out]
    w2k = jnp.transpose(w2.reshape(C2, C1, KSZ), (2, 1, 0)).reshape(KSZ * C1, C2).astype(CDT)
    b2k = b2.reshape(1, C2)
    # PyTorch flatten order is c*17 + w  ->  re-lay fc1 weight rows as w*64 + c
    wfc1k = jnp.transpose(wfc1.reshape(FC1, C2, W_P2), (2, 1, 0)).reshape(W_P2 * C2, FC1).astype(CDT)
    bfc1k = bfc1.reshape(1, FC1)
    wfc2k = jnp.transpose(wfc2).astype(CDT)                          # [128, 64]
    bfc2k = bfc2.reshape(1, FC2)
    wfc3k = jnp.transpose(wfc3).astype(CDT)                          # [64, 2]
    bfc3k = bfc3.reshape(1, NCLS)

    consts = (wbd, b1k, w2k, b2k, wfc1k, bfc1k, wfc2k, bfc2k, wfc3k, bfc3k)

    def _const_spec(a):
        nd = a.ndim
        return pl.BlockSpec(a.shape, lambda i, _nd=nd: (0,) * _nd)

    in_specs = ([pl.BlockSpec((W_P1 * b_tile, 2 * KSZ), lambda i: (i, 0))]
                + [_const_spec(a) for a in consts])
    out_spec = pl.BlockSpec((b_tile, NCLS), lambda i: (i, 0))

    out = pl.pallas_call(
        lenet5_kernel,
        out_shape=jax.ShapeDtypeStruct((n_pad, NCLS), jnp.float32),
        grid_spec=pltpu.PrefetchScalarGridSpec(
            num_scalar_prefetch=0,
            grid=(t,),
            in_specs=in_specs,
            out_specs=out_spec,
            scratch_shapes=[
                pltpu.VMEM(((W_P1 + 4) * b_tile, C1), CDT),      # padded pool1 out
                pltpu.VMEM((W_P1 * b_tile, KSZ * C1), CDT),      # conv2 im2col K=160
                pltpu.VMEM((W_P1 * b_tile, C2), CDT),            # conv2 + relu out
                pltpu.VMEM((b_tile, W_P2 * C2), CDT),            # pool2 slab K=1088
            ]),
        compiler_params=pltpu.CompilerParams(
            dimension_semantics=("parallel",),
            vmem_limit_bytes=48 << 20),
    )(xcat, *consts)
    return out[:n]


def reference_forward(x, params):
    """Pure-JAX f32 reference mirroring the PyTorch forward (eval mode)."""
    w1, b1, w2, b2, wfc1, bfc1, wfc2, bfc2, wfc3, bfc3 = params
    n = x.shape[0]
    xw = x[:, 0, 0, :]                                               # [N, 68]
    xp = jnp.pad(xw, ((0, 0), (2, 2)))                               # [N, 72]
    cols = jnp.stack([xp[:, k:k + W_IN] for k in range(KSZ)], -1)    # [N,68,5]
    c1 = jnp.einsum('nwk,ok->now', cols, w1.reshape(C1, KSZ)) + b1[None, :, None]
    c1 = jax.nn.relu(c1)                                             # [N,32,68]
    p1 = jnp.maximum(c1[:, :, 0::2], c1[:, :, 1::2])                 # [N,32,34]
    p1p = jnp.pad(p1, ((0, 0), (0, 0), (2, 2)))                      # [N,32,38]
    cols2 = jnp.stack([p1p[:, :, k:k + W_P1] for k in range(KSZ)], -1)
    c2 = jnp.einsum('niwk,oik->now', cols2, w2.reshape(C2, C1, KSZ)) + b2[None, :, None]
    c2 = jax.nn.relu(c2)                                             # [N,64,34]
    p2 = jnp.maximum(c2[:, :, 0::2], c2[:, :, 1::2])                 # [N,64,17]
    flat = p2.reshape(n, C2 * W_P2)                                  # order c*17+w
    h1 = jax.nn.relu(flat @ wfc1.T + bfc1)
    h2 = jax.nn.relu(h1 @ wfc2.T + bfc2)
    return h2 @ wfc3.T + bfc3


if __name__ == "__main__":
    key = jax.random.PRNGKey(0)
    ks = jax.random.split(key, 12)
    N = 2

    x = jax.random.normal(ks[0], (N, 1, 1, W_IN), jnp.float32)

    def uinit(k, shape, fan_in):
        bound = 1.0 / (float(fan_in) ** 0.5)
        return jax.random.uniform(k, shape, jnp.float32, -bound, bound)

    # Parameter shapes exactly as in the PyTorch module's __init__.
    w1 = uinit(ks[1], (C1, 1, 1, KSZ), 1 * 1 * KSZ)
    b1 = uinit(ks[2], (C1,), 1 * 1 * KSZ)
    w2 = uinit(ks[3], (C2, C1, 1, KSZ), C1 * 1 * KSZ)
    b2 = uinit(ks[4], (C2,), C1 * 1 * KSZ)
    wfc1 = uinit(ks[5], (FC1, C2 * 1 * W_P2), C2 * W_P2)
    bfc1 = uinit(ks[6], (FC1,), C2 * W_P2)
    wfc2 = uinit(ks[7], (FC2, FC1), FC1)
    bfc2 = uinit(ks[8], (FC2,), FC1)
    wfc3 = uinit(ks[9], (NCLS, FC2), FC2)
    bfc3 = uinit(ks[10], (NCLS,), FC2)
    params = (w1, b1, w2, b2, wfc1, bfc1, wfc2, bfc2, wfc3, bfc3)

    out = jax.block_until_ready(lenet5_forward(x, params))
    ref = reference_forward(x, params)

    assert out.shape == (N, NCLS), out.shape
    assert bool(jnp.all(jnp.isfinite(out)))
    # bf16 MXU operands (f32 accumulation) -> slightly looser tolerance
    assert bool(jnp.allclose(out, ref, rtol=2e-2, atol=2e-2)), (out, ref)

    print("KERNEL_OK")
</pallas_src>

<mosaic_0001>
module attributes {stable_mosaic.version = 11 : i64} {
  func.func @lenet5_kernel(%arg0: i32, %arg1: memref<544x10xbf16, #tpu.memory_space<vmem>>, %arg2: memref<10x64xbf16, #tpu.memory_space<vmem>>, %arg3: memref<1x32xf32, #tpu.memory_space<vmem>>, %arg4: memref<160x64xbf16, #tpu.memory_space<vmem>>, %arg5: memref<1x64xf32, #tpu.memory_space<vmem>>, %arg6: memref<1088x128xbf16, #tpu.memory_space<vmem>>, %arg7: memref<1x128xf32, #tpu.memory_space<vmem>>, %arg8: memref<128x64xbf16, #tpu.memory_space<vmem>>, %arg9: memref<1x64xf32, #tpu.memory_space<vmem>>, %arg10: memref<64x2xbf16, #tpu.memory_space<vmem>>, %arg11: memref<1x2xf32, #tpu.memory_space<vmem>>, %arg12: memref<16x2xf32, #tpu.memory_space<vmem>>, %arg13: memref<608x32xbf16, #tpu.memory_space<vmem>>, %arg14: memref<544x160xbf16, #tpu.memory_space<vmem>>, %arg15: memref<544x64xbf16, #tpu.memory_space<vmem>>, %arg16: memref<16x1088xbf16, #tpu.memory_space<vmem>>) attributes {dimension_semantics = [#tpu.dimension_semantics<parallel>], iteration_bounds = array<i64: 1>, scalar_prefetch = 0 : i64, scratch_operands = 4 : i64, tpu.core_type = #tpu.core_type<tc>, window_params = [{transform_indices = @transform_0, window_bounds = array<i64: 544, 10>}, {pipeline_mode = #tpu.pipeline_mode<synchronous>, transform_indices = @transform_1, window_bounds = array<i64: 10, 64>}, {pipeline_mode = #tpu.pipeline_mode<synchronous>, transform_indices = @transform_2, window_bounds = array<i64: 1, 32>}, {pipeline_mode = #tpu.pipeline_mode<synchronous>, transform_indices = @transform_3, window_bounds = array<i64: 160, 64>}, {pipeline_mode = #tpu.pipeline_mode<synchronous>, transform_indices = @transform_4, window_bounds = array<i64: 1, 64>}, {pipeline_mode = #tpu.pipeline_mode<synchronous>, transform_indices = @transform_5, window_bounds = array<i64: 1088, 128>}, {pipeline_mode = #tpu.pipeline_mode<synchronous>, transform_indices = @transform_6, window_bounds = array<i64: 1, 128>}, {pipeline_mode = #tpu.pipeline_mode<synchronous>, transform_indices = @transform_7, window_bounds = array<i64: 128, 64>}, {pipeline_mode = #tpu.pipeline_mode<synchronous>, transform_indices = @transform_8, window_bounds = array<i64: 1, 64>}, {pipeline_mode = #tpu.pipeline_mode<synchronous>, transform_indices = @transform_9, window_bounds = array<i64: 64, 2>}, {pipeline_mode = #tpu.pipeline_mode<synchronous>, transform_indices = @transform_10, window_bounds = array<i64: 1, 2>}, {transform_indices = @transform_11, window_bounds = array<i64: 16, 2>}]} {
    %c0 = arith.constant 0 : index
    %c0_0 = arith.constant 0 : index
    %0 = vector.load %arg1[%c0, %c0_0] : memref<544x10xbf16, #tpu.memory_space<vmem>>, vector<544x10xbf16>
    %c0_1 = arith.constant 0 : index
    %c0_2 = arith.constant 0 : index
    %1 = vector.load %arg2[%c0_1, %c0_2] : memref<10x64xbf16, #tpu.memory_space<vmem>>, vector<10x64xbf16>
    %cst = arith.constant dense<0.000000e+00> : vector<544x64xf32>
    %2 = tpu.matmul %0, %1, %cst {dimension_numbers = #tpu.dot_dimension_numbers<[1], [0], [0], [1], [0, 0, 1, 1], [], []>} : vector<544x10xbf16>, vector<10x64xbf16>, vector<544x64xf32> -> vector<544x64xf32>
    %3 = vector.extract_strided_slice %2 {offsets = [0, 0], sizes = [544, 32], strides = [1, 1]} : vector<544x64xf32> to vector<544x32xf32>
    %4 = vector.extract_strided_slice %2 {offsets = [0, 32], sizes = [544, 32], strides = [1, 1]} : vector<544x64xf32> to vector<544x32xf32>
    %5 = arith.maximumf %3, %4 : vector<544x32xf32>
    %c0_3 = arith.constant 0 : index
    %c0_4 = arith.constant 0 : index
    %6 = vector.load %arg3[%c0_3, %c0_4] : memref<1x32xf32, #tpu.memory_space<vmem>>, vector<1x32xf32>
    %7 = vector.broadcast %6 : vector<1x32xf32> to vector<544x32xf32>
    %8 = arith.addf %5, %7 : vector<544x32xf32>
    %cst_5 = arith.constant 0.000000e+00 : f32
    %9 = vector.broadcast %cst_5 : f32 to vector<544x32xf32>
    %10 = arith.maximumf %8, %9 : vector<544x32xf32>
    %cst_6 = arith.constant 0.000000e+00 : bf16
    %11 = vector.broadcast %cst_6 : bf16 to vector<32x32xbf16>
    %c0_7 = arith.constant 0 : index
    %c0_8 = arith.constant 0 : index
    %12 = vector.load %arg13[%c0_7, %c0_8] : memref<608x32xbf16, #tpu.memory_space<vmem>>, vector<32x32xbf16>
    tpu.vector_store %arg13[%c0_7, %c0_8], %11 {strides = array<i32>} : memref<608x32xbf16, #tpu.memory_space<vmem>>, vector<32x32xbf16>,
    %c576 = arith.constant 576 : index
    %c0_9 = arith.constant 0 : index
    %13 = vector.load %arg13[%c576, %c0_9] : memref<608x32xbf16, #tpu.memory_space<vmem>>, vector<32x32xbf16>
    tpu.vector_store %arg13[%c576, %c0_9], %11 {strides = array<i32>} : memref<608x32xbf16, #tpu.memory_space<vmem>>, vector<32x32xbf16>,
    %14 = arith.truncf %10 : vector<544x32xf32> to vector<544x32xbf16>
    %c32 = arith.constant 32 : index
    %c0_10 = arith.constant 0 : index
    %15 = vector.load %arg13[%c32, %c0_10] : memref<608x32xbf16, #tpu.memory_space<vmem>>, vector<544x32xbf16>
    tpu.vector_store %arg13[%c32, %c0_10], %14 {strides = array<i32>} : memref<608x32xbf16, #tpu.memory_space<vmem>>, vector<544x32xbf16>,
    %c0_11 = arith.constant 0 : index
    %c0_12 = arith.constant 0 : index
    %16 = vector.load %arg13[%c0_11, %c0_12] : memref<608x32xbf16, #tpu.memory_space<vmem>>, vector<544x32xbf16>
    %c0_13 = arith.constant 0 : index
    %c0_14 = arith.constant 0 : index
    %17 = vector.load %arg14[%c0_13, %c0_14] : memref<544x160xbf16, #tpu.memory_space<vmem>>, vector<544x32xbf16>
    tpu.vector_store %arg14[%c0_13, %c0_14], %16 {strides = array<i32>} : memref<544x160xbf16, #tpu.memory_space<vmem>>, vector<544x32xbf16>,
    %c16 = arith.constant 16 : index
    %c0_15 = arith.constant 0 : index
    %18 = vector.load %arg13[%c16, %c0_15] : memref<608x32xbf16, #tpu.memory_space<vmem>>, vector<544x32xbf16>
    %c0_16 = arith.constant 0 : index
    %c32_17 = arith.constant 32 : index
    %19 = vector.load %arg14[%c0_16, %c32_17] : memref<544x160xbf16, #tpu.memory_space<vmem>>, vector<544x32xbf16>
    tpu.vector_store %arg14[%c0_16, %c32_17], %18 {strides = array<i32>} : memref<544x160xbf16, #tpu.memory_space<vmem>>, vector<544x32xbf16>,
    %c32_18 = arith.constant 32 : index
    %c0_19 = arith.constant 0 : index
    %20 = vector.load %arg13[%c32_18, %c0_19] : memref<608x32xbf16, #tpu.memory_space<vmem>>, vector<544x32xbf16>
    %c0_20 = arith.constant 0 : index
    %c64 = arith.constant 64 : index
    %21 = vector.load %arg14[%c0_20, %c64] : memref<544x160xbf16, #tpu.memory_space<vmem>>, vector<544x32xbf16>
    tpu.vector_store %arg14[%c0_20, %c64], %20 {strides = array<i32>} : memref<544x160xbf16, #tpu.memory_space<vmem>>, vector<544x32xbf16>,
    %c48 = arith.constant 48 : index
    %c0_21 = arith.constant 0 : index
    %22 = vector.load %arg13[%c48, %c0_21] : memref<608x32xbf16, #tpu.memory_space<vmem>>, vector<544x32xbf16>
    %c0_22 = arith.constant 0 : index
    %c96 = arith.constant 96 : index
    %23 = vector.load %arg14[%c0_22, %c96] : memref<544x160xbf16, #tpu.memory_space<vmem>>, vector<544x32xbf16>
    tpu.vector_store %arg14[%c0_22, %c96], %22 {strides = array<i32>} : memref<544x160xbf16, #tpu.memory_space<vmem>>, vector<544x32xbf16>,
    %c64_23 = arith.constant 64 : index
    %c0_24 = arith.constant 0 : index
    %24 = vector.load %arg13[%c64_23, %c0_24] : memref<608x32xbf16, #tpu.memory_space<vmem>>, vector<544x32xbf16>
    %c0_25 = arith.constant 0 : index
    %c128 = arith.constant 128 : index
    %25 = vector.load %arg14[%c0_25, %c128] : memref<544x160xbf16, #tpu.memory_space<vmem>>, vector<544x32xbf16>
    tpu.vector_store %arg14[%c0_25, %c128], %24 {strides = array<i32>} : memref<544x160xbf16, #tpu.memory_space<vmem>>, vector<544x32xbf16>,
    %c0_26 = arith.constant 0 : index
    %c0_27 = arith.constant 0 : index
    %26 = vector.load %arg14[%c0_26, %c0_27] : memref<544x160xbf16, #tpu.memory_space<vmem>>, vector<544x160xbf16>
    %c0_28 = arith.constant 0 : index
    %c0_29 = arith.constant 0 : index
    %27 = vector.load %arg4[%c0_28, %c0_29] : memref<160x64xbf16, #tpu.memory_space<vmem>>, vector<160x64xbf16>
    %cst_30 = arith.constant dense<0.000000e+00> : vector<544x64xf32>
    %28 = tpu.matmul %26, %27, %cst_30 {dimension_numbers = #tpu.dot_dimension_numbers<[1], [0], [0], [1], [0, 0, 1, 1], [], []>} : vector<544x160xbf16>, vector<160x64xbf16>, vector<544x64xf32> -> vector<544x64xf32>
    %c0_31 = arith.constant 0 : index
    %c0_32 = arith.constant 0 : index
    %29 = vector.load %arg5[%c0_31, %c0_32] : memref<1x64xf32, #tpu.memory_space<vmem>>, vector<1x64xf32>
    %30 = vector.broadcast %29 : vector<1x64xf32> to vector<544x64xf32>
    %31 = arith.addf %28, %30 : vector<544x64xf32>
    %cst_33 = arith.constant 0.000000e+00 : f32
    %32 = vector.broadcast %cst_33 : f32 to vector<544x64xf32>
    %33 = arith.maximumf %31, %32 : vector<544x64xf32>
    %34 = arith.truncf %33 : vector<544x64xf32> to vector<544x64xbf16>
    %c0_34 = arith.constant 0 : index
    %c0_35 = arith.constant 0 : index
    %35 = vector.load %arg15[%c0_34, %c0_35] : memref<544x64xbf16, #tpu.memory_space<vmem>>, vector<544x64xbf16>
    tpu.vector_store %arg15[%c0_34, %c0_35], %34 {strides = array<i32>} : memref<544x64xbf16, #tpu.memory_space<vmem>>, vector<544x64xbf16>,
    %c0_36 = arith.constant 0 : index
    %c0_37 = arith.constant 0 : index
    %36 = vector.load %arg15[%c0_36, %c0_37] : memref<544x64xbf16, #tpu.memory_space<vmem>>, vector<16x64xbf16>
    %c16_38 = arith.constant 16 : index
    %c0_39 = arith.constant 0 : index
    %37 = vector.load %arg15[%c16_38, %c0_39] : memref<544x64xbf16, #tpu.memory_space<vmem>>, vector<16x64xbf16>
    %38 = arith.maximumf %36, %37 : vector<16x64xbf16>
    %c32_40 = arith.constant 32 : index
    %c0_41 = arith.constant 0 : index
    %39 = vector.load %arg15[%c32_40, %c0_41] : memref<544x64xbf16, #tpu.memory_space<vmem>>, vector<16x64xbf16>
    %c48_42 = arith.constant 48 : index
    %c0_43 = arith.constant 0 : index
    %40 = vector.load %arg15[%c48_42, %c0_43] : memref<544x64xbf16, #tpu.memory_space<vmem>>, vector<16x64xbf16>
    %41 = arith.maximumf %39, %40 : vector<16x64xbf16>
    %42 = tpu.concatenate %38, %41 in 1 : vector<16x64xbf16>, vector<16x64xbf16> -> vector<16x128xbf16>
    %c0_44 = arith.constant 0 : index
    %c0_45 = arith.constant 0 : index
    %43 = vector.load %arg16[%c0_44, %c0_45] : memref<16x1088xbf16, #tpu.memory_space<vmem>>, vector<16x128xbf16>
    tpu.vector_store %arg16[%c0_44, %c0_45], %42 {strides = array<i32>} : memref<16x1088xbf16, #tpu.memory_space<vmem>>, vector<16x128xbf16>,
    %c64_46 = arith.constant 64 : index
    %c0_47 = arith.constant 0 : index
    %44 = vector.load %arg15[%c64_46, %c0_47] : memref<544x64xbf16, #tpu.memory_space<vmem>>, vector<16x64xbf16>
    %c80 = arith.constant 80 : index
    %c0_48 = arith.constant 0 : index
    %45 = vector.load %arg15[%c80, %c0_48] : memref<544x64xbf16, #tpu.memory_space<vmem>>, vector<16x64xbf16>
    %46 = arith.maximumf %44, %45 : vector<16x64xbf16>
    %c96_49 = arith.constant 96 : index
    %c0_50 = arith.constant 0 : index
    %47 = vector.load %arg15[%c96_49, %c0_50] : memref<544x64xbf16, #tpu.memory_space<vmem>>, vector<16x64xbf16>
    %c112 = arith.constant 112 : index
    %c0_51 = arith.constant 0 : index
    %48 = vector.load %arg15[%c112, %c0_51] : memref<544x64xbf16, #tpu.memory_space<vmem>>, vector<16x64xbf16>
    %49 = arith.maximumf %47, %48 : vector<16x64xbf16>
    %50 = tpu.concatenate %46, %49 in 1 : vector<16x64xbf16>, vector<16x64xbf16> -> vector<16x128xbf16>
    %c0_52 = arith.constant 0 : index
    %c128_53 = arith.constant 128 : index
    %51 = vector.load %arg16[%c0_52, %c128_53] : memref<16x1088xbf16, #tpu.memory_space<vmem>>, vector<16x128xbf16>
    tpu.vector_store %arg16[%c0_52, %c128_53], %50 {strides = array<i32>} : memref<16x1088xbf16, #tpu.memory_space<vmem>>, vector<16x128xbf16>,
    %c128_54 = arith.constant 128 : index
    %c0_55 = arith.constant 0 : index
    %52 = vector.load %arg15[%c128_54, %c0_55] : memref<544x64xbf16, #tpu.memory_space<vmem>>, vector<16x64xbf16>
    %c144 = arith.constant 144 : index
    %c0_56 = arith.constant 0 : index
    %53 = vector.load %arg15[%c144, %c0_56] : memref<544x64xbf16, #tpu.memory_space<vmem>>, vector<16x64xbf16>
    %54 = arith.maximumf %52, %53 : vector<16x64xbf16>
    %c160 = arith.constant 160 : index
    %c0_57 = arith.constant 0 : index
    %55 = vector.load %arg15[%c160, %c0_57] : memref<544x64xbf16, #tpu.memory_space<vmem>>, vector<16x64xbf16>
    %c176 = arith.constant 176 : index
    %c0_58 = arith.constant 0 : index
    %56 = vector.load %arg15[%c176, %c0_58] : memref<544x64xbf16, #tpu.memory_space<vmem>>, vector<16x64xbf16>
    %57 = arith.maximumf %55, %56 : vector<16x64xbf16>
    %58 = tpu.concatenate %54, %57 in 1 : vector<16x64xbf16>, vector<16x64xbf16> -> vector<16x128xbf16>
    %c0_59 = arith.constant 0 : index
    %c256 = arith.constant 256 : index
    %59 = vector.load %arg16[%c0_59, %c256] : memref<16x1088xbf16, #tpu.memory_space<vmem>>, vector<16x128xbf16>
    tpu.vector_store %arg16[%c0_59, %c256], %58 {strides = array<i32>} : memref<16x1088xbf16, #tpu.memory_space<vmem>>, vector<16x128xbf16>,
    %c192 = arith.constant 192 : index
    %c0_60 = arith.constant 0 : index
    %60 = vector.load %arg15[%c192, %c0_60] : memref<544x64xbf16, #tpu.memory_space<vmem>>, vector<16x64xbf16>
    %c208 = arith.constant 208 : index
    %c0_61 = arith.constant 0 : index
    %61 = vector.load %arg15[%c208, %c0_61] : memref<544x64xbf16, #tpu.memory_space<vmem>>, vector<16x64xbf16>
    %62 = arith.maximumf %60, %61 : vector<16x64xbf16>
    %c224 = arith.constant 224 : index
    %c0_62 = arith.constant 0 : index
    %63 = vector.load %arg15[%c224, %c0_62] : memref<544x64xbf16, #tpu.memory_space<vmem>>, vector<16x64xbf16>
    %c240 = arith.constant 240 : index
    %c0_63 = arith.constant 0 : index
    %64 = vector.load %arg15[%c240, %c0_63] : memref<544x64xbf16, #tpu.memory_space<vmem>>, vector<16x64xbf16>
    %65 = arith.maximumf %63, %64 : vector<16x64xbf16>
    %66 = tpu.concatenate %62, %65 in 1 : vector<16x64xbf16>, vector<16x64xbf16> -> vector<16x128xbf16>
    %c0_64 = arith.constant 0 : index
    %c384 = arith.constant 384 : index
    %67 = vector.load %arg16[%c0_64, %c384] : memref<16x1088xbf16, #tpu.memory_space<vmem>>, vector<16x128xbf16>
    tpu.vector_store %arg16[%c0_64, %c384], %66 {strides = array<i32>} : memref<16x1088xbf16, #tpu.memory_space<vmem>>, vector<16x128xbf16>,
    %c256_65 = arith.constant 256 : index
    %c0_66 = arith.constant 0 : index
    %68 = vector.load %arg15[%c256_65, %c0_66] : memref<544x64xbf16, #tpu.memory_space<vmem>>, vector<16x64xbf16>
    %c272 = arith.constant 272 : index
    %c0_67 = arith.constant 0 : index
    %69 = vector.load %arg15[%c272, %c0_67] : memref<544x64xbf16, #tpu.memory_space<vmem>>, vector<16x64xbf16>
    %70 = arith.maximumf %68, %69 : vector<16x64xbf16>
    %c288 = arith.constant 288 : index
    %c0_68 = arith.constant 0 : index
    %71 = vector.load %arg15[%c288, %c0_68] : memref<544x64xbf16, #tpu.memory_space<vmem>>, vector<16x64xbf16>
    %c304 = arith.constant 304 : index
    %c0_69 = arith.constant 0 : index
    %72 = vector.load %arg15[%c304, %c0_69] : memref<544x64xbf16, #tpu.memory_space<vmem>>, vector<16x64xbf16>
    %73 = arith.maximumf %71, %72 : vector<16x64xbf16>
    %74 = tpu.concatenate %70, %73 in 1 : vector<16x64xbf16>, vector<16x64xbf16> -> vector<16x128xbf16>
    %c0_70 = arith.constant 0 : index
    %c512 = arith.constant 512 : index
    %75 = vector.load %arg16[%c0_70, %c512] : memref<16x1088xbf16, #tpu.memory_space<vmem>>, vector<16x128xbf16>
    tpu.vector_store %arg16[%c0_70, %c512], %74 {strides = array<i32>} : memref<16x1088xbf16, #tpu.memory_space<vmem>>, vector<16x128xbf16>,
    %c320 = arith.constant 320 : index
    %c0_71 = arith.constant 0 : index
    %76 = vector.load %arg15[%c320, %c0_71] : memref<544x64xbf16, #tpu.memory_space<vmem>>, vector<16x64xbf16>
    %c336 = arith.constant 336 : index
    %c0_72 = arith.constant 0 : index
    %77 = vector.load %arg15[%c336, %c0_72] : memref<544x64xbf16, #tpu.memory_space<vmem>>, vector<16x64xbf16>
    %78 = arith.maximumf %76, %77 : vector<16x64xbf16>
    %c352 = arith.constant 352 : index
    %c0_73 = arith.constant 0 : index
    %79 = vector.load %arg15[%c352, %c0_73] : memref<544x64xbf16, #tpu.memory_space<vmem>>, vector<16x64xbf16>
    %c368 = arith.constant 368 : index
    %c0_74 = arith.constant 0 : index
    %80 = vector.load %arg15[%c368, %c0_74] : memref<544x64xbf16, #tpu.memory_space<vmem>>, vector<16x64xbf16>
    %81 = arith.maximumf %79, %80 : vector<16x64xbf16>
    %82 = tpu.concatenate %78, %81 in 1 : vector<16x64xbf16>, vector<16x64xbf16> -> vector<16x128xbf16>
    %c0_75 = arith.constant 0 : index
    %c640 = arith.constant 640 : index
    %83 = vector.load %arg16[%c0_75, %c640] : memref<16x1088xbf16, #tpu.memory_space<vmem>>, vector<16x128xbf16>
    tpu.vector_store %arg16[%c0_75, %c640], %82 {strides = array<i32>} : memref<16x1088xbf16, #tpu.memory_space<vmem>>, vector<16x128xbf16>,
    %c384_76 = arith.constant 384 : index
    %c0_77 = arith.constant 0 : index
    %84 = vector.load %arg15[%c384_76, %c0_77] : memref<544x64xbf16, #tpu.memory_space<vmem>>, vector<16x64xbf16>
    %c400 = arith.constant 400 : index
    %c0_78 = arith.constant 0 : index
    %85 = vector.load %arg15[%c400, %c0_78] : memref<544x64xbf16, #tpu.memory_space<vmem>>, vector<16x64xbf16>
    %86 = arith.maximumf %84, %85 : vector<16x64xbf16>
    %c416 = arith.constant 416 : index
    %c0_79 = arith.constant 0 : index
    %87 = vector.load %arg15[%c416, %c0_79] : memref<544x64xbf16, #tpu.memory_space<vmem>>, vector<16x64xbf16>
    %c432 = arith.constant 432 : index
    %c0_80 = arith.constant 0 : index
    %88 = vector.load %arg15[%c432, %c0_80] : memref<544x64xbf16, #tpu.memory_space<vmem>>, vector<16x64xbf16>
    %89 = arith.maximumf %87, %88 : vector<16x64xbf16>
    %90 = tpu.concatenate %86, %89 in 1 : vector<16x64xbf16>, vector<16x64xbf16> -> vector<16x128xbf16>
    %c0_81 = arith.constant 0 : index
    %c768 = arith.constant 768 : index
    %91 = vector.load %arg16[%c0_81, %c768] : memref<16x1088xbf16, #tpu.memory_space<vmem>>, vector<16x128xbf16>
    tpu.vector_store %arg16[%c0_81, %c768], %90 {strides = array<i32>} : memref<16x1088xbf16, #tpu.memory_space<vmem>>, vector<16x128xbf16>,
    %c448 = arith.constant 448 : index
    %c0_82 = arith.constant 0 : index
    %92 = vector.load %arg15[%c448, %c0_82] : memref<544x64xbf16, #tpu.memory_space<vmem>>, vector<16x64xbf16>
    %c464 = arith.constant 464 : index
    %c0_83 = arith.constant 0 : index
    %93 = vector.load %arg15[%c464, %c0_83] : memref<544x64xbf16, #tpu.memory_space<vmem>>, vector<16x64xbf16>
    %94 = arith.maximumf %92, %93 : vector<16x64xbf16>
    %c480 = arith.constant 480 : index
    %c0_84 = arith.constant 0 : index
    %95 = vector.load %arg15[%c480, %c0_84] : memref<544x64xbf16, #tpu.memory_space<vmem>>, vector<16x64xbf16>
    %c496 = arith.constant 496 : index
    %c0_85 = arith.constant 0 : index
    %96 = vector.load %arg15[%c496, %c0_85] : memref<544x64xbf16, #tpu.memory_space<vmem>>, vector<16x64xbf16>
    %97 = arith.maximumf %95, %96 : vector<16x64xbf16>
    %98 = tpu.concatenate %94, %97 in 1 : vector<16x64xbf16>, vector<16x64xbf16> -> vector<16x128xbf16>
    %c0_86 = arith.constant 0 : index
    %c896 = arith.constant 896 : index
    %99 = vector.load %arg16[%c0_86, %c896] : memref<16x1088xbf16, #tpu.memory_space<vmem>>, vector<16x128xbf16>
    tpu.vector_store %arg16[%c0_86, %c896], %98 {strides = array<i32>} : memref<16x1088xbf16, #tpu.memory_space<vmem>>, vector<16x128xbf16>,
    %c512_87 = arith.constant 512 : index
    %c0_88 = arith.constant 0 : index
    %100 = vector.load %arg15[%c512_87, %c0_88] : memref<544x64xbf16, #tpu.memory_space<vmem>>, vector<16x64xbf16>
    %c528 = arith.constant 528 : index
    %c0_89 = arith.constant 0 : index
    %101 = vector.load %arg15[%c528, %c0_89] : memref<544x64xbf16, #tpu.memory_space<vmem>>, vector<16x64xbf16>
    %102 = arith.maximumf %100, %101 : vector<16x64xbf16>
    %c0_90 = arith.constant 0 : index
    %c1024 = arith.constant 1024 : index
    %103 = vector.load %arg16[%c0_90, %c1024] : memref<16x1088xbf16, #tpu.memory_space<vmem>>, vector<16x64xbf16>
    tpu.vector_store %arg16[%c0_90, %c1024], %102 {strides = array<i32>} : memref<16x1088xbf16, #tpu.memory_space<vmem>>, vector<16x64xbf16>,
    %c0_91 = arith.constant 0 : index
    %c0_92 = arith.constant 0 : index
    %104 = vector.load %arg16[%c0_91, %c0_92] : memref<16x1088xbf16, #tpu.memory_space<vmem>>, vector<16x1088xbf16>
    %c0_93 = arith.constant 0 : index
    %c0_94 = arith.constant 0 : index
    %105 = vector.load %arg6[%c0_93, %c0_94] : memref<1088x128xbf16, #tpu.memory_space<vmem>>, vector<1088x128xbf16>
    %cst_95 = arith.constant dense<0.000000e+00> : vector<16x128xf32>
    %106 = tpu.matmul %104, %105, %cst_95 {dimension_numbers = #tpu.dot_dimension_numbers<[1], [0], [0], [1], [0, 0, 1, 1], [], []>} : vector<16x1088xbf16>, vector<1088x128xbf16>, vector<16x128xf32> -> vector<16x128xf32>
    %c0_96 = arith.constant 0 : index
    %c0_97 = arith.constant 0 : index
    %107 = vector.load %arg7[%c0_96, %c0_97] : memref<1x128xf32, #tpu.memory_space<vmem>>, vector<1x128xf32>
    %108 = vector.broadcast %107 : vector<1x128xf32> to vector<16x128xf32>
    %109 = arith.addf %106, %108 : vector<16x128xf32>
    %cst_98 = arith.constant 0.000000e+00 : f32
    %110 = vector.broadcast %cst_98 : f32 to vector<16x128xf32>
    %111 = arith.maximumf %109, %110 : vector<16x128xf32>
    %112 = arith.truncf %111 : vector<16x128xf32> to vector<16x128xbf16>
    %c0_99 = arith.constant 0 : index
    %c0_100 = arith.constant 0 : index
    %113 = vector.load %arg8[%c0_99, %c0_100] : memref<128x64xbf16, #tpu.memory_space<vmem>>, vector<128x64xbf16>
    %cst_101 = arith.constant dense<0.000000e+00> : vector<16x64xf32>
    %114 = tpu.matmul %112, %113, %cst_101 {dimension_numbers = #tpu.dot_dimension_numbers<[1], [0], [0], [1], [0, 0, 1, 1], [], []>} : vector<16x128xbf16>, vector<128x64xbf16>, vector<16x64xf32> -> vector<16x64xf32>
    %c0_102 = arith.constant 0 : index
    %c0_103 = arith.constant 0 : index
    %115 = vector.load %arg9[%c0_102, %c0_103] : memref<1x64xf32, #tpu.memory_space<vmem>>, vector<1x64xf32>
    %116 = vector.broadcast %115 : vector<1x64xf32> to vector<16x64xf32>
    %117 = arith.addf %114, %116 : vector<16x64xf32>
    %cst_104 = arith.constant 0.000000e+00 : f32
    %118 = vector.broadcast %cst_104 : f32 to vector<16x64xf32>
    %119 = arith.maximumf %117, %118 : vector<16x64xf32>
    %120 = arith.truncf %119 : vector<16x64xf32> to vector<16x64xbf16>
    %c0_105 = arith.constant 0 : index
    %c0_106 = arith.constant 0 : index
    %121 = vector.load %arg10[%c0_105, %c0_106] : memref<64x2xbf16, #tpu.memory_space<vmem>>, vector<64x2xbf16>
    %cst_107 = arith.constant dense<0.000000e+00> : vector<16x2xf32>
    %122 = tpu.matmul %120, %121, %cst_107 {dimension_numbers = #tpu.dot_dimension_numbers<[1], [0], [0], [1], [0, 0, 1, 1], [], []>} : vector<16x64xbf16>, vector<64x2xbf16>, vector<16x2xf32> -> vector<16x2xf32>
    %c0_108 = arith.constant 0 : index
    %c0_109 = arith.constant 0 : index
    %123 = vector.load %arg11[%c0_108, %c0_109] : memref<1x2xf32, #tpu.memory_space<vmem>>, vector<1x2xf32>
    %124 = vector.broadcast %123 : vector<1x2xf32> to vector<16x2xf32>
    %125 = arith.addf %122, %124 : vector<16x2xf32>
    %c0_110 = arith.constant 0 : index
    %c0_111 = arith.constant 0 : index
    %126 = vector.load %arg12[%c0_110, %c0_111] : memref<16x2xf32, #tpu.memory_space<vmem>>, vector<16x2xf32>
    tpu.vector_store %arg12[%c0_110, %c0_111], %125 {strides = array<i32>} : memref<16x2xf32, #tpu.memory_space<vmem>>, vector<16x2xf32>,
    return
  }
  func.func @transform_0(%arg0: i32) -> (i32, i32) {
    %c0_i32 = arith.constant 0 : i32
    %c0_i32_0 = arith.constant 0 : i32
    return %arg0, %c0_i32 : i32, i32
  }
  func.func @transform_1(%arg0: i32) -> (i32, i32) {
    %c0_i32 = arith.constant 0 : i32
    %c0_i32_0 = arith.constant 0 : i32
    %c0_i32_1 = arith.constant 0 : i32
    return %c0_i32, %c0_i32_0 : i32, i32
  }
  func.func @transform_2(%arg0: i32) -> (i32, i32) {
    %c0_i32 = arith.constant 0 : i32
    %c0_i32_0 = arith.constant 0 : i32
    %c0_i32_1 = arith.constant 0 : i32
    return %c0_i32, %c0_i32_0 : i32, i32
  }
  func.func @transform_3(%arg0: i32) -> (i32, i32) {
    %c0_i32 = arith.constant 0 : i32
    %c0_i32_0 = arith.constant 0 : i32
    %c0_i32_1 = arith.constant 0 : i32
    return %c0_i32, %c0_i32_0 : i32, i32
  }
  func.func @transform_4(%arg0: i32) -> (i32, i32) {
    %c0_i32 = arith.constant 0 : i32
    %c0_i32_0 = arith.constant 0 : i32
    %c0_i32_1 = arith.constant 0 : i32
    return %c0_i32, %c0_i32_0 : i32, i32
  }
  func.func @transform_5(%arg0: i32) -> (i32, i32) {
    %c0_i32 = arith.constant 0 : i32
    %c0_i32_0 = arith.constant 0 : i32
    %c0_i32_1 = arith.constant 0 : i32
    return %c0_i32, %c0_i32_0 : i32, i32
  }
  func.func @transform_6(%arg0: i32) -> (i32, i32) {
    %c0_i32 = arith.constant 0 : i32
    %c0_i32_0 = arith.constant 0 : i32
    %c0_i32_1 = arith.constant 0 : i32
    return %c0_i32, %c0_i32_0 : i32, i32
  }
  func.func @transform_7(%arg0: i32) -> (i32, i32) {
    %c0_i32 = arith.constant 0 : i32
    %c0_i32_0 = arith.constant 0 : i32
    %c0_i32_1 = arith.constant 0 : i32
    return %c0_i32, %c0_i32_0 : i32, i32
  }
  func.func @transform_8(%arg0: i32) -> (i32, i32) {
    %c0_i32 = arith.constant 0 : i32
    %c0_i32_0 = arith.constant 0 : i32
    %c0_i32_1 = arith.constant 0 : i32
    return %c0_i32, %c0_i32_0 : i32, i32
  }
  func.func @transform_9(%arg0: i32) -> (i32, i32) {
    %c0_i32 = arith.constant 0 : i32
    %c0_i32_0 = arith.constant 0 : i32
    %c0_i32_1 = arith.constant 0 : i32
    return %c0_i32, %c0_i32_0 : i32, i32
  }
  func.func @transform_10(%arg0: i32) -> (i32, i32) {
    %c0_i32 = arith.constant 0 : i32
    %c0_i32_0 = arith.constant 0 : i32
    %c0_i32_1 = arith.constant 0 : i32
    return %c0_i32, %c0_i32_0 : i32, i32
  }
  func.func @transform_11(%arg0: i32) -> (i32, i32) {
    %c0_i32 = arith.constant 0 : i32
    %c0_i32_0 = arith.constant 0 : i32
    return %arg0, %c0_i32 : i32, i32
  }
}

</mosaic_0001>

<bundles_post_ra>
// kernel: lenet5_forward.1
= control target key start
LH: loop header
LB: loop body
LE: loop exit
PB: predicated region body
PF: predicated region fallthrough
CT: control target
= control target key end

     0   :  { %vm387_vm0 = vcmask 1044480   ;;  %vm284_vm1 = vcmask 80896   ;;  %vm1179_vm2 = vcmask 261120   ;;  %v4384_v1 = vmov 0   ;;  %s4385_s17 = smov 32   ;;  %s4386_s29 = smov 96   ;;  %s5950_s1 = inlined_call_operand.vmem [shape: bf16[10,64], index: 1, kind: input, shape index: {}]   ;;  %s5951_s0 = inlined_call_operand.vmem [shape: bf16[544,10], index: 0, kind: input, shape index: {}]   ;;  %s5952_s3 = inlined_call_operand.vmem [shape: bf16[160,64], index: 3, kind: input, shape index: {}]   ;;  %s5953_s2 = inlined_call_operand.vmem [shape: f32[1,32], index: 2, kind: input, shape index: {}]   ;;  %s5954_s4 = inlined_call_operand.vmem [shape: f32[1,64], index: 4, kind: input, shape index: {}]   ;;  %s5955_s5 = inlined_call_operand.vmem [shape: bf16[1088,128], index: 5, kind: input, shape index: {}]   ;;  %s5956_s7 = inlined_call_operand.vmem [shape: bf16[128,64], index: 7, kind: input, shape index: {}]   ;;  %s5957_s6 = inlined_call_operand.vmem [shape: f32[1,128], index: 6, kind: input, shape index: {}]   ;;  %s5958_s9 = inlined_call_operand.vmem [shape: bf16[64,2], index: 9, kind: input, shape index: {}]   ;;  %s5959_s8 = inlined_call_operand.vmem [shape: f32[1,64], index: 8, kind: input, shape index: {}]   ;;  %s5960_s10 = inlined_call_operand.vmem [shape: f32[1,2], index: 10, kind: input, shape index: {}]   ;;  %s5961_s11 = inlined_call_operand.vmem [shape: f32[16,2], index: 11, kind: output, shape index: {}]  }
   0x1   :  { %v4257_v0 = vld [vmem:[%s5950_s1] sm:$0x1f]   ;;  %1181 = vst.msk [vmem:[#allocation2 + $0x8] sm:$0xff] %vm1179_vm2, %v4384_v1  ;;  %1180 = vst.msk [vmem:[#allocation2] sm:$0xff] %vm1179_vm2, %v4384_v1  ;;  %2260 = vmatprep.subr.bf16.mxu1 %v4384_v1  ;;  %v4259_v4 = vld [vmem:[%s5951_s0 + $0x8] sm:$0xff]   ;;  %vm1490_vm3 = vcmask 523520  }
   0x2   :  { %1182 = vst.msk [vmem:[#allocation2 + $0x120] sm:$0xff] %vm1179_vm2, %v4384_v1  ;;  %1183 = vst.msk [vmem:[#allocation2 + $0x128] sm:$0xff] %vm1179_vm2, %v4384_v1  ;;  %v4258_v2 = vld [vmem:[%s5951_s0] sm:$0xff]   ;;  %4250 = vmatprep.subr.msk.bf16.mxu0 %vm387_vm0, %v4257_v0  ;;  %v389_v3 = vsel %vm387_vm0, %v4257_v0, 0  ;;  %v4260_v5 = vld [vmem:[%s5951_s0 + $0x10] sm:$0xff]   ;;  %vm1695_vm4 = vcmask 785920  }
   0x3   :  { %4137 = vmatpush3.bf16.msra.mxu0 %v389_v3  ;;  %4138 = vmatprep.mubr.msk.bf16.mxu0 %vm284_vm1, %v4258_v2  ;;  %v4261_v6 = vld [vmem:[%s5951_s0 + $0x18] sm:$0xff]   ;;  %v4262_v7 = vld [vmem:[%s5951_s0 + $0x20] sm:$0xff]   ;;  %v4263_v8 = vld [vmem:[%s5951_s0 + $0x28] sm:$0xff]   ;;  %vm1900_vm5 = vcmask 1048320   ;;  %vm2667_vm6 = vcmask 523264   ;;  %vm4389_vm7 = vmmov 0  }
   0x4   :  { %v4264_v9 = vld [vmem:[%s5951_s0 + $0x30] sm:$0xff]   ;;  %v4265_v10 = vld [vmem:[%s5951_s0 + $0x38] sm:$0xff]   ;;  %v4266_v11 = vld [vmem:[%s5951_s0 + $0x40] sm:$0xff]   ;;  %vm3787_vm8 = vcmask 15360  }
   0x5   :  { %v4267_v13 = vld [vmem:[%s5951_s0 + $0x48] sm:$0xff]   ;;  %v4268_v14 = vld [vmem:[%s5951_s0 + $0x50] sm:$0xff]   ;;  %v4269_v15 = vld [vmem:[%s5951_s0 + $0x58] sm:$0xff]  }
   0x6   :  { %4139 = vmatmul.mubr.msk.bf16.vlgmr.msra.gmra.mrb[0].mxu0 %vm284_vm1, %v4259_v4  ;;  %v4270_v16 = vld [vmem:[%s5951_s0 + $0x60] sm:$0xff]   ;;  %v4271_v17 = vld [vmem:[%s5951_s0 + $0x68] sm:$0xff]   ;;  %v4272_v18 = vld [vmem:[%s5951_s0 + $0x70] sm:$0xff]  }
   0x7   :  { %4142 = vmatprep.mubr.msk.bf16.mxu0 %vm284_vm1, %v4260_v5  ;;  %v4273_v19 = vld [vmem:[%s5951_s0 + $0x78] sm:$0xff]   ;;  %v4274_v20 = vld [vmem:[%s5951_s0 + $0x80] sm:$0xff]   ;;  %v4275_v21 = vld [vmem:[%s5951_s0 + $0x88] sm:$0xff]  }
   0x8   :  { %v1320_v12 = vld [vmem:[#allocation2 + $0x8] sm:$0xff]  ;;  %v4276_v22 = vld [vmem:[%s5951_s0 + $0x90] sm:$0xff]   ;;  %v4277_v23 = vld [vmem:[%s5951_s0 + $0x98] sm:$0xff]  }
   0x9   :  { %1388 = vrot.lane.b32.xlu0 %v1320_v12, %s4385_s17  ;;  %v4278_v24 = vld [vmem:[%s5951_s0 + $0xa0] sm:$0xff]   ;;  %v4279_v25 = vld [vmem:[%s5951_s0 + $0xa8] sm:$0xff]   ;;  %v4280_v26 = vld [vmem:[%s5951_s0 + $0xb0] sm:$0xff]  }
   0xa   :  { %v4281_v27 = vld [vmem:[%s5951_s0 + $0xb8] sm:$0xff]   ;;  %v4282_v28 = vld [vmem:[%s5951_s0 + $0xc0] sm:$0xff]   ;;  %v4283_v29 = vld [vmem:[%s5951_s0 + $0xc8] sm:$0xff]  }
   0xb   :  { %v4284_v30 = vld [vmem:[%s5951_s0 + $0xd0] sm:$0xff]   ;;  %v4285_v31 = vld [vmem:[%s5951_s0 + $0xd8] sm:$0xff]   ;;  %v4286_v32 = vld [vmem:[%s5951_s0 + $0xe0] sm:$0xff]  }
   0xc   :  { %v4287_v33 = vld [vmem:[%s5951_s0 + $0xe8] sm:$0xff]   ;;  %v4288_v34 = vld [vmem:[%s5951_s0 + $0xf0] sm:$0xff]   ;;  %v4289_v35 = vld [vmem:[%s5951_s0 + $0xf8] sm:$0xff]  }
   0xd   :  { %v4290_v36 = vld [vmem:[%s5951_s0 + $0x100] sm:$0xff]   ;;  %v4291_v37 = vld [vmem:[%s5951_s0 + $0x108] sm:$0xff]  }
   0xe   :  { %4143 = vmatmul.mubr.msk.bf16.gmra.mrb[4].mxu0 %vm284_vm1, %v4261_v6  ;;  %v1252_v39 = vld [vmem:[#allocation2] sm:$0xff] }
   0xf   :  { %4146 = vmatprep.mubr.msk.bf16.mxu0 %vm284_vm1, %v4262_v7  ;;  %1286 = vst.msk [vmem:[#allocation3] sm:$0xff] %vm1179_vm2, %v1252_v39  ;;  %v4297_v39 = vld [vmem:[%s5952_s3 + $0x28] sm:$0xff]  }
  0x16   :  { %4147 = vmatmul.mubr.msk.bf16.gmra.mrb[8].mxu0 %vm284_vm1, %v4263_v8 }
  0x17   :  { %4150 = vmatprep.mubr.msk.bf16.mxu0 %vm284_vm1, %v4264_v9 }
  0x1e   :  { %4151 = vmatmul.mubr.msk.bf16.gmra.mrb[12].mxu0 %vm284_vm1, %v4265_v10 }
  0x1f   :  { %4154 = vmatprep.mubr.msk.bf16.mxu0 %vm284_vm1, %v4266_v11 }
  0x26   :  { %4155 = vmatmul.mubr.msk.bf16.gmra.mrb[16].mxu0 %vm284_vm1, %v4267_v13 }
  0x27   :  { %4158 = vmatprep.mubr.msk.bf16.mxu0 %vm284_vm1, %v4268_v14 }
  0x2e   :  { %4159 = vmatmul.mubr.msk.bf16.gmra.mrb[20].mxu0 %vm284_vm1, %v4269_v15 }
  0x2f   :  { %4162 = vmatprep.mubr.msk.bf16.mxu0 %vm284_vm1, %v4270_v16 }
  0x36   :  { %4163 = vmatmul.mubr.msk.bf16.gmra.mrb[24].mxu0 %vm284_vm1, %v4271_v17 }
  0x37   :  { %4166 = vmatprep.mubr.msk.bf16.mxu0 %vm284_vm1, %v4272_v18 }
  0x3e   :  { %4167 = vmatmul.mubr.msk.bf16.gmra.mrb[28].mxu0 %vm284_vm1, %v4273_v19 }
  0x3f   :  { %4170 = vmatprep.mubr.msk.bf16.mxu0 %vm284_vm1, %v4274_v20 }
  0x46   :  { %4171 = vmatmul.mubr.msk.bf16.gmra.mrb[32].mxu0 %vm284_vm1, %v4275_v21 }
  0x47   :  { %4174 = vmatprep.mubr.msk.bf16.mxu0 %vm284_vm1, %v4276_v22 }
  0x4e   :  { %4175 = vmatmul.mubr.msk.bf16.gmra.mrb[36].mxu0 %vm284_vm1, %v4277_v23 }
  0x4f   :  { %4178 = vmatprep.mubr.msk.bf16.mxu0 %vm284_vm1, %v4278_v24 }
  0x56   :  { %4179 = vmatmul.mubr.msk.bf16.gmra.mrb[40].mxu0 %vm284_vm1, %v4279_v25  ;;  %v4292_v25 = vld [vmem:[%s5952_s3] sm:$0xff]  }
  0x57   :  { %4182 = vmatprep.mubr.msk.bf16.mxu0 %vm284_vm1, %v4280_v26  ;;  %2261 = vmatpush1.bf16.msra.mxu1 %v4292_v25 }
  0x58   :  { %2262 = vmatprep.subr.bf16.mxu1 %v4384_v1 }
  0x5e   :  { %4183 = vmatmul.mubr.msk.bf16.gmra.mrb[44].mxu0 %vm284_vm1, %v4281_v27  ;;  %v4293_v27 = vld [vmem:[%s5952_s3 + $0x8] sm:$0xff]  }
  0x5f   :  { %4186 = vmatprep.mubr.msk.bf16.mxu0 %vm284_vm1, %v4282_v28  ;;  %2263 = vmatpush1.bf16.msra.mxu1 %v4293_v27 }
  0x60   :  { %2264 = vmatprep.subr.bf16.mxu1 %v4384_v1 }
  0x66   :  { %4187 = vmatmul.mubr.msk.bf16.gmra.mrb[48].mxu0 %vm284_vm1, %v4283_v29 }
  0x67   :  { %4190 = vmatprep.mubr.msk.bf16.mxu0 %vm284_vm1, %v4284_v30 }
  0x6e   :  { %4191 = vmatmul.mubr.msk.bf16.gmra.mrb[52].mxu0 %vm284_vm1, %v4285_v31  ;;  %v4294_v31 = vld [vmem:[%s5952_s3 + $0x10] sm:$0xff]  }
  0x6f   :  { %4194 = vmatprep.mubr.msk.bf16.mxu0 %vm284_vm1, %v4286_v32  ;;  %2265 = vmatpush1.bf16.msra.mxu1 %v4294_v31 }
  0x70   :  { %2266 = vmatprep.subr.bf16.mxu1 %v4384_v1 }
  0x76   :  { %4195 = vmatmul.mubr.msk.bf16.gmra.mrb[56].mxu0 %vm284_vm1, %v4287_v33  ;;  %v4295_v33 = vld [vmem:[%s5952_s3 + $0x18] sm:$0xff]  }
  0x77   :  { %4198 = vmatprep.mubr.msk.bf16.mxu0 %vm284_vm1, %v4288_v34  ;;  %2267 = vmatpush1.bf16.msra.mxu1 %v4295_v33 }
  0x78   :  { %2268 = vmatprep.subr.bf16.mxu1 %v4384_v1 }
  0x7b   :  { %v1389_v38 = vpop.permute.xlu0 %1388 }
  0x7c   :  { %1491 = vst.msk [vmem:[#allocation3] sm:$0xff] %vm1490_vm3, %v1389_v38 }
  0x7e   :  { %4199 = vmatmul.mubr.msk.bf16.gmra.mrb[60].mxu0 %vm284_vm1, %v4289_v35 }
  0x7f   :  { %4202 = vmatprep.mubr.msk.bf16.mxu0 %vm284_vm1, %v4290_v36 }
  0x86   :  { %4203 = vmatmul.mubr.msk.bf16.gmra.mrb[64].mxu0 %vm284_vm1, %v4291_v37  ;;  %v4296_v37 = vld [vmem:[%s5952_s3 + $0x20] sm:$0xff]  }
  0x87   :  { %2269 = vmatpush1.bf16.msra.mxu1 %v4296_v37 }
  0x88   :  { %2270 = vmatprep.subr.bf16.mxu1 %v4384_v1 }
  0x8b   :  { %2271 = vmatpush1.bf16.msra.mxu1 %v4297_v39 }
  0x8c   :  { %2272 = vmatprep.subr.bf16.mxu1 %v4384_v1 }
  0xd9   :  { %v4601_v40 = vpop.f32.mrb[0].mxu0 }
  0xda   :  { %768 = vrot.lane.b32.xlu1 %v4601_v40, %s4386_s29  ;;  %v4605_v41 = vpop.f32.mrb[1].mxu0 }
  0xdb   :  { %764 = vrot.lane.b32.xlu0 %v4605_v41, %s4386_s29  ;;  %v4609_v42 = vpop.f32.mrb[2].mxu0 }
  0xdc   :  { %v4611_v43 = vpop.f32.mrb[3].mxu0 }
  0xde   :  { %770 = vrot.lane.b32.xlu1 %v4609_v42, %s4386_s29 }
  0xdf   :  { %766 = vrot.lane.b32.xlu0 %v4611_v43, %s4386_s29 }
  0xe1   :  { %v4617_v44 = vpop.f32.mrb[4].mxu0 }
  0xe2   :  { %v4619_v45 = vpop.f32.mrb[5].mxu0 }
  0xe3   :  { %776 = vrot.lane.b32.xlu0 %v4617_v44, %s4386_s29  ;;  %v4623_v46 = vpop.f32.mrb[6].mxu0 }
  0xe4   :  { %778 = vrot.lane.b32.xlu1 %v4623_v46, %s4386_s29  ;;  %v4627_v47 = vpop.f32.mrb[7].mxu0 }
  0xe7   :  { %772 = vrot.lane.b32.xlu0 %v4619_v45, %s4386_s29 }
  0xe8   :  { %774 = vrot.lane.b32.xlu1 %v4627_v47, %s4386_s29 }
  0xe9   :  { %v4633_v48 = vpop.f32.mrb[8].mxu0 }
  0xea   :  { %v4635_v49 = vpop.f32.mrb[9].mxu0 }
  0xeb   :  { %784 = vrot.lane.b32.xlu0 %v4633_v48, %s4386_s29  ;;  %v4639_v50 = vpop.f32.mrb[10].mxu0 }
  0xec   :  { %786 = vrot.lane.b32.xlu1 %v4639_v50, %s4386_s29  ;;  %v4643_v51 = vpop.f32.mrb[11].mxu0 }
  0xef   :  { %780 = vrot.lane.b32.xlu0 %v4635_v49, %s4386_s29 }
  0xf0   :  { %782 = vrot.lane.b32.xlu1 %v4643_v51, %s4386_s29 }
  0xf1   :  { %v4649_v52 = vpop.f32.mrb[12].mxu0 }
  0xf2   :  { %v4651_v53 = vpop.f32.mrb[13].mxu0 }
  0xf3   :  { %792 = vrot.lane.b32.xlu0 %v4649_v52, %s4386_s29  ;;  %v4655_v54 = vpop.f32.mrb[14].mxu0 }
  0xf4   :  { %794 = vrot.lane.b32.xlu1 %v4655_v54, %s4386_s29  ;;  %v4659_v55 = vpop.f32.mrb[15].mxu0 }
  0xf7   :  { %788 = vrot.lane.b32.xlu0 %v4651_v53, %s4386_s29 }
  0xf8   :  { %790 = vrot.lane.b32.xlu1 %v4659_v55, %s4386_s29 }
  0xf9   :  { %v4665_v56 = vpop.f32.mrb[16].mxu0 }
  0xfa   :  { %v4667_v57 = vpop.f32.mrb[17].mxu0 }
  0xfb   :  { %800 = vrot.lane.b32.xlu0 %v4665_v56, %s4386_s29  ;;  %v4671_v58 = vpop.f32.mrb[18].mxu0 }
  0xfc   :  { %802 = vrot.lane.b32.xlu1 %v4671_v58, %s4386_s29  ;;  %v4675_v59 = vpop.f32.mrb[19].mxu0 }
  0xff   :  { %796 = vrot.lane.b32.xlu0 %v4667_v57, %s4386_s29 }
 0x100   :  { %798 = vrot.lane.b32.xlu1 %v4675_v59, %s4386_s29 }
 0x101   :  { %v4681_v60 = vpop.f32.mrb[20].mxu0 }
 0x102   :  { %v4683_v61 = vpop.f32.mrb[21].mxu0 }
 0x103   :  { %804 = vrot.lane.b32.xlu0 %v4683_v61, %s4386_s29  ;;  %v4687_v62 = vpop.f32.mrb[22].mxu0 }
 0x104   :  { %808 = vrot.lane.b32.xlu1 %v4681_v60, %s4386_s29  ;;  %v4691_v63 = vpop.f32.mrb[23].mxu0 }
 0x107   :  { %810 = vrot.lane.b32.xlu0 %v4687_v62, %s4386_s29 }
 0x108   :  { %806 = vrot.lane.b32.xlu1 %v4691_v63, %s4386_s29 }
 0x109   :  { %v4697_v0 = vpop.f32.mrb[24].mxu0 }
 0x10a   :  { %v4699_v2 = vpop.f32.mrb[25].mxu0 }
 0x10b   :  { %812 = vrot.lane.b32.xlu0 %v4699_v2, %s4386_s29  ;;  %v4703_v3 = vpop.f32.mrb[26].mxu0 }
 0x10c   :  { %816 = vrot.lane.b32.xlu1 %v4697_v0, %s4386_s29  ;;  %v4707_v4 = vpop.f32.mrb[27].mxu0 }
 0x10f   :  { %818 = vrot.lane.b32.xlu0 %v4703_v3, %s4386_s29 }
 0x110   :  { %814 = vrot.lane.b32.xlu1 %v4707_v4, %s4386_s29 }
 0x111   :  { %v4713_v5 = vpop.f32.mrb[28].mxu0 }
 0x112   :  { %v4715_v6 = vpop.f32.mrb[29].mxu0 }
 0x113   :  { %820 = vrot.lane.b32.xlu0 %v4715_v6, %s4386_s29  ;;  %v4719_v7 = vpop.f32.mrb[30].mxu0 }
 0x114   :  { %824 = vrot.lane.b32.xlu1 %v4713_v5, %s4386_s29  ;;  %v4723_v8 = vpop.f32.mrb[31].mxu0 }
 0x117   :  { %826 = vrot.lane.b32.xlu0 %v4719_v7, %s4386_s29 }
 0x118   :  { %822 = vrot.lane.b32.xlu1 %v4723_v8, %s4386_s29 }
 0x119   :  { %v4729_v9 = vpop.f32.mrb[32].mxu0 }
 0x11a   :  { %v4731_v10 = vpop.f32.mrb[33].mxu0 }
 0x11b   :  { %828 = vrot.lane.b32.xlu0 %v4731_v10, %s4386_s29  ;;  %v4735_v11 = vpop.f32.mrb[34].mxu0 }
 0x11c   :  { %832 = vrot.lane.b32.xlu1 %v4729_v9, %s4386_s29  ;;  %v4739_v12 = vpop.f32.mrb[35].mxu0 }
 0x11f   :  { %834 = vrot.lane.b32.xlu0 %v4735_v11, %s4386_s29 }
 0x120   :  { %830 = vrot.lane.b32.xlu1 %v4739_v12, %s4386_s29 }
 0x121   :  { %v4745_v13 = vpop.f32.mrb[36].mxu0 }
 0x122   :  { %v4747_v14 = vpop.f32.mrb[37].mxu0 }
 0x123   :  { %836 = vrot.lane.b32.xlu0 %v4747_v14, %s4386_s29  ;;  %v4751_v15 = vpop.f32.mrb[38].mxu0 }
 0x124   :  { %840 = vrot.lane.b32.xlu1 %v4745_v13, %s4386_s29  ;;  %v4755_v16 = vpop.f32.mrb[39].mxu0 }
 0x127   :  { %842 = vrot.lane.b32.xlu0 %v4751_v15, %s4386_s29 }
 0x128   :  { %838 = vrot.lane.b32.xlu1 %v4755_v16, %s4386_s29 }
 0x129   :  { %v4761_v17 = vpop.f32.mrb[40].mxu0 }
 0x12a   :  { %v4763_v18 = vpop.f32.mrb[41].mxu0 }
 0x12b   :  { %844 = vrot.lane.b32.xlu0 %v4763_v18, %s4386_s29  ;;  %v4767_v19 = vpop.f32.mrb[42].mxu0 }
 0x12c   :  { %5973 = vst [vmem:[#allocation6_spill] sm:$0xff] %v4767_v19  ;;  %848 = vrot.lane.b32.xlu1 %v4761_v17, %s4386_s29  ;;  %v4771_v20 = vpop.f32.mrb[43].mxu0 }
 0x12d   :  { %5974 = vst [vmem:[#allocation7_spill] sm:$0xff] %v4771_v20 }
 0x12f   :  { %850 = vrot.lane.b32.xlu0 %v4767_v19, %s4386_s29 }
 0x130   :  { %846 = vrot.lane.b32.xlu1 %v4771_v20, %s4386_s29 }
 0x131   :  { %v4777_v21 = vpop.f32.mrb[44].mxu0 }
 0x132   :  { %v4779_v22 = vpop.f32.mrb[45].mxu0 }
 0x133   :  { %v4781_v23 = vpop.f32.mrb[46].mxu0 }
 0x134   :  { %v4783_v24 = vpop.f32.mrb[47].mxu0 }
 0x139   :  { %v4789_v26 = vpop.f32.mrb[48].mxu0 }
 0x13a   :  { %v4794_v28 = vpop.f32.mrb[49].mxu0 }
 0x13b   :  { %v4796_v29 = vpop.f32.mrb[50].mxu0 }
 0x13c   :  { %5975 = vst [vmem:[#allocation8_spill] sm:$0xff] %v4796_v29  ;;  %v4798_v30 = vpop.f32.mrb[51].mxu0 }
 0x141   :  { %v4805_v32 = vpop.f32.mrb[52].mxu0 }
 0x142   :  { %5976 = vst [vmem:[#allocation9_spill] sm:$0xff] %v4805_v32  ;;  %v4810_v34 = vpop.f32.mrb[53].mxu0  ;;  %v4840_v32 = vld [vmem:[%s5953_s2] ss:$0 sm:$0xff] }
 0x143   :  { %5977 = vst [vmem:[#allocation10_spill] sm:$0xff] %v4810_v34  ;;  %v4812_v35 = vpop.f32.mrb[54].mxu0 }
 0x144   :  { %5978 = vst [vmem:[#allocation11_spill] sm:$0xff] %v4812_v35  ;;  %v4814_v36 = vpop.f32.mrb[55].mxu0 }
 0x145   :  { %5979 = vst [vmem:[#allocation12_spill] sm:$0xff] %v4814_v36 }
 0x149   :  { %v4821_v38 = vpop.f32.mrb[56].mxu0 }
 0x14a   :  { %5980 = vst [vmem:[#allocation13_spill] sm:$0xff] %v4821_v38  ;;  %v4826_v25 = vpop.f32.mrb[57].mxu0  ;;  %v4298_v38 = vld [vmem:[%s5952_s3 + $0x30] sm:$0xff]  }
 0x14b   :  { %5981 = vst [vmem:[#allocation14_spill] sm:$0xff] %v4826_v25  ;;  %v4828_v27 = vpop.f32.mrb[58].mxu0  ;;  %2273 = vmatpush1.bf16.msra.mxu1 %v4298_v38  ;;  %v4299_v25 = vld [vmem:[%s5952_s3 + $0x38] sm:$0xff]  }
 0x14c   :  { %5982 = vst [vmem:[#allocation15_spill] sm:$0xff] %v4828_v27  ;;  %v769_v31 = vpop.permute.xlu1 %768  ;;  %v4830_v33 = vpop.f32.mrb[59].mxu0  ;;  %2274 = vmatprep.subr.bf16.mxu1 %v4384_v1 }
 0x14d   :  { %5983 = vst [vmem:[#allocation16_spill] sm:$0xff] %v4830_v33  ;;  %v970_v37 = vmax.f32 %v4601_v40, %v769_v31  ;;  %v765_v35 = vpop.permute.xlu0 %764 }
 0x14e   :  { %v968_v27 = vmax.f32 %v4605_v41, %v765_v35 }
 0x14f   :  { %v1045_v33 = vadd.f32 %v4840_v32, %v970_v37  ;;  %2275 = vmatpush1.bf16.msra.mxu1 %v4299_v25  ;;  %v1253_v25 = vld [vmem:[#allocation2 + $0x8] sm:$0xff] }
 0x150   :  { %v771_v39 = vpop.permute.xlu1 %770  ;;  %v1043_v36 = vadd.f32 %v4840_v32, %v968_v27  ;;  %2276 = vmatprep.subr.bf16.mxu1 %v4384_v1  ;;  %1287 = vst.msk [vmem:[#allocation3 + $0x10] sm:$0xff] %vm1179_vm2, %v1253_v25 }
 0x151   :  { %v971_v40 = vmax.f32 %v4609_v42, %v771_v39  ;;  %v767_v31 = vpop.permute.xlu0 %766  ;;  %v1113_v35 = vmax.f32 %v1045_v33, 0.0  ;;  %v4300_v42 = vld [vmem:[%s5952_s3 + $0x40] sm:$0xff]  }
 0x152   :  { %v969_v34 = vmax.f32 %v4611_v43, %v767_v31  ;;  %v1111_v39 = vmax.f32 %v1043_v36, 0.0 }
 0x153   :  { %v1046_v29 = vadd.f32 %v4840_v32, %v971_v40  ;;  %2277 = vmatpush1.bf16.msra.mxu1 %v4300_v42 }
 0x154   :  { %v1044_v41 = vadd.f32 %v4840_v32, %v969_v34  ;;  %2278 = vmatprep.subr.bf16.mxu1 %v4384_v1 }
 0x155   :  { %v1114_v38 = vmax.f32 %v1046_v29, 0.0  ;;  %v777_v37 = vpop.permute.xlu0 %776 }
 0x156   :  { %v1112_v20 = vmax.f32 %v1044_v41, 0.0  ;;  %v974_v27 = vmax.f32 %v4617_v44, %v777_v37  ;;  %v779_v19 = vpop.permute.xlu1 %778  ;;  %v4301_v44 = vld [vmem:[%s5952_s3 + $0x48] sm:$0xff]   ;;  %s4387_s3 = smov 64  }
 0x157   :  { %v1185_v43 = vpack.c.bf16 %v1114_v38, %v1113_v35  ;;  %v975_v40 = vmax.f32 %v4623_v46, %v779_v19  ;;  %2279 = vmatpush1.bf16.msra.mxu1 %v4301_v44 }
 0x158   :  { %v1184_v34 = vpack.c.bf16 %v1112_v20, %v1111_v39  ;;  %v1049_v31 = vadd.f32 %v4840_v32, %v974_v27 }
 0x159   :  { %1219 = vst.msk [vmem:[#allocation2 + $0x18] sm:$0xff] %vm1179_vm2, %v1185_v43  ;;  %v1050_v29 = vadd.f32 %v4840_v32, %v975_v40  ;;  %v773_v36 = vpop.permute.xlu0 %772 }
 0x15a   :  { %1218 = vst.msk [vmem:[#allocation2 + $0x10] sm:$0xff] %vm1179_vm2, %v1184_v34  ;;  %v1117_v46 = vmax.f32 %v1049_v31, 0.0  ;;  %v972_v19 = vmax.f32 %v4619_v45, %v773_v36  ;;  %v775_v20 = vpop.permute.xlu1 %774 }
 0x15b   :  { %v1118_v33 = vmax.f32 %v1050_v29, 0.0  ;;  %v973_v41 = vmax.f32 %v4627_v47, %v775_v20 }
 0x15c   :  { %v1047_v1 = vadd.f32 %v4840_v32, %v972_v19 }
 0x15d   :  { %v1187_v35 = vpack.c.bf16 %v1118_v33, %v1117_v46  ;;  %v1048_v38 = vadd.f32 %v4840_v32, %v973_v41  ;;  %v785_v37 = vpop.permute.xlu0 %784 }
 0x15e   :  { %v1115_v42 = vmax.f32 %v1047_v1, 0.0  ;;  %v978_v39 = vmax.f32 %v4633_v48, %v785_v37  ;;  %v787_v27 = vpop.permute.xlu1 %786 }
 0x15f   :  { %1221 = vst.msk [vmem:[#allocation2 + $0x28] sm:$0xff] %vm1179_vm2, %v1187_v35  ;;  %v1116_v43 = vmax.f32 %v1048_v38, 0.0  ;;  %v979_v45 = vmax.f32 %v4639_v50, %v787_v27 }
 0x160   :  { %v1053_v40 = vadd.f32 %v4840_v32, %v978_v39  ;;  %v1730_v25 = vld [vmem:[#allocation2 + $0x18] sm:$0xff]  ;;  %v4898_v39 = vpop.f32.mrb[60].mxu0 }
 0x161   :  { %v1186_v47 = vpack.c.bf16 %v1116_v43, %v1115_v42  ;;  %v1054_v34 = vadd.f32 %v4840_v32, %v979_v45  ;;  %v781_v31 = vpop.permute.xlu0 %780  ;;  %1798 = vrot.lane.b32.xlu0 %v1730_v25, %s4386_s29  ;;  %v1525_v29 = vld [vmem:[#allocation2 + $0x10] sm:$0xff]  ;;  %1289 = vst.msk [vmem:[#allocation3 + $0x30] sm:$0xff] %vm1179_vm2, %v1730_v25  ;;  %v4903_v45 = vpop.f32.mrb[61].mxu0 }
 0x162   :  { %v1121_v36 = vmax.f32 %v1053_v40, 0.0  ;;  %v976_v48 = vmax.f32 %v4635_v49, %v781_v31  ;;  %v783_v44 = vpop.permute.xlu1 %782  ;;  %1593 = vrot.lane.b32.xlu1 %v1525_v29, %s4387_s3  ;;  %1288 = vst.msk [vmem:[#allocation3 + $0x20] sm:$0xff] %vm1179_vm2, %v1525_v29  ;;  %v4906_v31 = vpop.f32.mrb[62].mxu0 }
 0x163   :  { %1220 = vst.msk [vmem:[#allocation2 + $0x20] sm:$0xff] %vm1179_vm2, %v1186_v47  ;;  %v1122_v50 = vmax.f32 %v1054_v34, 0.0  ;;  %v977_v46 = vmax.f32 %v4643_v51, %v783_v44 }
 0x164   :  { %v1051_v19 = vadd.f32 %v4840_v32, %v976_v48  ;;  %v4913_v48 = vpop.f32.mrb[63].mxu0 }
 0x165   :  { %v1189_v20 = vpack.c.bf16 %v1122_v50, %v1121_v36  ;;  %v1052_v33 = vadd.f32 %v4840_v32, %v977_v46  ;;  %v793_v41 = vpop.permute.xlu0 %792  ;;  %1595 = vrot.lane.b32.xlu0 %v1730_v25, %s4387_s3 }
 0x166   :  { %v1119_v49 = vmax.f32 %v1051_v19, 0.0  ;;  %v982_v1 = vmax.f32 %v4649_v52, %v793_v41  ;;  %v795_v35 = vpop.permute.xlu1 %794  ;;  %1390 = vrot.lane.b32.xlu1 %v1525_v29, %s4385_s17  ;;  %v4889_v38 = vld [vmem:[#allocation2 + $0x28] sm:$0xff] }
 0x167   :  { %1223 = vst.msk [vmem:[#allocation2 + $0x38] sm:$0xff] %vm1179_vm2, %v1189_v20  ;;  %v1120_v37 = vmax.f32 %v1052_v33, 0.0  ;;  %v983_v51 = vmax.f32 %v4655_v54, %v795_v35  ;;  %1970 = vst.msk [vmem:[#allocation3 + $0x18] sm:$0xff] %vm1179_vm2, %v4889_v38 }
 0x168   :  { %1291 = vst.msk [vmem:[#allocation3 + $0x50] sm:$0xff] %vm1179_vm2, %v4889_v38  ;;  %v1057_v42 = vadd.f32 %v4840_v32, %v982_v1 }
 0x169   :  { %v1188_v52 = vpack.c.bf16 %v1120_v37, %v1119_v49  ;;  %v1058_v27 = vadd.f32 %v4840_v32, %v983_v51  ;;  %v789_v43 = vpop.permute.xlu0 %788  ;;  %852 = vrot.lane.b32.xlu0 %v4779_v22, %s4386_s29 }
 0x16a   :  { %v1125_v54 = vmax.f32 %v1057_v42, 0.0  ;;  %v980_v40 = vmax.f32 %v4651_v53, %v789_v43  ;;  %v791_v47 = vpop.permute.xlu1 %790  ;;  %v1731_v34 = vld [vmem:[#allocation2 + $0x20] sm:$0xff] }
 0x16b   :  { %1222 = vst.msk [vmem:[#allocation2 + $0x30] sm:$0xff] %vm1179_vm2, %v1188_v52  ;;  %v1126_v29 = vmax.f32 %v1058_v27, 0.0  ;;  %v981_v36 = vmax.f32 %v4659_v55, %v791_v47  ;;  %1800 = vrot.lane.b32.xlu1 %v1731_v34, %s4386_s29  ;;  %1969 = vst.msk [vmem:[#allocation3 + $0x8] sm:$0xff] %vm1179_vm2, %v1731_v34 }
 0x16c   :  { %1290 = vst.msk [vmem:[#allocation3 + $0x40] sm:$0xff] %vm1179_vm2, %v1731_v34  ;;  %v1055_v44 = vadd.f32 %v4840_v32, %v980_v40 }
 0x16d   :  { %v1191_v53 = vpack.c.bf16 %v1126_v29, %v1125_v54  ;;  %v1056_v50 = vadd.f32 %v4840_v32, %v981_v36  ;;  %v801_v46 = vpop.permute.xlu0 %800  ;;  %1392 = vrot.lane.b32.xlu0 %v1730_v25, %s4385_s17 }
 0x16e   :  { %v1123_v19 = vmax.f32 %v1055_v44, 0.0  ;;  %v986_v20 = vmax.f32 %v4665_v56, %v801_v46  ;;  %v803_v55 = vpop.permute.xlu1 %802  ;;  %v4919_v33 = vld [vmem:[#allocation2 + $0x38] sm:$0xff] }
 0x16f   :  { %1225 = vst.msk [vmem:[#allocation2 + $0x48] sm:$0xff] %vm1179_vm2, %v1191_v53  ;;  %v1124_v41 = vmax.f32 %v1056_v50, 0.0  ;;  %v987_v49 = vmax.f32 %v4671_v58, %v803_v55  ;;  %854 = vrot.lane.b32.xlu1 %v4783_v24, %s4386_s29  ;;  %1972 = vst.msk [vmem:[#allocation3 + $0x38] sm:$0xff] %vm1179_vm2, %v4919_v33 }
 0x170   :  { %1293 = vst.msk [vmem:[#allocation3 + $0x70] sm:$0xff] %vm1179_vm2, %v4919_v33  ;;  %v1061_v25 = vadd.f32 %v4840_v32, %v986_v20 }
 0x171   :  { %v1190_v56 = vpack.c.bf16 %v1124_v41, %v1123_v19  ;;  %v1062_v1 = vadd.f32 %v4840_v32, %v987_v49  ;;  %v797_v35 = vpop.permute.xlu0 %796  ;;  %1802 = vrot.lane.b32.xlu0 %v4889_v38, %s4386_s29 }
 0x172   :  { %v1129_v37 = vmax.f32 %v1061_v25, 0.0  ;;  %v984_v58 = vmax.f32 %v4667_v57, %v797_v35  ;;  %v799_v51 = vpop.permute.xlu1 %798  ;;  %v2004_v42 = vld [vmem:[#allocation3 + $0x8] sm:$0xff]  ;;  %v4934_v52 = vld [vmem:[#allocation2 + $0x30] sm:$0xff] }
 0x173   :  { %1224 = vst.msk [vmem:[#allocation2 + $0x40] sm:$0xff] %vm1179_vm2, %v1190_v56  ;;  %v1130_v27 = vmax.f32 %v1062_v1, 0.0  ;;  %v985_v43 = vmax.f32 %v4675_v59, %v799_v51  ;;  %3875 = vmatprep.mubr.msk.bf16.mxu1 %vm1179_vm2, %v2004_v42  ;;  %1597 = vrot.lane.b32.xlu1 %v1731_v34, %s4387_s3  ;;  %1971 = vst.msk [vmem:[#allocation3 + $0x28] sm:$0xff] %vm1179_vm2, %v4934_v52 }
 0x174   :  { %1292 = vst.msk [vmem:[#allocation3 + $0x60] sm:$0xff] %vm1179_vm2, %v4934_v52  ;;  %v1059_v57 = vadd.f32 %v4840_v32, %v984_v58 }
 0x175   :  { %v1193_v54 = vpack.c.bf16 %v1130_v27, %v1129_v37  ;;  %v1060_v40 = vadd.f32 %v4840_v32, %v985_v43  ;;  %v805_v47 = vpop.permute.xlu0 %804  ;;  %1599 = vrot.lane.b32.xlu0 %v4889_v38, %s4387_s3 }
 0x176   :  { %v1127_v59 = vmax.f32 %v1059_v57, 0.0  ;;  %v809_v29 = vpop.permute.xlu1 %808  ;;  %v4948_v36 = vld [vmem:[#allocation2 + $0x48] sm:$0xff]  ;;  %v988_v53 = vmax.f32 %v4683_v61, %v805_v47 }
 0x177   :  { %1227 = vst.msk [vmem:[#allocation2 + $0x58] sm:$0xff] %vm1179_vm2, %v1193_v54  ;;  %v1128_v44 = vmax.f32 %v1060_v40, 0.0  ;;  %v990_v50 = vmax.f32 %v4681_v60, %v809_v29  ;;  %1394 = vrot.lane.b32.xlu1 %v1731_v34, %s4385_s17  ;;  %1974 = vst.msk [vmem:[#allocation3 + $0x58] sm:$0xff] %vm1179_vm2, %v4948_v36 }
 0x178   :  { %1295 = vst.msk [vmem:[#allocation3 + $0x90] sm:$0xff] %vm1179_vm2, %v4948_v36  ;;  %v1063_v60 = vadd.f32 %v4840_v32, %v988_v53 }
 0x179   :  { %v1192_v46 = vpack.c.bf16 %v1128_v44, %v1127_v59  ;;  %v811_v19 = vpop.permute.xlu0 %810  ;;  %1396 = vrot.lane.b32.xlu0 %v4889_v38, %s4385_s17  ;;  %v1065_v20 = vadd.f32 %v4840_v32, %v990_v50 }
 0x17a   :  { %v991_v55 = vmax.f32 %v4687_v62, %v811_v19  ;;  %v807_v61 = vpop.permute.xlu1 %806  ;;  %v4962_v41 = vld [vmem:[#allocation2 + $0x40] sm:$0xff]  ;;  %v1131_v35 = vmax.f32 %v1063_v60, 0.0 }
 0x17b   :  { %1226 = vst.msk [vmem:[#allocation2 + $0x50] sm:$0xff] %vm1179_vm2, %v1192_v46  ;;  %v989_v34 = vmax.f32 %v4691_v63, %v807_v61  ;;  %1804 = vrot.lane.b32.xlu1 %v4934_v52, %s4386_s29  ;;  %1973 = vst.msk [vmem:[#allocation3 + $0x48] sm:$0xff] %vm1179_vm2, %v4962_v41  ;;  %v1133_v25 = vmax.f32 %v1065_v20, 0.0 }
 0x17c   :  { %1294 = vst.msk [vmem:[#allocation3 + $0x80] sm:$0xff] %vm1179_vm2, %v4962_v41  ;;  %v1066_v62 = vadd.f32 %v4840_v32, %v991_v55  ;;  %v5011_v55 = vpop.f32.mrb[64].mxu0 }
 0x17d   :  { %v1064_v38 = vadd.f32 %v4840_v32, %v989_v34  ;;  %v813_v49 = vpop.permute.xlu0 %812  ;;  %1806 = vrot.lane.b32.xlu0 %v4919_v33, %s4386_s29  ;;  %v5013_v60 = vpop.f32.mrb[65].mxu0 }
 0x17e   :  { %v1134_v56 = vmax.f32 %v1066_v62, 0.0  ;;  %v817_v63 = vpop.permute.xlu1 %816  ;;  %v4977_v1 = vld [vmem:[#allocation2 + $0x58] sm:$0xff]  ;;  %v992_v58 = vmax.f32 %v4699_v2, %v813_v49  ;;  %v5024_v49 = vpop.f32.mrb[66].mxu0 }
 0x17f   :  { %v1132_v37 = vmax.f32 %v1064_v38, 0.0  ;;  %v994_v51 = vmax.f32 %v4697_v0, %v817_v63  ;;  %856 = vrot.lane.b32.xlu1 %v4777_v21, %s4386_s29  ;;  %1976 = vst.msk [vmem:[#allocation3 + $0x78] sm:$0xff] %vm1179_vm2, %v4977_v1  ;;  %1297 = vst.msk [vmem:[#allocation3 + $0xb0] sm:$0xff] %vm1179_vm2, %v4977_v1 }
 0x180   :  { %v1195_v42 = vpack.c.bf16 %v1134_v56, %v1133_v25  ;;  %v1067_v40 = vadd.f32 %v4840_v32, %v992_v58 }
 0x181   :  { %v1194_v27 = vpack.c.bf16 %v1132_v37, %v1131_v35  ;;  %v819_v43 = vpop.permute.xlu0 %818  ;;  %1603 = vrot.lane.b32.xlu0 %v4919_v33, %s4387_s3  ;;  %v1069_v2 = vadd.f32 %v4840_v32, %v994_v51 }
 0x182   :  { %1229 = vst.msk [vmem:[#allocation2 + $0x68] sm:$0xff] %vm1179_vm2, %v1195_v42  ;;  %v995_v0 = vmax.f32 %v4703_v3, %v819_v43  ;;  %v815_v57 = vpop.permute.xlu1 %814  ;;  %v4992_v54 = vld [vmem:[#allocation2 + $0x50] sm:$0xff]  ;;  %v1135_v50 = vmax.f32 %v1067_v40, 0.0 }
 0x183   :  { %1228 = vst.msk [vmem:[#allocation2 + $0x60] sm:$0xff] %vm1179_vm2, %v1194_v27  ;;  %v993_v47 = vmax.f32 %v4707_v4, %v815_v57  ;;  %1601 = vrot.lane.b32.xlu1 %v4934_v52, %s4387_s3  ;;  %1975 = vst.msk [vmem:[#allocation3 + $0x68] sm:$0xff] %vm1179_vm2, %v4992_v54  ;;  %v1137_v44 = vmax.f32 %v1069_v2, 0.0 }
 0x184   :  { %1296 = vst.msk [vmem:[#allocation3 + $0xa0] sm:$0xff] %vm1179_vm2, %v4992_v54  ;;  %v1070_v3 = vadd.f32 %v4840_v32, %v995_v0 }
 0x185   :  { %v1068_v59 = vadd.f32 %v4840_v32, %v993_v47  ;;  %v821_v29 = vpop.permute.xlu0 %820  ;;  %1400 = vrot.lane.b32.xlu0 %v4919_v33, %s4385_s17 }
 0x186   :  { %v1138_v53 = vmax.f32 %v1070_v3, 0.0  ;;  %v825_v4 = vpop.permute.xlu1 %824  ;;  %v996_v19 = vmax.f32 %v4715_v6, %v821_v29 }
 0x187   :  { %v1136_v46 = vmax.f32 %v1068_v59, 0.0  ;;  %v998_v20 = vmax.f32 %v4713_v5, %v825_v4  ;;  %1398 = vrot.lane.b32.xlu1 %v4934_v52, %s4385_s17 }
 0x188   :  { %v1197_v61 = vpack.c.bf16 %v1138_v53, %v1137_v44  ;;  %v1071_v25 = vadd.f32 %v4840_v32, %v996_v19 }
 0x189   :  { %v1196_v34 = vpack.c.bf16 %v1136_v46, %v1135_v50  ;;  %v827_v62 = vpop.permute.xlu0 %826  ;;  %858 = vrot.lane.b32.xlu0 %v4781_v23, %s4386_s29  ;;  %v5017_v33 = vld [vmem:[#allocation2 + $0x68] sm:$0xff]  ;;  %v1073_v6 = vadd.f32 %v4840_v32, %v998_v20 }
 0x18a   :  { %1231 = vst.msk [vmem:[#allocation2 + $0x78] sm:$0xff] %vm1179_vm2, %v1197_v61  ;;  %v999_v5 = vmax.f32 %v4719_v7, %v827_v62  ;;  %v823_v38 = vpop.permute.xlu1 %822  ;;  %v5022_v52 = vld [vmem:[#allocation2 + $0x60] sm:$0xff]  ;;  %1978 = vst.msk [vmem:[#allocation3 + $0x98] sm:$0xff] %vm1179_vm2, %v5017_v33  ;;  %v5035_v7 = vpop.f32.mrb[67].mxu0  ;;  %v1139_v42 = vmax.f32 %v1071_v25, 0.0 }
 0x18b   :  { %1299 = vst.msk [vmem:[#allocation3 + $0xd0] sm:$0xff] %vm1179_vm2, %v5017_v33  ;;  %1230 = vst.msk [vmem:[#allocation2 + $0x70] sm:$0xff] %vm1179_vm2, %v1196_v34  ;;  %v997_v56 = vmax.f32 %v4723_v8, %v823_v38  ;;  %1808 = vrot.lane.b32.xlu1 %v4962_v41, %s4386_s29  ;;  %v1141_v8 = vmax.f32 %v1073_v6, 0.0 }
 0x18c   :  { %1977 = vst.msk [vmem:[#allocation3 + $0x88] sm:$0xff] %vm1179_vm2, %v5022_v52  ;;  %1298 = vst.msk [vmem:[#allocation3 + $0xc0] sm:$0xff] %vm1179_vm2, %v5022_v52  ;;  %v1074_v63 = vadd.f32 %v4840_v32, %v999_v5 }
 0x18d   :  { %v1072_v35 = vadd.f32 %v4840_v32, %v997_v56  ;;  %v829_v37 = vpop.permute.xlu0 %828  ;;  %860 = vrot.lane.b32.xlu0 %v4794_v28, %s4386_s29 }
 0x18e   :  { %v1142_v58 = vmax.f32 %v1074_v63, 0.0  ;;  %v833_v51 = vpop.permute.xlu1 %832  ;;  %v1000_v43 = vmax.f32 %v4731_v10, %v829_v37 }
 0x18f   :  { %v1140_v27 = vmax.f32 %v1072_v35, 0.0  ;;  %v1002_v2 = vmax.f32 %v4729_v9, %v833_v51  ;;  %862 = vrot.lane.b32.xlu1 %v4798_v30, %s4386_s29 }
 0x190   :  { %v1199_v0 = vpack.c.bf16 %v1142_v58, %v1141_v8  ;;  %v1075_v9 = vadd.f32 %v4840_v32, %v1000_v43 }
 0x191   :  { %v1198_v57 = vpack.c.bf16 %v1140_v27, %v1139_v42  ;;  %v835_v40 = vpop.permute.xlu0 %834  ;;  %1810 = vrot.lane.b32.xlu0 %v4948_v36, %s4386_s29  ;;  %v5051_v47 = vld [vmem:[#allocation2 + $0x78] sm:$0xff]  ;;  %v1077_v3 = vadd.f32 %v4840_v32, %v1002_v2 }
 0x192   :  { %1233 = vst.msk [vmem:[#allocation2 + $0x88] sm:$0xff] %vm1179_vm2, %v1199_v0  ;;  %v1003_v59 = vmax.f32 %v4735_v11, %v835_v40  ;;  %v831_v10 = vpop.permute.xlu1 %830  ;;  %v5056_v29 = vld [vmem:[#allocation2 + $0x70] sm:$0xff]  ;;  %1980 = vst.msk [vmem:[#allocation3 + $0xb8] sm:$0xff] %vm1179_vm2, %v5051_v47  ;;  %v1143_v19 = vmax.f32 %v1075_v9, 0.0 }
 0x193   :  { %1301 = vst.msk [vmem:[#allocation3 + $0xf0] sm:$0xff] %vm1179_vm2, %v5051_v47  ;;  %1232 = vst.msk [vmem:[#allocation2 + $0x80] sm:$0xff] %vm1179_vm2, %v1198_v57  ;;  %v1001_v44 = vmax.f32 %v4739_v12, %v831_v10  ;;  %1605 = vrot.lane.b32.xlu1 %v4962_v41, %s4387_s3  ;;  %v1145_v50 = vmax.f32 %v1077_v3, 0.0  ;;  %v5984_v3 = vld [vmem:[#allocation6_spill] sm:$0xff]  ;;  %v5985_v9 = vld [vmem:[#allocation7_spill] sm:$0xff] }
 0x194   :  { %1979 = vst.msk [vmem:[#allocation3 + $0xa8] sm:$0xff] %vm1179_vm2, %v5056_v29  ;;  %1300 = vst.msk [vmem:[#allocation3 + $0xe0] sm:$0xff] %vm1179_vm2, %v5056_v29  ;;  %v1078_v11 = vadd.f32 %v4840_v32, %v1003_v59 }
 0x195   :  { %v1076_v53 = vadd.f32 %v4840_v32, %v1001_v44  ;;  %v837_v4 = vpop.permute.xlu0 %836  ;;  %1607 = vrot.lane.b32.xlu0 %v4948_v36, %s4387_s3 }
 0x196   :  { %v1146_v46 = vmax.f32 %v1078_v11, 0.0  ;;  %v841_v12 = vpop.permute.xlu1 %840  ;;  %v1004_v61 = vmax.f32 %v4747_v14, %v837_v4 }
 0x197   :  { %v1144_v20 = vmax.f32 %v1076_v53, 0.0  ;;  %v1006_v34 = vmax.f32 %v4745_v13, %v841_v12  ;;  %1402 = vrot.lane.b32.xlu1 %v4962_v41, %s4385_s17 }
 0x198   :  { %v1201_v62 = vpack.c.bf16 %v1146_v46, %v1145_v50  ;;  %v1079_v13 = vadd.f32 %v4840_v32, %v1004_v61  ;;  %v5986_v61 = vld [vmem:[#allocation8_spill] sm:$0xff] }
 0x199   :  { %v1200_v6 = vpack.c.bf16 %v1144_v20, %v1143_v19  ;;  %v843_v5 = vpop.permute.xlu0 %842  ;;  %1404 = vrot.lane.b32.xlu0 %v4948_v36, %s4385_s17  ;;  %v5081_v38 = vld [vmem:[#allocation2 + $0x88] sm:$0xff]  ;;  %v1081_v25 = vadd.f32 %v4840_v32, %v1006_v34 }
 0x19a   :  { %1235 = vst.msk [vmem:[#allocation2 + $0x98] sm:$0xff] %vm1179_vm2, %v1201_v62  ;;  %v1007_v56 = vmax.f32 %v4751_v15, %v843_v5  ;;  %v839_v14 = vpop.permute.xlu1 %838  ;;  %v5086_v63 = vld [vmem:[#allocation2 + $0x80] sm:$0xff]  ;;  %1982 = vst.msk [vmem:[#allocation3 + $0xd8] sm:$0xff] %vm1179_vm2, %v5081_v38  ;;  %v1147_v58 = vmax.f32 %v1079_v13, 0.0 }
 0x19b   :  { %1303 = vst.msk [vmem:[#allocation3 + $0x110] sm:$0xff] %vm1179_vm2, %v5081_v38  ;;  %1234 = vst.msk [vmem:[#allocation2 + $0x90] sm:$0xff] %vm1179_vm2, %v1200_v6  ;;  %v1005_v36 = vmax.f32 %v4755_v16, %v839_v14  ;;  %1812 = vrot.lane.b32.xlu1 %v4992_v54, %s4386_s29  ;;  %v1149_v37 = vmax.f32 %v1081_v25, 0.0  ;;  %v5989_v25 = vld [vmem:[#allocation9_spill] sm:$0xff] }
 0x19c   :  { %1981 = vst.msk [vmem:[#allocation3 + $0xc8] sm:$0xff] %vm1179_vm2, %v5086_v63  ;;  %1302 = vst.msk [vmem:[#allocation3 + $0x100] sm:$0xff] %vm1179_vm2, %v5086_v63  ;;  %v1082_v15 = vadd.f32 %v4840_v32, %v1007_v56  ;;  %v5992_v56 = vld [vmem:[#allocation16_spill] sm:$0xff] }
 0x19d   :  { %v1080_v41 = vadd.f32 %v4840_v32, %v1005_v36  ;;  %v845_v35 = vpop.permute.xlu0 %844  ;;  %1814 = vrot.lane.b32.xlu0 %v4977_v1, %s4386_s29 }
 0x19e   :  { %v1150_v8 = vmax.f32 %v1082_v15, 0.0  ;;  %v849_v16 = vpop.permute.xlu1 %848  ;;  %v1008_v42 = vmax.f32 %v4763_v18, %v845_v35 }
 0x19f   :  { %v1148_v51 = vmax.f32 %v1080_v41, 0.0  ;;  %v1010_v27 = vmax.f32 %v4761_v17, %v849_v16  ;;  %864 = vrot.lane.b32.xlu1 %v4789_v26, %s4386_s29 }
 0x1a0   :  { %v1203_v43 = vpack.c.bf16 %v1150_v8, %v1149_v37  ;;  %v1083_v17 = vadd.f32 %v4840_v32, %v1008_v42  ;;  %v5993_v37 = vld [vmem:[#allocation13_spill] sm:$0xff] }
 0x1a1   :  { %v1202_v2 = vpack.c.bf16 %v1148_v51, %v1147_v58  ;;  %v851_v0 = vpop.permute.xlu0 %850  ;;  %1611 = vrot.lane.b32.xlu0 %v4977_v1, %s4387_s3  ;;  %v5111_v57 = vld [vmem:[#allocation2 + $0x98] sm:$0xff]  ;;  %v1085_v40 = vadd.f32 %v4840_v32, %v1010_v27 }
 0x1a2   :  { %1237 = vst.msk [vmem:[#allocation2 + $0xa8] sm:$0xff] %vm1179_vm2, %v1203_v43  ;;  %v1011_v59 = vmax.f32 %v5984_v3, %v851_v0  ;;  %v847_v18 = vpop.permute.xlu1 %846  ;;  %v5116_v10 = vld [vmem:[#allocation2 + $0x90] sm:$0xff]  ;;  %1984 = vst.msk [vmem:[#allocation3 + $0xf8] sm:$0xff] %vm1179_vm2, %v5111_v57  ;;  %v1151_v46 = vmax.f32 %v1083_v17, 0.0  ;;  %v2008_v0 = vld [vmem:[#allocation3 + $0x28] sm:$0xff] }
 0x1a3   :  { %1305 = vst.msk [vmem:[#allocation3 + $0x130] sm:$0xff] %vm1179_vm2, %v5111_v57  ;;  %1236 = vst.msk [vmem:[#allocation2 + $0xa0] sm:$0xff] %vm1179_vm2, %v1202_v2  ;;  %v1009_v44 = vmax.f32 %v5985_v9, %v847_v18  ;;  %1609 = vrot.lane.b32.xlu1 %v4992_v54, %s4387_s3  ;;  %v1153_v4 = vmax.f32 %v1085_v40, 0.0  ;;  %v2010_v9 = vld [vmem:[#allocation3 + $0x38] sm:$0xff] }
 0x1a4   :  { %1983 = vst.msk [vmem:[#allocation3 + $0xe8] sm:$0xff] %vm1179_vm2, %v5116_v10  ;;  %1304 = vst.msk [vmem:[#allocation3 + $0x120] sm:$0xff] %vm1179_vm2, %v5116_v10  ;;  %v1086_v11 = vadd.f32 %v4840_v32, %v1011_v59  ;;  %v5994_v59 = vld [vmem:[#allocation15_spill] sm:$0xff] }
 0x1a5   :  { %v1084_v53 = vadd.f32 %v4840_v32, %v1009_v44  ;;  %1408 = vrot.lane.b32.xlu0 %v4977_v1, %s4385_s17  ;;  %v5987_v1 = vld [vmem:[#allocation10_spill] sm:$0xff] }
 0x1a6   :  { %v1154_v50 = vmax.f32 %v1086_v11, 0.0 }
 0x1a7   :  { %v1152_v12 = vmax.f32 %v1084_v53, 0.0  ;;  %1406 = vrot.lane.b32.xlu1 %v4992_v54, %s4385_s17  ;;  %v5988_v54 = vld [vmem:[#allocation12_spill] sm:$0xff] }
 0x1a8   :  { %v1205_v19 = vpack.c.bf16 %v1154_v50, %v1153_v4 }
 0x1a9   :  { %v1204_v20 = vpack.c.bf16 %v1152_v12, %v1151_v46  ;;  %866 = vrot.lane.b32.xlu0 %v5986_v61, %s4386_s29  ;;  %v5139_v34 = vld [vmem:[#allocation2 + $0xa8] sm:$0xff]  ;;  %v2012_v12 = vld [vmem:[#allocation3 + $0x48] sm:$0xff] }
 0x1aa   :  { %1239 = vst.msk [vmem:[#allocation2 + $0xb8] sm:$0xff] %vm1179_vm2, %v1205_v19  ;;  %v5142_v62 = vld [vmem:[#allocation2 + $0xa0] sm:$0xff]  ;;  %1986 = vst.msk [vmem:[#allocation3 + $0x118] sm:$0xff] %vm1179_vm2, %v5139_v34 }
 0x1ab   :  { %1307 = vst.msk [vmem:[#allocation3 + $0x150] sm:$0xff] %vm1179_vm2, %v5139_v34  ;;  %1238 = vst.msk [vmem:[#allocation2 + $0xb0] sm:$0xff] %vm1179_vm2, %v1204_v20  ;;  %1816 = vrot.lane.b32.xlu1 %v5022_v52, %s4386_s29 }
 0x1ac   :  { %1985 = vst.msk [vmem:[#allocation3 + $0x108] sm:$0xff] %vm1179_vm2, %v5142_v62  ;;  %1306 = vst.msk [vmem:[#allocation3 + $0x140] sm:$0xff] %vm1179_vm2, %v5142_v62 }
 0x1ad   :  { %868 = vrot.lane.b32.xlu0 %v5987_v1, %s4386_s29 }
 0x1af   :  { %870 = vrot.lane.b32.xlu1 %v5988_v54, %s4386_s29 }
 0x1b1   :  { %1818 = vrot.lane.b32.xlu0 %v5017_v33, %s4386_s29  ;;  %v5161_v6 = vld [vmem:[#allocation2 + $0xb8] sm:$0xff] }
 0x1b2   :  { %v5163_v5 = vld [vmem:[#allocation2 + $0xb0] sm:$0xff]  ;;  %1988 = vst.msk [vmem:[#allocation3 + $0x138] sm:$0xff] %vm1179_vm2, %v5161_v6  ;;  %1309 = vst.msk [vmem:[#allocation3 + $0x170] sm:$0xff] %vm1179_vm2, %v5161_v6 }
 0x1b3   :  { %1613 = vrot.lane.b32.xlu1 %v5022_v52, %s4387_s3  ;;  %1987 = vst.msk [vmem:[#allocation3 + $0x128] sm:$0xff] %vm1179_vm2, %v5163_v5  ;;  %1308 = vst.msk [vmem:[#allocation3 + $0x160] sm:$0xff] %vm1179_vm2, %v5163_v5 }
 0x1b5   :  { %1615 = vrot.lane.b32.xlu0 %v5017_v33, %s4387_s3 }
 0x1b7   :  { %1410 = vrot.lane.b32.xlu1 %v5022_v52, %s4385_s17  ;;  %v5991_v52 = vld [vmem:[#allocation14_spill] sm:$0xff] }
 0x1b9   :  { %1412 = vrot.lane.b32.xlu0 %v5017_v33, %s4385_s17  ;;  %v5990_v33 = vld [vmem:[#allocation11_spill] sm:$0xff] }
 0x1bb   :  { %1820 = vrot.lane.b32.xlu1 %v5056_v29, %s4386_s29 }
 0x1bd   :  { %1822 = vrot.lane.b32.xlu0 %v5051_v47, %s4386_s29 }
 0x1bf   :  { %872 = vrot.lane.b32.xlu1 %v5989_v25, %s4386_s29 }
 0x1c1   :  { %1619 = vrot.lane.b32.xlu0 %v5051_v47, %s4387_s3 }
 0x1c3   :  { %1617 = vrot.lane.b32.xlu1 %v5056_v29, %s4387_s3 }
 0x1c5   :  { %1416 = vrot.lane.b32.xlu0 %v5051_v47, %s4385_s17 }
 0x1c7   :  { %1414 = vrot.lane.b32.xlu1 %v5056_v29, %s4385_s17 }
 0x1c9   :  { %874 = vrot.lane.b32.xlu0 %v5990_v33, %s4386_s29 }
 0x1cb   :  { %1824 = vrot.lane.b32.xlu1 %v5086_v63, %s4386_s29 }
 0x1cd   :  { %876 = vrot.lane.b32.xlu0 %v5991_v52, %s4386_s29 }
 0x1cf   :  { %878 = vrot.lane.b32.xlu1 %v5992_v56, %s4386_s29 }
 0x1d1   :  { %1826 = vrot.lane.b32.xlu0 %v5081_v38, %s4386_s29 }
 0x1d3   :  { %v1799_v47 = vpop.permute.xlu0 %1798  ;;  %1621 = vrot.lane.b32.xlu1 %v5086_v63, %s4387_s3 }
 0x1d4   :  { %v1594_v29 = vpop.permute.xlu1 %1593 }
 0x1d5   :  { %1696 = vst.msk [vmem:[#allocation3] sm:$0xff] %vm1695_vm4, %v1594_v29  ;;  %1623 = vrot.lane.b32.xlu0 %v5081_v38, %s4387_s3 }
 0x1d6   :  { %1901 = vst.msk [vmem:[#allocation3] sm:$0xff] %vm1900_vm5, %v1799_v47 }
 0x1d7   :  { %v1596_v14 = vpop.permute.xlu0 %1595  ;;  %1418 = vrot.lane.b32.xlu1 %v5086_v63, %s4385_s17  ;;  %v2006_v63 = vld [vmem:[#allocation3 + $0x18] sm:$0xff] }
 0x1d8   :  { %v1391_v13 = vpop.permute.xlu1 %1390 }
 0x1d9   :  { %1492 = vst.msk [vmem:[#allocation3 + $0x10] sm:$0xff] %vm1490_vm3, %v1391_v13  ;;  %1420 = vrot.lane.b32.xlu0 %v5081_v38, %s4385_s17 }
 0x1da   :  { %1697 = vst.msk [vmem:[#allocation3 + $0x10] sm:$0xff] %vm1695_vm4, %v1596_v14 }
 0x1db   :  { %v853_v36 = vpop.permute.xlu0 %852  ;;  %1828 = vrot.lane.b32.xlu1 %v5116_v10, %s4386_s29 }
 0x1dc   :  { %v1012_v35 = vmax.f32 %v4779_v22, %v853_v36  ;;  %v2014_v36 = vld [vmem:[#allocation3 + $0x58] sm:$0xff] }
 0x1dd   :  { %v1801_v15 = vpop.permute.xlu1 %1800  ;;  %1830 = vrot.lane.b32.xlu0 %v5111_v57, %s4386_s29  ;;  %v2003_v41 = vld [vmem:[#allocation3] sm:$0xff] }
 0x1de   :  { %1902 = vst.msk [vmem:[#allocation3 + $0x10] sm:$0xff] %vm1900_vm5, %v1801_v15  ;;  %2293 = vmatmul.mubr.bf16.vlgmr.msra.gmra.mrb[0].mxu1 %v2003_v41  ;;  %v1087_v16 = vadd.f32 %v4840_v32, %v1012_v35 }
 0x1df   :  { %3876 = vmatprep.mubr.msk.bf16.mxu1 %vm1179_vm2, %v2006_v63  ;;  %v1393_v38 = vpop.permute.xlu0 %1392  ;;  %880 = vrot.lane.b32.xlu1 %v5993_v37, %s4386_s29 }
 0x1e0   :  { %1493 = vst.msk [vmem:[#allocation3 + $0x20] sm:$0xff] %vm1490_vm3, %v1393_v38  ;;  %v1155_v43 = vmax.f32 %v1087_v16, 0.0 }
 0x1e1   :  { %v855_v8 = vpop.permute.xlu1 %854  ;;  %1627 = vrot.lane.b32.xlu0 %v5111_v57, %s4387_s3 }
 0x1e2   :  { %v1013_v22 = vmax.f32 %v4783_v24, %v855_v8 }
 0x1e3   :  { %v1803_v58 = vpop.permute.xlu0 %1802  ;;  %1625 = vrot.lane.b32.xlu1 %v5116_v10, %s4387_s3 }
 0x1e4   :  { %v1088_v51 = vadd.f32 %v4840_v32, %v1013_v22 }
 0x1e5   :  { %v1598_v42 = vpop.permute.xlu1 %1597  ;;  %1424 = vrot.lane.b32.xlu0 %v5111_v57, %s4385_s17  ;;  %v2005_v27 = vld [vmem:[#allocation3 + $0x10] sm:$0xff] }
 0x1e6   :  { %v1156_v2 = vmax.f32 %v1088_v51, 0.0  ;;  %1698 = vst.msk [vmem:[#allocation3 + $0x20] sm:$0xff] %vm1695_vm4, %v1598_v42  ;;  %2301 = vmatmul.mubr.bf16.gmra.mrb[4].mxu1 %v2005_v27  ;;  %v2016_v27 = vld [vmem:[#allocation3 + $0x68] sm:$0xff] }
 0x1e7   :  { %1903 = vst.msk [vmem:[#allocation3 + $0x20] sm:$0xff] %vm1900_vm5, %v1803_v58  ;;  %3877 = vmatprep.mubr.msk.bf16.mxu1 %vm1179_vm2, %v2008_v0  ;;  %v1600_v24 = vpop.permute.xlu0 %1599  ;;  %1422 = vrot.lane.b32.xlu1 %v5116_v10, %s4385_s17 }
 0x1e8   :  { %v1206_v40 = vpack.c.bf16 %v1156_v2, %v1155_v43 }
 0x1e9   :  { %v1395_v3 = vpop.permute.xlu1 %1394  ;;  %882 = vrot.lane.b32.xlu0 %v5994_v59, %s4386_s29 }
 0x1ea   :  { %1240 = vst.msk [vmem:[#allocation2 + $0xc0] sm:$0xff] %vm1179_vm2, %v1206_v40 }
 0x1eb   :  { %1494 = vst.msk [vmem:[#allocation3 + $0x30] sm:$0xff] %vm1490_vm3, %v1395_v3  ;;  %v1397_v57 = vpop.permute.xlu0 %1396  ;;  %1832 = vrot.lane.b32.xlu1 %v5142_v62, %s4386_s29  ;;  %v2018_v3 = vld [vmem:[#allocation3 + $0x78] sm:$0xff] }
 0x1ec   :  { %1699 = vst.msk [vmem:[#allocation3 + $0x30] sm:$0xff] %vm1695_vm4, %v1600_v24 }
 0x1ed   :  { %1495 = vst.msk [vmem:[#allocation3 + $0x40] sm:$0xff] %vm1490_vm3, %v1397_v57  ;;  %v1805_v18 = vpop.permute.xlu1 %1804  ;;  %884 = vrot.lane.b32.xlu0 %v4903_v45, %s4386_s29 }
 0x1ee   :  { %1904 = vst.msk [vmem:[#allocation3 + $0x30] sm:$0xff] %vm1900_vm5, %v1805_v18  ;;  %v2007_v10 = vld [vmem:[#allocation3 + $0x20] sm:$0xff] }
 0x1ef   :  { %v1807_v17 = vpop.permute.xlu0 %1806  ;;  %2309 = vmatmul.mubr.bf16.gmra.mrb[8].mxu1 %v2007_v10  ;;  %886 = vrot.lane.b32.xlu1 %v4913_v48, %s4386_s29 }
 0x1f0   :  { %3878 = vmatprep.mubr.msk.bf16.mxu1 %vm1179_vm2, %v2010_v9 }
 0x1f1   :  { %v857_v44 = vpop.permute.xlu1 %856  ;;  %1834 = vrot.lane.b32.xlu0 %v5139_v34, %s4386_s29  ;;  %v5257_v11 = vld [vmem:[#allocation2 + $0xc0] sm:$0xff] }
 0x1f2   :  { %1989 = vst.msk [vmem:[#allocation3 + $0x148] sm:$0xff] %vm1179_vm2, %v5257_v11  ;;  %1310 = vst.msk [vmem:[#allocation3 + $0x180] sm:$0xff] %vm1179_vm2, %v5257_v11  ;;  %v1014_v19 = vmax.f32 %v4777_v21, %v857_v44  ;;  %v2020_v44 = vld [vmem:[#allocation3 + $0x88] sm:$0xff] }
 0x1f3   :  { %v1604_v53 = vpop.permute.xlu0 %1603  ;;  %1629 = vrot.lane.b32.xlu1 %v5142_v62, %s4387_s3 }
 0x1f5   :  { %v1602_v4 = vpop.permute.xlu1 %1601  ;;  %1631 = vrot.lane.b32.xlu0 %v5139_v34, %s4387_s3  ;;  %v2009_v50 = vld [vmem:[#allocation3 + $0x30] sm:$0xff] }
 0x1f6   :  { %1700 = vst.msk [vmem:[#allocation3 + $0x40] sm:$0xff] %vm1695_vm4, %v1602_v4 }
 0x1f7   :  { %1905 = vst.msk [vmem:[#allocation3 + $0x40] sm:$0xff] %vm1900_vm5, %v1807_v17  ;;  %v1401_v46 = vpop.permute.xlu0 %1400  ;;  %2317 = vmatmul.mubr.bf16.gmra.mrb[12].mxu1 %v2009_v50  ;;  %1426 = vrot.lane.b32.xlu1 %v5142_v62, %s4385_s17  ;;  %v1089_v62 = vadd.f32 %v4840_v32, %v1014_v19 }
 0x1f8   :  { %1497 = vst.msk [vmem:[#allocation3 + $0x60] sm:$0xff] %vm1490_vm3, %v1401_v46  ;;  %3879 = vmatprep.mubr.msk.bf16.mxu1 %vm1179_vm2, %v2012_v12 }
 0x1f9   :  { %v1399_v20 = vpop.permute.xlu1 %1398  ;;  %1428 = vrot.lane.b32.xlu0 %v5139_v34, %s4385_s17  ;;  %v1157_v15 = vmax.f32 %v1089_v62, 0.0  ;;  %v2022_v62 = vld [vmem:[#allocation3 + $0x98] sm:$0xff] }
 0x1fa   :  { %1496 = vst.msk [vmem:[#allocation3 + $0x50] sm:$0xff] %vm1490_vm3, %v1399_v20 }
 0x1fb   :  { %1701 = vst.msk [vmem:[#allocation3 + $0x50] sm:$0xff] %vm1695_vm4, %v1604_v53  ;;  %v859_v47 = vpop.permute.xlu0 %858  ;;  %1836 = vrot.lane.b32.xlu1 %v5163_v5, %s4386_s29 }
 0x1fc   :  { %v1015_v21 = vmax.f32 %v4781_v23, %v859_v47 }
 0x1fd   :  { %v1809_v29 = vpop.permute.xlu1 %1808  ;;  %1838 = vrot.lane.b32.xlu0 %v5161_v6, %s4386_s29 }
 0x1fe   :  { %v1090_v14 = vadd.f32 %v4840_v32, %v1015_v21  ;;  %1906 = vst.msk [vmem:[#allocation3 + $0x50] sm:$0xff] %vm1900_vm5, %v1809_v29  ;;  %v2011_v34 = vld [vmem:[#allocation3 + $0x40] sm:$0xff] }
 0x1ff   :  { %2325 = vmatmul.mubr.bf16.gmra.mrb[16].mxu1 %v2011_v34  ;;  %v861_v13 = vpop.permute.xlu0 %860  ;;  %888 = vrot.lane.b32.xlu1 %v4898_v39, %s4386_s29 }
 0x200   :  { %v1158_v41 = vmax.f32 %v1090_v14, 0.0  ;;  %v1016_v35 = vmax.f32 %v4794_v28, %v861_v13  ;;  %3880 = vmatprep.mubr.msk.bf16.mxu1 %vm1179_vm2, %v2014_v36 }
 0x201   :  { %v863_v23 = vpop.permute.xlu1 %862  ;;  %890 = vrot.lane.b32.xlu0 %v4906_v31, %s4386_s29 }
 0x202   :  { %v1207_v63 = vpack.c.bf16 %v1158_v41, %v1157_v15  ;;  %v1091_v38 = vadd.f32 %v4840_v32, %v1016_v35  ;;  %v1017_v8 = vmax.f32 %v4798_v30, %v863_v23 }
 0x203   :  { %v1811_v16 = vpop.permute.xlu0 %1810  ;;  %1633 = vrot.lane.b32.xlu1 %v5163_v5, %s4387_s3 }
 0x204   :  { %1241 = vst.msk [vmem:[#allocation2 + $0xc8] sm:$0xff] %vm1179_vm2, %v1207_v63  ;;  %v1092_v22 = vadd.f32 %v4840_v32, %v1017_v8  ;;  %v1159_v51 = vmax.f32 %v1091_v38, 0.0  ;;  %v2024_v8 = vld [vmem:[#allocation3 + $0xa8] sm:$0xff] }
 0x205   :  { %v1606_v28 = vpop.permute.xlu1 %1605  ;;  %1635 = vrot.lane.b32.xlu0 %v5161_v6, %s4387_s3  ;;  %v2013_v58 = vld [vmem:[#allocation3 + $0x50] sm:$0xff] }
 0x206   :  { %v1160_v42 = vmax.f32 %v1092_v22, 0.0  ;;  %1702 = vst.msk [vmem:[#allocation3 + $0x60] sm:$0xff] %vm1695_vm4, %v1606_v28 }
 0x207   :  { %1907 = vst.msk [vmem:[#allocation3 + $0x60] sm:$0xff] %vm1900_vm5, %v1811_v16  ;;  %2333 = vmatmul.mubr.bf16.gmra.mrb[20].mxu1 %v2013_v58  ;;  %v1608_v30 = vpop.permute.xlu0 %1607  ;;  %1430 = vrot.lane.b32.xlu1 %v5163_v5, %s4385_s17 }
 0x208   :  { %v1208_v43 = vpack.c.bf16 %v1160_v42, %v1159_v51  ;;  %3881 = vmatprep.mubr.msk.bf16.mxu1 %vm1179_vm2, %v2016_v27 }
 0x209   :  { %v1403_v32 = vpop.permute.xlu1 %1402  ;;  %892 = vrot.lane.b32.xlu0 %v5013_v60, %s4386_s29 }
 0x20a   :  { %1242 = vst.msk [vmem:[#allocation2 + $0xd0] sm:$0xff] %vm1179_vm2, %v1208_v43 }
 0x20b   :  { %1498 = vst.msk [vmem:[#allocation3 + $0x70] sm:$0xff] %vm1490_vm3, %v1403_v32  ;;  %v1405_v2 = vpop.permute.xlu0 %1404  ;;  %1840 = vrot.lane.b32.xlu1 %v5257_v11, %s4386_s29  ;;  %v1752_v0 = vld [vmem:[#allocation2 + $0xc8] sm:$0xff] }
 0x20c   :  { %1703 = vst.msk [vmem:[#allocation3 + $0x70] sm:$0xff] %vm1695_vm4, %v1608_v30  ;;  %v2026_v30 = vld [vmem:[#allocation3 + $0xb8] sm:$0xff] }
 0x20d   :  { %1499 = vst.msk [vmem:[#allocation3 + $0x80] sm:$0xff] %vm1490_vm3, %v1405_v2  ;;  %v1813_v5 = vpop.permute.xlu1 %1812  ;;  %1432 = vrot.lane.b32.xlu0 %v5161_v6, %s4385_s17 }
 0x20e   :  { %1990 = vst.msk [vmem:[#allocation3 + $0x158] sm:$0xff] %vm1179_vm2, %v1752_v0  ;;  %1311 = vst.msk [vmem:[#allocation3 + $0x190] sm:$0xff] %vm1179_vm2, %v1752_v0  ;;  %v2015_v24 = vld [vmem:[#allocation3 + $0x60] sm:$0xff] }
 0x20f   :  { %1908 = vst.msk [vmem:[#allocation3 + $0x70] sm:$0xff] %vm1900_vm5, %v1813_v5  ;;  %v1815_v40 = vpop.permute.xlu0 %1814  ;;  %2341 = vmatmul.mubr.bf16.gmra.mrb[24].mxu1 %v2015_v24  ;;  %894 = vrot.lane.b32.xlu1 %v5035_v7, %s4386_s29  ;;  %v2028_v24 = vld [vmem:[#allocation3 + $0xc8] sm:$0xff] }
 0x210   :  { %3882 = vmatprep.mubr.msk.bf16.mxu1 %vm1179_vm2, %v2018_v3 }
 0x211   :  { %v865_v57 = vpop.permute.xlu1 %864  ;;  %1842 = vrot.lane.b32.xlu0 %v1752_v0, %s4386_s29  ;;  %v1753_v18 = vld [vmem:[#allocation2 + $0xd0] sm:$0xff] }
 0x212   :  { %1991 = vst.msk [vmem:[#allocation3 + $0x168] sm:$0xff] %vm1179_vm2, %v1753_v18  ;;  %1312 = vst.msk [vmem:[#allocation3 + $0x1a0] sm:$0xff] %vm1179_vm2, %v1753_v18  ;;  %v1018_v53 = vmax.f32 %v4789_v26, %v865_v57 }
 0x213   :  { %v1612_v6 = vpop.permute.xlu0 %1611  ;;  %1637 = vrot.lane.b32.xlu1 %v5257_v11, %s4387_s3 }
 0x215   :  { %v1610_v10 = vpop.permute.xlu1 %1609  ;;  %1639 = vrot.lane.b32.xlu0 %v1752_v0, %s4387_s3 }
 0x216   :  { %v2017_v17 = vld [vmem:[#allocation3 + $0x70] sm:$0xff]  ;;  %1704 = vst.msk [vmem:[#allocation3 + $0x80] sm:$0xff] %vm1695_vm4, %v1610_v10 }
 0x217   :  { %1909 = vst.msk [vmem:[#allocation3 + $0x80] sm:$0xff] %vm1900_vm5, %v1815_v40  ;;  %v1409_v9 = vpop.permute.xlu0 %1408  ;;  %2349 = vmatmul.mubr.bf16.gmra.mrb[28].mxu1 %v2017_v17  ;;  %1434 = vrot.lane.b32.xlu1 %v5257_v11, %s4385_s17  ;;  %v5341_v11 = vld [vmem:[%s5953_s2] ss:$0 sm:$0xff] }
 0x218   :  { %1501 = vst.msk [vmem:[#allocation3 + $0xa0] sm:$0xff] %vm1490_vm3, %v1409_v9  ;;  %3883 = vmatprep.mubr.msk.bf16.mxu1 %vm1179_vm2, %v2020_v44  ;;  %v1093_v26 = vadd.f32 %v5341_v11, %v1018_v53  ;;  %v2030_v44 = vld [vmem:[#allocation3 + $0xd8] sm:$0xff] }
 0x219   :  { %v1407_v4 = vpop.permute.xlu1 %1406  ;;  %1436 = vrot.lane.b32.xlu0 %v1752_v0, %s4385_s17 }
 0x21a   :  { %1500 = vst.msk [vmem:[#allocation3 + $0x90] sm:$0xff] %vm1490_vm3, %v1407_v4  ;;  %v1161_v21 = vmax.f32 %v1093_v26, 0.0 }
 0x21b   :  { %1705 = vst.msk [vmem:[#allocation3 + $0x90] sm:$0xff] %vm1695_vm4, %v1612_v6  ;;  %v867_v50 = vpop.permute.xlu0 %866  ;;  %1844 = vrot.lane.b32.xlu1 %v1753_v18, %s4386_s29 }
 0x21c   :  { %v1019_v46 = vmax.f32 %v5986_v61, %v867_v50 }
 0x21d   :  { %v1817_v12 = vpop.permute.xlu1 %1816 }
 0x21e   :  { %v1094_v19 = vadd.f32 %v5341_v11, %v1019_v46  ;;  %1910 = vst.msk [vmem:[#allocation3 + $0x90] sm:$0xff] %vm1900_vm5, %v1817_v12  ;;  %v2019_v20 = vld [vmem:[#allocation3 + $0x80] sm:$0xff] }
 0x21f   :  { %2357 = vmatmul.mubr.bf16.gmra.mrb[32].mxu1 %v2019_v20  ;;  %v869_v47 = vpop.permute.xlu0 %868  ;;  %1641 = vrot.lane.b32.xlu1 %v1753_v18, %s4387_s3 }
 0x220   :  { %v1162_v29 = vmax.f32 %v1094_v19, 0.0  ;;  %v1020_v14 = vmax.f32 %v5987_v1, %v869_v47  ;;  %3884 = vmatprep.mubr.msk.bf16.mxu1 %vm1179_vm2, %v2022_v62 }
 0x221   :  { %v871_v34 = vpop.permute.xlu1 %870 }
 0x222   :  { %v1209_v13 = vpack.c.bf16 %v1162_v29, %v1161_v21  ;;  %v1095_v61 = vadd.f32 %v5341_v11, %v1020_v14  ;;  %v1021_v36 = vmax.f32 %v5988_v54, %v871_v34  ;;  %v2032_v14 = vld [vmem:[#allocation3 + $0xe8] sm:$0xff] }
 0x223   :  { %v1819_v15 = vpop.permute.xlu0 %1818  ;;  %1438 = vrot.lane.b32.xlu1 %v1753_v18, %s4385_s17 }
 0x224   :  { %1243 = vst.msk [vmem:[#allocation2 + $0xd8] sm:$0xff] %vm1179_vm2, %v1209_v13  ;;  %v1096_v41 = vadd.f32 %v5341_v11, %v1021_v36  ;;  %v1163_v63 = vmax.f32 %v1095_v61, 0.0 }
 0x225   :  { %v1614_v35 = vpop.permute.xlu1 %1613  ;;  %v2021_v23 = vld [vmem:[#allocation3 + $0x90] sm:$0xff] }
 0x226   :  { %v1164_v38 = vmax.f32 %v1096_v41, 0.0  ;;  %1706 = vst.msk [vmem:[#allocation3 + $0xa0] sm:$0xff] %vm1695_vm4, %v1614_v35  ;;  %v2034_v35 = vld [vmem:[#allocation3 + $0xf8] sm:$0xff] }
 0x227   :  { %1911 = vst.msk [vmem:[#allocation3 + $0xa0] sm:$0xff] %vm1900_vm5, %v1819_v15  ;;  %2365 = vmatmul.mubr.bf16.gmra.mrb[36].mxu1 %v2021_v23  ;;  %v1616_v1 = vpop.permute.xlu0 %1615 }
 0x228   :  { %v1210_v16 = vpack.c.bf16 %v1164_v38, %v1163_v63  ;;  %3885 = vmatprep.mubr.msk.bf16.mxu1 %vm1179_vm2, %v2024_v8 }
 0x229   :  { %v1411_v54 = vpop.permute.xlu1 %1410 }
 0x22a   :  { %1244 = vst.msk [vmem:[#allocation2 + $0xe0] sm:$0xff] %vm1179_vm2, %v1210_v16 }
 0x22b   :  { %1502 = vst.msk [vmem:[#allocation3 + $0xb0] sm:$0xff] %vm1490_vm3, %v1411_v54  ;;  %v1413_v22 = vpop.permute.xlu0 %1412  ;;  %v1754_v28 = vld [vmem:[#allocation2 + $0xd8] sm:$0xff] }
 0x22c   :  { %1707 = vst.msk [vmem:[#allocation3 + $0xb0] sm:$0xff] %vm1695_vm4, %v1616_v1  ;;  %1846 = vrot.lane.b32.xlu0 %v1754_v28, %s4386_s29  ;;  %v2036_v54 = vld [vmem:[#allocation3 + $0x108] sm:$0xff] }
 0x22d   :  { %1503 = vst.msk [vmem:[#allocation3 + $0xc0] sm:$0xff] %vm1490_vm3, %v1413_v22  ;;  %v1821_v58 = vpop.permute.xlu1 %1820 }
 0x22e   :  { %1992 = vst.msk [vmem:[#allocation3 + $0x178] sm:$0xff] %vm1179_vm2, %v1754_v28  ;;  %1313 = vst.msk [vmem:[#allocation3 + $0x1b0] sm:$0xff] %vm1179_vm2, %v1754_v28  ;;  %v2023_v51 = vld [vmem:[#allocation3 + $0xa0] sm:$0xff] }
 0x22f   :  { %1912 = vst.msk [vmem:[#allocation3 + $0xb0] sm:$0xff] %vm1900_vm5, %v1821_v58  ;;  %v1823_v42 = vpop.permute.xlu0 %1822  ;;  %2373 = vmatmul.mubr.bf16.gmra.mrb[40].mxu1 %v2023_v51 }
 0x230   :  { %3886 = vmatprep.mubr.msk.bf16.mxu1 %vm1179_vm2, %v2026_v30  ;;  %1643 = vrot.lane.b32.xlu0 %v1754_v28, %s4387_s3 }
 0x231   :  { %v873_v27 = vpop.permute.xlu1 %872  ;;  %v1755_v43 = vld [vmem:[#allocation2 + $0xe0] sm:$0xff] }
 0x232   :  { %1848 = vrot.lane.b32.xlu1 %v1755_v43, %s4386_s29  ;;  %1993 = vst.msk [vmem:[#allocation3 + $0x188] sm:$0xff] %vm1179_vm2, %v1755_v43  ;;  %1314 = vst.msk [vmem:[#allocation3 + $0x1c0] sm:$0xff] %vm1179_vm2, %v1755_v43  ;;  %v1022_v40 = vmax.f32 %v5989_v25, %v873_v27 }
 0x233   :  { %v1620_v32 = vpop.permute.xlu0 %1619 }
 0x234   :  { %1440 = vrot.lane.b32.xlu0 %v1754_v28, %s4385_s17  ;;  %v1097_v18 = vadd.f32 %v5341_v11, %v1022_v40  ;;  %v5414_v28 = vld [vmem:[#allocation2 + $0x120] sm:$0xff] }
 0x235   :  { %v1618_v2 = vpop.permute.xlu1 %1617  ;;  %2001 = vst.msk [vmem:[#allocation3 + $0x208] sm:$0xff] %vm1179_vm2, %v5414_v28 }
 0x236   :  { %v2025_v0 = vld [vmem:[#allocation3 + $0xb0] sm:$0xff]  ;;  %1708 = vst.msk [vmem:[#allocation3 + $0xc0] sm:$0xff] %vm1695_vm4, %v1618_v2  ;;  %1645 = vrot.lane.b32.xlu1 %v1755_v43, %s4387_s3  ;;  %v1165_v53 = vmax.f32 %v1097_v18, 0.0  ;;  %v2038_v2 = vld [vmem:[#allocation3 + $0x118] sm:$0xff] }
 0x237   :  { %1913 = vst.msk [vmem:[#allocation3 + $0xc0] sm:$0xff] %vm1900_vm5, %v1823_v42  ;;  %v1417_v5 = vpop.permute.xlu0 %1416  ;;  %2381 = vmatmul.mubr.bf16.gmra.mrb[44].mxu1 %v2025_v0 }
 0x238   :  { %1505 = vst.msk [vmem:[#allocation3 + $0xe0] sm:$0xff] %vm1490_vm3, %v1417_v5  ;;  %3887 = vmatprep.mubr.msk.bf16.mxu1 %vm1179_vm2, %v2028_v24 }
 0x239   :  { %v1415_v3 = vpop.permute.xlu1 %1414 }
 0x23a   :  { %1504 = vst.msk [vmem:[#allocation3 + $0xd0] sm:$0xff] %vm1490_vm3, %v1415_v3  ;;  %1442 = vrot.lane.b32.xlu1 %v1755_v43, %s4385_s17 }
 0x23b   :  { %1709 = vst.msk [vmem:[#allocation3 + $0xd0] sm:$0xff] %vm1695_vm4, %v1620_v32  ;;  %v875_v57 = vpop.permute.xlu0 %874 }
 0x23c   :  { %v1023_v6 = vmax.f32 %v5990_v33, %v875_v57 }
 0x23d   :  { %v1825_v10 = vpop.permute.xlu1 %1824 }
 0x23e   :  { %v1098_v17 = vadd.f32 %v5341_v11, %v1023_v6  ;;  %1914 = vst.msk [vmem:[#allocation3 + $0xd0] sm:$0xff] %vm1900_vm5, %v1825_v10  ;;  %v2027_v25 = vld [vmem:[#allocation3 + $0xc0] sm:$0xff] }
 0x23f   :  { %2389 = vmatmul.mubr.bf16.gmra.mrb[48].mxu1 %v2027_v25  ;;  %v877_v9 = vpop.permute.xlu0 %876 }
 0x240   :  { %v1166_v4 = vmax.f32 %v1098_v17, 0.0  ;;  %v1024_v50 = vmax.f32 %v5991_v52, %v877_v9  ;;  %3888 = vmatprep.mubr.msk.bf16.mxu1 %vm1179_vm2, %v2030_v44  ;;  %v2040_v44 = vld [vmem:[#allocation3 + $0x128] sm:$0xff] }
 0x241   :  { %v879_v26 = vpop.permute.xlu1 %878 }
 0x242   :  { %v1211_v46 = vpack.c.bf16 %v1166_v4, %v1165_v53  ;;  %v1099_v12 = vadd.f32 %v5341_v11, %v1024_v50  ;;  %v1025_v33 = vmax.f32 %v5992_v56, %v879_v26 }
 0x243   :  { %v1827_v19 = vpop.permute.xlu0 %1826 }
 0x244   :  { %1245 = vst.msk [vmem:[#allocation2 + $0xe8] sm:$0xff] %vm1179_vm2, %v1211_v46  ;;  %v1100_v20 = vadd.f32 %v5341_v11, %v1025_v33  ;;  %v1167_v21 = vmax.f32 %v1099_v12, 0.0  ;;  %v2042_v33 = vld [vmem:[#allocation3 + $0x138] sm:$0xff] }
 0x245   :  { %v1622_v47 = vpop.permute.xlu1 %1621  ;;  %v2029_v62 = vld [vmem:[#allocation3 + $0xd0] sm:$0xff] }
 0x246   :  { %v1168_v29 = vmax.f32 %v1100_v20, 0.0  ;;  %1710 = vst.msk [vmem:[#allocation3 + $0xe0] sm:$0xff] %vm1695_vm4, %v1622_v47 }
 0x247   :  { %1915 = vst.msk [vmem:[#allocation3 + $0xe0] sm:$0xff] %vm1900_vm5, %v1827_v19  ;;  %2397 = vmatmul.mubr.bf16.gmra.mrb[52].mxu1 %v2029_v62  ;;  %v1624_v52 = vpop.permute.xlu0 %1623 }
 0x248   :  { %v1212_v34 = vpack.c.bf16 %v1168_v29, %v1167_v21  ;;  %3889 = vmatprep.mubr.msk.bf16.mxu1 %vm1179_vm2, %v2032_v14 }
 0x249   :  { %v1419_v56 = vpop.permute.xlu1 %1418 }
 0x24a   :  { %1246 = vst.msk [vmem:[#allocation2 + $0xf0] sm:$0xff] %vm1179_vm2, %v1212_v34 }
 0x24b   :  { %1506 = vst.msk [vmem:[#allocation3 + $0xf0] sm:$0xff] %vm1490_vm3, %v1419_v56  ;;  %v1421_v13 = vpop.permute.xlu0 %1420  ;;  %v1756_v61 = vld [vmem:[#allocation2 + $0xe8] sm:$0xff]  ;;  %v2044_v56 = vld [vmem:[#allocation3 + $0x148] sm:$0xff] }
 0x24c   :  { %1711 = vst.msk [vmem:[#allocation3 + $0xf0] sm:$0xff] %vm1695_vm4, %v1624_v52  ;;  %1850 = vrot.lane.b32.xlu0 %v1756_v61, %s4386_s29 }
 0x24d   :  { %1507 = vst.msk [vmem:[#allocation3 + $0x100] sm:$0xff] %vm1490_vm3, %v1421_v13  ;;  %v1829_v36 = vpop.permute.xlu1 %1828 }
 0x24e   :  { %1994 = vst.msk [vmem:[#allocation3 + $0x198] sm:$0xff] %vm1179_vm2, %v1756_v61  ;;  %1315 = vst.msk [vmem:[#allocation3 + $0x1d0] sm:$0xff] %vm1179_vm2, %v1756_v61  ;;  %v2031_v15 = vld [vmem:[#allocation3 + $0xe0] sm:$0xff] }
 0x24f   :  { %1916 = vst.msk [vmem:[#allocation3 + $0xf0] sm:$0xff] %vm1900_vm5, %v1829_v36  ;;  %v1831_v41 = vpop.permute.xlu0 %1830  ;;  %2405 = vmatmul.mubr.bf16.gmra.mrb[56].mxu1 %v2031_v15 }
 0x250   :  { %3890 = vmatprep.mubr.msk.bf16.mxu1 %vm1179_vm2, %v2034_v35  ;;  %1647 = vrot.lane.b32.xlu0 %v1756_v61, %s4387_s3 }
 0x251   :  { %v881_v23 = vpop.permute.xlu1 %880  ;;  %v1757_v63 = vld [vmem:[#allocation2 + $0xf0] sm:$0xff] }
 0x252   :  { %1852 = vrot.lane.b32.xlu1 %v1757_v63, %s4386_s29  ;;  %1995 = vst.msk [vmem:[#allocation3 + $0x1a8] sm:$0xff] %vm1179_vm2, %v1757_v63  ;;  %1316 = vst.msk [vmem:[#allocation3 + $0x1e0] sm:$0xff] %vm1179_vm2, %v1757_v63  ;;  %v1026_v22 = vmax.f32 %v5993_v37, %v881_v23 }
 0x253   :  { %v1628_v38 = vpop.permute.xlu0 %1627 }
 0x254   :  { %1444 = vrot.lane.b32.xlu0 %v1756_v61, %s4385_s17  ;;  %v1101_v37 = vadd.f32 %v5341_v11, %v1026_v22 }
 0x255   :  { %v1626_v1 = vpop.permute.xlu1 %1625 }
 0x256   :  { %v2033_v8 = vld [vmem:[#allocation3 + $0xf0] sm:$0xff]  ;;  %1712 = vst.msk [vmem:[#allocation3 + $0x100] sm:$0xff] %vm1695_vm4, %v1626_v1  ;;  %1649 = vrot.lane.b32.xlu1 %v1757_v63, %s4387_s3  ;;  %v1169_v0 = vmax.f32 %v1101_v37, 0.0 }
 0x257   :  { %1917 = vst.msk [vmem:[#allocation3 + $0x100] sm:$0xff] %vm1900_vm5, %v1831_v41  ;;  %v1425_v16 = vpop.permute.xlu0 %1424  ;;  %2413 = vmatmul.mubr.bf16.gmra.mrb[60].mxu1 %v2033_v8 }
 0x258   :  { %1509 = vst.msk [vmem:[#allocation3 + $0x120] sm:$0xff] %vm1490_vm3, %v1425_v16  ;;  %3891 = vmatprep.mubr.msk.bf16.mxu1 %vm1179_vm2, %v2036_v54 }
 0x259   :  { %v1423_v58 = vpop.permute.xlu1 %1422 }
 0x25a   :  { %1508 = vst.msk [vmem:[#allocation3 + $0x110] sm:$0xff] %vm1490_vm3, %v1423_v58  ;;  %898 = vrot.lane.b32.xlu1 %v5024_v49, %s4386_s29 }
 0x25b   :  { %1713 = vst.msk [vmem:[#allocation3 + $0x110] sm:$0xff] %vm1695_vm4, %v1628_v38  ;;  %v883_v51 = vpop.permute.xlu0 %882  ;;  %v2046_v38 = vld [vmem:[#allocation3 + $0x158] sm:$0xff] }
 0x25c   :  { %v1027_v42 = vmax.f32 %v5994_v59, %v883_v51 }
 0x25d   :  { %v1833_v30 = vpop.permute.xlu1 %1832 }
 0x25e   :  { %v1102_v27 = vadd.f32 %v5341_v11, %v1027_v42  ;;  %1918 = vst.msk [vmem:[#allocation3 + $0x110] sm:$0xff] %vm1900_vm5, %v1833_v30  ;;  %1446 = vrot.lane.b32.xlu1 %v1757_v63, %s4385_s17  ;;  %v2035_v43 = vld [vmem:[#allocation3 + $0x100] sm:$0xff]  ;;  %v2048_v30 = vld [vmem:[#allocation3 + $0x168] sm:$0xff] }
 0x25f   :  { %2421 = vmatmul.mubr.bf16.gmra.mrb[64].mxu1 %v2035_v43  ;;  %v885_v32 = vpop.permute.xlu0 %884 }
 0x260   :  { %v1170_v5 = vmax.f32 %v1102_v27, 0.0  ;;  %v1028_v24 = vmax.f32 %v4903_v45, %v885_v32  ;;  %3892 = vmatprep.mubr.msk.bf16.mxu1 %vm1179_vm2, %v2038_v2 }
 0x261   :  { %v887_v40 = vpop.permute.xlu1 %886 }
 0x262   :  { %v1213_v3 = vpack.c.bf16 %v1170_v5, %v1169_v0  ;;  %v1103_v59 = vadd.f32 %v5341_v11, %v1028_v24  ;;  %v1029_v57 = vmax.f32 %v4913_v48, %v887_v40  ;;  %v2050_v5 = vld [vmem:[#allocation3 + $0x178] sm:$0xff] }
 0x263   :  { %v1835_v18 = vpop.permute.xlu0 %1834 }
 0x264   :  { %1247 = vst.msk [vmem:[#allocation2 + $0xf8] sm:$0xff] %vm1179_vm2, %v1213_v3  ;;  %v1104_v6 = vadd.f32 %v5341_v11, %v1029_v57  ;;  %v1171_v25 = vmax.f32 %v1103_v59, 0.0  ;;  %v2052_v57 = vld [vmem:[#allocation3 + $0x188] sm:$0xff] }
 0x265   :  { %v1630_v10 = vpop.permute.xlu1 %1629  ;;  %v2037_v17 = vld [vmem:[#allocation3 + $0x110] sm:$0xff] }
 0x266   :  { %v1172_v9 = vmax.f32 %v1104_v6, 0.0  ;;  %1714 = vst.msk [vmem:[#allocation3 + $0x120] sm:$0xff] %vm1695_vm4, %v1630_v10 }
 0x267   :  { %1919 = vst.msk [vmem:[#allocation3 + $0x120] sm:$0xff] %vm1900_vm5, %v1835_v18  ;;  %2429 = vmatmul.mubr.bf16.gmra.mrb[68].mxu1 %v2037_v17  ;;  %v1632_v45 = vpop.permute.xlu0 %1631 }
 0x268   :  { %v1214_v53 = vpack.c.bf16 %v1172_v9, %v1171_v25  ;;  %3893 = vmatprep.mubr.msk.bf16.mxu1 %vm1179_vm2, %v2040_v44  ;;  %v2054_v9 = vld [vmem:[#allocation3 + $0x198] sm:$0xff] }
 0x269   :  { %v1427_v48 = vpop.permute.xlu1 %1426 }
 0x26a   :  { %1248 = vst.msk [vmem:[#allocation2 + $0x100] sm:$0xff] %vm1179_vm2, %v1214_v53  ;;  %v2056_v53 = vld [vmem:[#allocation3 + $0x1a8] sm:$0xff] }
 0x26b   :  { %1510 = vst.msk [vmem:[#allocation3 + $0x130] sm:$0xff] %vm1490_vm3, %v1427_v48  ;;  %v1429_v4 = vpop.permute.xlu0 %1428  ;;  %v1758_v50 = vld [vmem:[#allocation2 + $0xf8] sm:$0xff]  ;;  %v5504_v48 = vld [vmem:[%s5954_s4] ss:$0 sm:$0xff] }
 0x26c   :  { %1715 = vst.msk [vmem:[#allocation3 + $0x130] sm:$0xff] %vm1695_vm4, %v1632_v45  ;;  %1854 = vrot.lane.b32.xlu0 %v1758_v50, %s4386_s29 }
 0x26d   :  { %1511 = vst.msk [vmem:[#allocation3 + $0x140] sm:$0xff] %vm1490_vm3, %v1429_v4  ;;  %v1837_v26 = vpop.permute.xlu1 %1836 }
 0x26e   :  { %1996 = vst.msk [vmem:[#allocation3 + $0x1b8] sm:$0xff] %vm1179_vm2, %v1758_v50  ;;  %1317 = vst.msk [vmem:[#allocation3 + $0x1f0] sm:$0xff] %vm1179_vm2, %v1758_v50  ;;  %v2039_v46 = vld [vmem:[#allocation3 + $0x120] sm:$0xff] }
 0x26f   :  { %1920 = vst.msk [vmem:[#allocation3 + $0x130] sm:$0xff] %vm1900_vm5, %v1837_v26  ;;  %v1839_v12 = vpop.permute.xlu0 %1838  ;;  %2437 = vmatmul.mubr.bf16.gmra.mrb[72].mxu1 %v2039_v46 }
 0x270   :  { %3894 = vmatprep.mubr.msk.bf16.mxu1 %vm1179_vm2, %v2042_v33  ;;  %896 = vrot.lane.b32.xlu0 %v5011_v55, %s4386_s29 }
 0x271   :  { %v889_v19 = vpop.permute.xlu1 %888  ;;  %v1759_v20 = vld [vmem:[#allocation2 + $0x100] sm:$0xff] }
 0x272   :  { %v1030_v47 = vmax.f32 %v4898_v39, %v889_v19  ;;  %1856 = vrot.lane.b32.xlu1 %v1759_v20, %s4386_s29  ;;  %1997 = vst.msk [vmem:[#allocation3 + $0x1c8] sm:$0xff] %vm1179_vm2, %v1759_v20  ;;  %1318 = vst.msk [vmem:[#allocation3 + $0x200] sm:$0xff] %vm1179_vm2, %v1759_v20 }
 0x273   :  { %v891_v62 = vpop.permute.xlu0 %890 }
 0x274   :  { %v1105_v21 = vadd.f32 %v5341_v11, %v1030_v47  ;;  %v1031_v29 = vmax.f32 %v4906_v31, %v891_v62  ;;  %1651 = vrot.lane.b32.xlu0 %v1758_v50, %s4387_s3 }
 0x275   :  { %v1634_v52 = vpop.permute.xlu1 %1633 }
 0x276   :  { %v2041_v14 = vld [vmem:[#allocation3 + $0x130] sm:$0xff]  ;;  %v1106_v34 = vadd.f32 %v5341_v11, %v1031_v29  ;;  %1716 = vst.msk [vmem:[#allocation3 + $0x140] sm:$0xff] %vm1695_vm4, %v1634_v52  ;;  %1653 = vrot.lane.b32.xlu1 %v1759_v20, %s4387_s3  ;;  %v1173_v13 = vmax.f32 %v1105_v21, 0.0 }
 0x277   :  { %1921 = vst.msk [vmem:[#allocation3 + $0x140] sm:$0xff] %vm1900_vm5, %v1839_v12  ;;  %v1636_v39 = vpop.permute.xlu0 %1635  ;;  %2445 = vmatmul.mubr.bf16.gmra.mrb[76].mxu1 %v2041_v14 }
 0x278   :  { %v1174_v61 = vmax.f32 %v1106_v34, 0.0  ;;  %3895 = vmatprep.mubr.msk.bf16.mxu1 %vm1179_vm2, %v2044_v56  ;;  %1448 = vrot.lane.b32.xlu0 %v1758_v50, %s4385_s17 }
 0x279   :  { %v1431_v31 = vpop.permute.xlu1 %1430 }
 0x27a   :  { %v1215_v36 = vpack.c.bf16 %v1174_v61, %v1173_v13  ;;  %1512 = vst.msk [vmem:[#allocation3 + $0x150] sm:$0xff] %vm1490_vm3, %v1431_v31  ;;  %1450 = vrot.lane.b32.xlu1 %v1759_v20, %s4385_s17 }
 0x27b   :  { %1717 = vst.msk [vmem:[#allocation3 + $0x150] sm:$0xff] %vm1695_vm4, %v1636_v39  ;;  %v893_v15 = vpop.permute.xlu0 %892 }
 0x27c   :  { %1249 = vst.msk [vmem:[#allocation2 + $0x108] sm:$0xff] %vm1179_vm2, %v1215_v36  ;;  %v1032_v35 = vmax.f32 %v5013_v60, %v893_v15 }
 0x27d   :  { %v1841_v41 = vpop.permute.xlu1 %1840 }
 0x27e   :  { %1922 = vst.msk [vmem:[#allocation3 + $0x150] sm:$0xff] %vm1900_vm5, %v1841_v41  ;;  %v2043_v23 = vld [vmem:[#allocation3 + $0x140] sm:$0xff]  ;;  %v1107_v8 = vadd.f32 %v5341_v11, %v1032_v35 }
 0x27f   :  { %2453 = vmatmul.mubr.bf16.gmra.mrb[80].mxu1 %v2043_v23  ;;  %v1433_v63 = vpop.permute.xlu0 %1432 }
 0x280   :  { %1513 = vst.msk [vmem:[#allocation3 + $0x160] sm:$0xff] %vm1490_vm3, %v1433_v63  ;;  %3896 = vmatprep.mubr.msk.bf16.mxu1 %vm1179_vm2, %v2046_v38  ;;  %v1175_v37 = vmax.f32 %v1107_v8, 0.0 }
 0x281   :  { %v895_v1 = vpop.permute.xlu1 %894 }
 0x282   :  { %v1033_v16 = vmax.f32 %v5035_v7, %v895_v1 }
 0x283   :  { %v1843_v54 = vpop.permute.xlu0 %1842  ;;  %v1760_v22 = vld [vmem:[#allocation2 + $0x108] sm:$0xff] }
 0x284   :  { %v1108_v58 = vadd.f32 %v5341_v11, %v1033_v16  ;;  %1858 = vrot.lane.b32.xlu0 %v1760_v22, %s4386_s29  ;;  %1998 = vst.msk [vmem:[#allocation3 + $0x1d8] sm:$0xff] %vm1179_vm2, %v1760_v22  ;;  %1319 = vst.msk [vmem:[#allocation3 + $0x210] sm:$0xff] %vm1179_vm2, %v1760_v22 }
 0x285   :  { %v1638_v60 = vpop.permute.xlu1 %1637  ;;  %v2045_v51 = vld [vmem:[#allocation3 + $0x150] sm:$0xff] }
 0x286   :  { %v1176_v42 = vmax.f32 %v1108_v58, 0.0  ;;  %1718 = vst.msk [vmem:[#allocation3 + $0x160] sm:$0xff] %vm1695_vm4, %v1638_v60 }
 0x287   :  { %1923 = vst.msk [vmem:[#allocation3 + $0x160] sm:$0xff] %vm1900_vm5, %v1843_v54  ;;  %2461 = vmatmul.mubr.bf16.gmra.mrb[84].mxu1 %v2045_v51  ;;  %v1640_v7 = vpop.permute.xlu0 %1639 }
 0x288   :  { %v1216_v27 = vpack.c.bf16 %v1176_v42, %v1175_v37  ;;  %3897 = vmatprep.mubr.msk.bf16.mxu1 %vm1179_vm2, %v2048_v30  ;;  %1655 = vrot.lane.b32.xlu0 %v1760_v22, %s4387_s3 }
 0x289   :  { %v1435_v43 = vpop.permute.xlu1 %1434 }
 0x28a   :  { %1250 = vst.msk [vmem:[#allocation2 + $0x110] sm:$0xff] %vm1179_vm2, %v1216_v27 }
 0x28b   :  { %1514 = vst.msk [vmem:[#allocation3 + $0x170] sm:$0xff] %vm1490_vm3, %v1435_v43  ;;  %v1437_v32 = vpop.permute.xlu0 %1436 }
 0x28c   :  { %1719 = vst.msk [vmem:[#allocation3 + $0x170] sm:$0xff] %vm1695_vm4, %v1640_v7  ;;  %1452 = vrot.lane.b32.xlu0 %v1760_v22, %s4385_s17  ;;  %v2058_v22 = vld [vmem:[#allocation3 + $0x1b8] sm:$0xff] }
 0x28d   :  { %1515 = vst.msk [vmem:[#allocation3 + $0x180] sm:$0xff] %vm1490_vm3, %v1437_v32  ;;  %v1845_v2 = vpop.permute.xlu1 %1844 }
 0x28e   :  { %1924 = vst.msk [vmem:[#allocation3 + $0x170] sm:$0xff] %vm1900_vm5, %v1845_v2  ;;  %v2047_v0 = vld [vmem:[#allocation3 + $0x160] sm:$0xff] }
 0x28f   :  { %2469 = vmatmul.mubr.bf16.gmra.mrb[88].mxu1 %v2047_v0 }
 0x290   :  { %3898 = vmatprep.mubr.msk.bf16.mxu1 %vm1179_vm2, %v2050_v5  ;;  %v2060_v5 = vld [vmem:[#allocation3 + $0x1c8] sm:$0xff] }
 0x291   :  { %v1642_v24 = vpop.permute.xlu1 %1641  ;;  %v1761_v40 = vld [vmem:[#allocation2 + $0x110] sm:$0xff] }
 0x292   :  { %1720 = vst.msk [vmem:[#allocation3 + $0x180] sm:$0xff] %vm1695_vm4, %v1642_v24  ;;  %1860 = vrot.lane.b32.xlu1 %v1761_v40, %s4386_s29 }
 0x293   :  { %1999 = vst.msk [vmem:[#allocation3 + $0x1e8] sm:$0xff] %vm1179_vm2, %v1761_v40 }
 0x295   :  { %v1439_v3 = vpop.permute.xlu1 %1438  ;;  %v2049_v59 = vld [vmem:[#allocation3 + $0x170] sm:$0xff] }
 0x296   :  { %1516 = vst.msk [vmem:[#allocation3 + $0x190] sm:$0xff] %vm1490_vm3, %v1439_v3  ;;  %1657 = vrot.lane.b32.xlu1 %v1761_v40, %s4387_s3 }
 0x297   :  { %2477 = vmatmul.mubr.bf16.gmra.mrb[92].mxu1 %v2049_v59  ;;  %v4303_v59 = vld [vmem:[%s5955_s5] sm:$0xff]  }
 0x298   :  { %3899 = vmatprep.mubr.msk.bf16.mxu1 %vm1179_vm2, %v2052_v57 }
 0x29a   :  { %1454 = vrot.lane.b32.xlu1 %v1761_v40, %s4385_s17  ;;  %v4302_v40 = vld [vmem:[%s5955_s5 + $0x40] sm:$0xff]  }
 0x29b   :  { %4029 = vmatprep.subr.bf16.mxu0 %v4302_v40 }
 0x29c   :  { %4030 = vmatpush3.bf16.msra.mxu0 %v4303_v59  ;;  %v1968_v59 = vld [vmem:[#allocation2 + $0x128] sm:$0xff] }
 0x29d   :  { %2002 = vst.msk [vmem:[#allocation3 + $0x218] sm:$0xff] %vm1179_vm2, %v1968_v59 }
 0x29e   :  { %v1847_v18 = vpop.permute.xlu0 %1846  ;;  %1864 = vrot.lane.b32.xlu1 %v5414_v28, %s4386_s29 }
 0x29f   :  { %1925 = vst.msk [vmem:[#allocation3 + $0x180] sm:$0xff] %vm1900_vm5, %v1847_v18 }
 0x2a2   :  { %v1644_v6 = vpop.permute.xlu0 %1643 }
 0x2a3   :  { %1721 = vst.msk [vmem:[#allocation3 + $0x190] sm:$0xff] %vm1695_vm4, %v1644_v6 }
 0x2a4   :  { %v1849_v10 = vpop.permute.xlu1 %1848 }
 0x2a5   :  { %1926 = vst.msk [vmem:[#allocation3 + $0x190] sm:$0xff] %vm1900_vm5, %v1849_v10 }
 0x2a6   :  { %v1441_v17 = vpop.permute.xlu0 %1440  ;;  %v2051_v25 = vld [vmem:[#allocation3 + $0x180] sm:$0xff] }
 0x2a7   :  { %1517 = vst.msk [vmem:[#allocation3 + $0x1a0] sm:$0xff] %vm1490_vm3, %v1441_v17  ;;  %2485 = vmatmul.mubr.bf16.gmra.mrb[96].mxu1 %v2051_v25  ;;  %v4304_v17 = vld [vmem:[%s5955_s5 + $0x48] sm:$0xff]  }
 0x2a8   :  { %3900 = vmatprep.mubr.msk.bf16.mxu1 %vm1179_vm2, %v2054_v9  ;;  %v1646_v45 = vpop.permute.xlu1 %1645  ;;  %4031 = vmatprep.subr.bf16.mxu0 %v4304_v17  ;;  %v4317_v17 = vld [vmem:[%s5955_s5 + $0x38] sm:$0xff]  }
 0x2a9   :  { %1722 = vst.msk [vmem:[#allocation3 + $0x1a0] sm:$0xff] %vm1695_vm4, %v1646_v45  ;;  %v4305_v45 = vld [vmem:[%s5955_s5 + $0x8] sm:$0xff]  }
 0x2aa   :  { %4032 = vmatpush3.bf16.msra.mxu0 %v4305_v45 }
 0x2ac   :  { %v1443_v28 = vpop.permute.xlu1 %1442  ;;  %v2053_v44 = vld [vmem:[#allocation3 + $0x190] sm:$0xff] }
 0x2ad   :  { %1518 = vst.msk [vmem:[#allocation3 + $0x1b0] sm:$0xff] %vm1490_vm3, %v1443_v28 }
 0x2af   :  { %2493 = vmatmul.mubr.bf16.gmra.mrb[100].mxu1 %v2053_v44 }
 0x2b0   :  { %3901 = vmatprep.mubr.msk.bf16.mxu1 %vm1179_vm2, %v2056_v53 }
 0x2b1   :  { %v2294_v4 = vpop.f32.mrb[0].mxu1 }
 0x2b2   :  { %v2295_v50 = vadd.f32 %v5504_v48, %v2294_v4  ;;  %v2296_v26 = vpop.f32.mrb[1].mxu1  ;;  %v4306_v4 = vld [vmem:[%s5955_s5 + $0x50] sm:$0xff]  }
 0x2b3   :  { %v2297_v46 = vpop.f32.mrb[2].mxu1  ;;  %v4307_v26 = vld [vmem:[%s5955_s5 + $0x10] sm:$0xff]   ;;  %4033 = vmatprep.subr.bf16.mxu0 %v4306_v4 }
 0x2b4   :  { %v2298_v12 = vadd.f32 %v5504_v48, %v2297_v46  ;;  %v2299_v33 = vpop.f32.mrb[3].mxu1  ;;  %v2565_v19 = vmax.f32 %v2295_v50, 0.0  ;;  %4034 = vmatpush3.bf16.msra.mxu0 %v4307_v26 }
 0x2b6   :  { %v2566_v20 = vmax.f32 %v2298_v12, 0.0 }
 0x2b8   :  { %v2633_v47 = vpack.c.bf16 %v2566_v20, %v2565_v19 }
 0x2b9   :  { %v2302_v62 = vpop.f32.mrb[4].mxu1 }
 0x2ba   :  { %2668 = vst.msk [vmem:[#allocation4] sm:$0xff] %vm2667_vm6, %v2633_v47  ;;  %v2303_v21 = vadd.f32 %v5504_v48, %v2302_v62  ;;  %v2304_v29 = vpop.f32.mrb[5].mxu1  ;;  %v4308_v62 = vld [vmem:[%s5955_s5 + $0x58] sm:$0xff]  }
 0x2bb   :  { %v2305_v52 = vpop.f32.mrb[6].mxu1  ;;  %4035 = vmatprep.subr.bf16.mxu0 %v4308_v62 }
 0x2bc   :  { %v2306_v14 = vadd.f32 %v5504_v48, %v2305_v52  ;;  %v2307_v34 = vpop.f32.mrb[7].mxu1  ;;  %v2567_v39 = vmax.f32 %v2303_v21, 0.0 }
 0x2be   :  { %v2568_v56 = vmax.f32 %v2306_v14, 0.0  ;;  %v1851_v13 = vpop.permute.xlu0 %1850  ;;  %v4309_v14 = vld [vmem:[%s5955_s5 + $0x18] sm:$0xff]  }
 0x2bf   :  { %1927 = vst.msk [vmem:[#allocation3 + $0x1a0] sm:$0xff] %vm1900_vm5, %v1851_v13  ;;  %4036 = vmatpush3.bf16.msra.mxu0 %v4309_v14 }
 0x2c0   :  { %v2634_v61 = vpack.c.bf16 %v2568_v56, %v2567_v39 }
 0x2c2   :  { %2669 = vst.msk [vmem:[#allocation4 + $0x8] sm:$0xff] %vm2667_vm6, %v2634_v61  ;;  %v2310_v31 = vpop.f32.mrb[8].mxu1  ;;  %v1648_v36 = vpop.permute.xlu0 %1647 }
 0x2c3   :  { %v2311_v15 = vadd.f32 %v5504_v48, %v2310_v31  ;;  %1723 = vst.msk [vmem:[#allocation3 + $0x1b0] sm:$0xff] %vm1695_vm4, %v1648_v36  ;;  %v2312_v41 = vpop.f32.mrb[9].mxu1  ;;  %v4311_v31 = vld [vmem:[%s5955_s5 + $0x20] sm:$0xff]  }
 0x2c4   :  { %v2313_v35 = vpop.f32.mrb[10].mxu1  ;;  %v1853_v23 = vpop.permute.xlu1 %1852 }
 0x2c5   :  { %v2314_v63 = vadd.f32 %v5504_v48, %v2313_v35  ;;  %1928 = vst.msk [vmem:[#allocation3 + $0x1b0] sm:$0xff] %vm1900_vm5, %v1853_v23  ;;  %v2315_v38 = vpop.f32.mrb[11].mxu1  ;;  %v2569_v16 = vmax.f32 %v2311_v15, 0.0 }
 0x2c6   :  { %v1445_v1 = vpop.permute.xlu0 %1444  ;;  %v2055_v8 = vld [vmem:[#allocation3 + $0x1a0] sm:$0xff] }
 0x2c7   :  { %v2570_v54 = vmax.f32 %v2314_v63, 0.0  ;;  %1519 = vst.msk [vmem:[#allocation3 + $0x1c0] sm:$0xff] %vm1490_vm3, %v1445_v1  ;;  %2501 = vmatmul.mubr.bf16.gmra.mrb[104].mxu1 %v2055_v8  ;;  %v4312_v1 = vld [vmem:[%s5955_s5 + $0x68] sm:$0xff]  }
 0x2c8   :  { %3902 = vmatprep.mubr.msk.bf16.mxu1 %vm1179_vm2, %v2058_v22  ;;  %v1650_v58 = vpop.permute.xlu1 %1649 }
 0x2c9   :  { %v2635_v60 = vpack.c.bf16 %v2570_v54, %v2569_v16  ;;  %1724 = vst.msk [vmem:[#allocation3 + $0x1c0] sm:$0xff] %vm1695_vm4, %v1650_v58  ;;  %v2062_v58 = vld [vmem:[#allocation3 + $0x1d8] sm:$0xff] }
 0x2ca   :  { %v2318_v51 = vpop.f32.mrb[12].mxu1 }
 0x2cb   :  { %2670 = vst.msk [vmem:[#allocation4 + $0x10] sm:$0xff] %vm2667_vm6, %v2635_v60  ;;  %v2319_v37 = vadd.f32 %v5504_v48, %v2318_v51  ;;  %v2320_v42 = vpop.f32.mrb[13].mxu1  ;;  %v4313_v60 = vld [vmem:[%s5955_s5 + $0x28] sm:$0xff]  }
 0x2cc   :  { %v2321_v7 = vpop.f32.mrb[14].mxu1  ;;  %v899_v30 = vpop.permute.xlu1 %898  ;;  %v2057_v32 = vld [vmem:[#allocation3 + $0x1b0] sm:$0xff] }
 0x2cd   :  { %v2322_v27 = vadd.f32 %v5504_v48, %v2321_v7  ;;  %v2323_v43 = vpop.f32.mrb[15].mxu1  ;;  %v2571_v2 = vmax.f32 %v2319_v37, 0.0  ;;  %v1035_v21 = vmax.f32 %v5024_v49, %v899_v30  ;;  %v4310_v49 = vld [vmem:[%s5955_s5 + $0x60] sm:$0xff]   ;;  %v4314_v30 = vld [vmem:[%s5955_s5 + $0x70] sm:$0xff]  }
 0x2ce   :  { %4037 = vmatprep.subr.bf16.mxu0 %v4310_v49 }
 0x2cf   :  { %v2572_v0 = vmax.f32 %v2322_v27, 0.0  ;;  %2509 = vmatmul.mubr.bf16.gmra.mrb[108].mxu1 %v2057_v32  ;;  %v1110_v13 = vadd.f32 %v5341_v11, %v1035_v21  ;;  %4038 = vmatpush3.bf16.msra.mxu0 %v4311_v31  ;;  %v4315_v32 = vld [vmem:[%s5955_s5 + $0x30] sm:$0xff]  }
 0x2d0   :  { %3903 = vmatprep.mubr.msk.bf16.mxu1 %vm1179_vm2, %v2060_v5  ;;  %v1447_v24 = vpop.permute.xlu1 %1446  ;;  %4039 = vmatprep.subr.bf16.mxu0 %v4312_v1 }
 0x2d1   :  { %v2636_v3 = vpack.c.bf16 %v2572_v0, %v2571_v2  ;;  %1520 = vst.msk [vmem:[#allocation3 + $0x1d0] sm:$0xff] %vm1490_vm3, %v1447_v24  ;;  %v1178_v8 = vmax.f32 %v1110_v13, 0.0 }
 0x2d2   :  { %v2326_v57 = vpop.f32.mrb[16].mxu1  ;;  %v2705_v53 = vld [vmem:[#allocation4 + $0x10] sm:$0xff] }
 0x2d3   :  { %2671 = vst.msk [vmem:[#allocation4 + $0x18] sm:$0xff] %vm2667_vm6, %v2636_v3  ;;  %v2327_v18 = vadd.f32 %v5504_v48, %v2326_v57  ;;  %v2328_v6 = vpop.f32.mrb[17].mxu1  ;;  %4040 = vmatpush3.bf16.msra.mxu0 %v4313_v60  ;;  %v4316_v57 = vld [vmem:[%s5955_s5 + $0x78] sm:$0xff]  }
 0x2d4   :  { %v2329_v10 = vpop.f32.mrb[18].mxu1  ;;  %4041 = vmatprep.subr.bf16.mxu0 %v4314_v30 }
 0x2d5   :  { %v2330_v25 = vadd.f32 %v5504_v48, %v2329_v10  ;;  %v2331_v9 = vpop.f32.mrb[19].mxu1  ;;  %v2573_v28 = vmax.f32 %v2327_v18, 0.0 }
 0x2d7   :  { %v2574_v44 = vmax.f32 %v2330_v25, 0.0  ;;  %4042 = vmatpush3.bf16.msra.mxu0 %v4315_v32  ;;  %v2064_v25 = vld [vmem:[#allocation3 + $0x1e8] sm:$0xff] }
 0x2d8   :  { %4043 = vmatprep.subr.bf16.mxu0 %v4316_v57 }
 0x2d9   :  { %v2637_v50 = vpack.c.bf16 %v2574_v44, %v2573_v28 }
 0x2da   :  { %v2334_v46 = vpop.f32.mrb[20].mxu1  ;;  %v2706_v12 = vld [vmem:[#allocation4 + $0x18] sm:$0xff] }
 0x2db   :  { %2672 = vst.msk [vmem:[#allocation4 + $0x20] sm:$0xff] %vm2667_vm6, %v2637_v50  ;;  %v2335_v33 = vadd.f32 %v5504_v48, %v2334_v46  ;;  %v2336_v19 = vpop.f32.mrb[21].mxu1  ;;  %v2707_v20 = vmax.bf16 %v2706_v12, %v2705_v53  ;;  %4044 = vmatpush3.bf16.msra.mxu0 %v4317_v17 }
 0x2dc   :  { %v2337_v47 = vpop.f32.mrb[22].mxu1 }
 0x2dd   :  { %v2338_v29 = vadd.f32 %v5504_v48, %v2337_v47  ;;  %v2339_v52 = vpop.f32.mrb[23].mxu1  ;;  %2709 = vrot.lane.b32.xlu1 %v2707_v20, %s4387_s3  ;;  %v2575_v39 = vmax.f32 %v2335_v33, 0.0 }
 0x2de   :  { %v1855_v34 = vpop.permute.xlu0 %1854 }
 0x2df   :  { %v2576_v56 = vmax.f32 %v2338_v29, 0.0  ;;  %1929 = vst.msk [vmem:[#allocation3 + $0x1c0] sm:$0xff] %vm1900_vm5, %v1855_v34 }
 0x2e1   :  { %v2638_v61 = vpack.c.bf16 %v2576_v56, %v2575_v39 }
 0x2e2   :  { %v2342_v36 = vpop.f32.mrb[24].mxu1  ;;  %v897_v15 = vpop.permute.xlu0 %896 }
 0x2e3   :  { %2673 = vst.msk [vmem:[#allocation4 + $0x28] sm:$0xff] %vm2667_vm6, %v2638_v61  ;;  %v2343_v41 = vadd.f32 %v5504_v48, %v2342_v36  ;;  %v1034_v35 = vmax.f32 %v5011_v55, %v897_v15  ;;  %v2344_v23 = vpop.f32.mrb[25].mxu1 }
 0x2e4   :  { %v2345_v63 = vpop.f32.mrb[26].mxu1  ;;  %v1857_v38 = vpop.permute.xlu1 %1856 }
 0x2e5   :  { %v1109_v16 = vadd.f32 %v5341_v11, %v1034_v35  ;;  %v2346_v54 = vadd.f32 %v5504_v48, %v2345_v63  ;;  %v2347_v22 = vpop.f32.mrb[27].mxu1  ;;  %v2577_v55 = vmax.f32 %v2343_v41, 0.0 }
 0x2e6   :  { %v1652_v51 = vpop.permute.xlu0 %1651  ;;  %v2059_v37 = vld [vmem:[#allocation3 + $0x1c0] sm:$0xff] }
 0x2e7   :  { %v1177_v42 = vmax.f32 %v1109_v16, 0.0  ;;  %v2578_v7 = vmax.f32 %v2346_v54, 0.0  ;;  %1725 = vst.msk [vmem:[#allocation3 + $0x1d0] sm:$0xff] %vm1695_vm4, %v1652_v51  ;;  %2517 = vmatmul.mubr.bf16.gmra.mrb[112].mxu1 %v2059_v37 }
 0x2e8   :  { %1930 = vst.msk [vmem:[#allocation3 + $0x1d0] sm:$0xff] %vm1900_vm5, %v1857_v38  ;;  %3904 = vmatprep.mubr.msk.bf16.mxu1 %vm1179_vm2, %v2062_v58  ;;  %v1654_v11 = vpop.permute.xlu1 %1653 }
 0x2e9   :  { %v1217_v27 = vpack.c.bf16 %v1178_v8, %v1177_v42  ;;  %v2639_v43 = vpack.c.bf16 %v2578_v7, %v2577_v55  ;;  %v2068_v7 = vld [vmem:[#allocation3 + $0x208] sm:$0xff] }
 0x2ea   :  { %v2350_v2 = vpop.f32.mrb[28].mxu1  ;;  %v1449_v0 = vpop.permute.xlu0 %1448 }
 0x2eb   :  { %1251 = vst.msk [vmem:[#allocation2 + $0x118] sm:$0xff] %vm1179_vm2, %v1217_v27  ;;  %v2351_v5 = vadd.f32 %v5504_v48, %v2350_v2  ;;  %v2352_v24 = vpop.f32.mrb[29].mxu1 }
 0x2ec   :  { %2674 = vst.msk [vmem:[#allocation4 + $0x30] sm:$0xff] %vm2667_vm6, %v2639_v43  ;;  %v2353_v40 = vpop.f32.mrb[30].mxu1  ;;  %v1451_v3 = vpop.permute.xlu1 %1450 }
 0x2ed   :  { %1521 = vst.msk [vmem:[#allocation3 + $0x1e0] sm:$0xff] %vm1490_vm3, %v1449_v0  ;;  %v2579_v18 = vmax.f32 %v2351_v5, 0.0  ;;  %v2354_v6 = vadd.f32 %v5504_v48, %v2353_v40  ;;  %1522 = vst.msk [vmem:[#allocation3 + $0x1f0] sm:$0xff] %vm1490_vm3, %v1451_v3  ;;  %v2355_v10 = vpop.f32.mrb[31].mxu1  ;;  %v4318_v5 = vld [vmem:[%s5955_s5 + $0xc0] sm:$0xff]  }
 0x2ee   :  { %1726 = vst.msk [vmem:[#allocation3 + $0x1e0] sm:$0xff] %vm1695_vm4, %v1654_v11  ;;  %4051 = vmatprep.subr.bf16.mxu0 %v4318_v5 }
 0x2ef   :  { %v2580_v9 = vmax.f32 %v2354_v6, 0.0  ;;  %v2061_v45 = vld [vmem:[#allocation3 + $0x1d0] sm:$0xff] }
 0x2f0   :  { %2525 = vmatmul.mubr.bf16.gmra.mrb[116].mxu1 %v2061_v45 }
 0x2f1   :  { %v2640_v28 = vpack.c.bf16 %v2580_v9, %v2579_v18  ;;  %3905 = vmatprep.mubr.msk.bf16.mxu1 %vm1179_vm2, %v2064_v25 }
 0x2f2   :  { %v2358_v44 = vpop.f32.mrb[32].mxu1  ;;  %v1762_v53 = vld [vmem:[#allocation2 + $0x118] sm:$0xff] }
 0x2f3   :  { %2675 = vst.msk [vmem:[#allocation4 + $0x38] sm:$0xff] %vm2667_vm6, %v2640_v28  ;;  %v2359_v4 = vadd.f32 %v5504_v48, %v2358_v44  ;;  %v2360_v50 = vpop.f32.mrb[33].mxu1  ;;  %1862 = vrot.lane.b32.xlu0 %v1762_v53, %s4386_s29  ;;  %v2719_v29 = vld [vmem:[#allocation4 + $0x30] sm:$0xff] }
 0x2f4   :  { %2000 = vst.msk [vmem:[#allocation3 + $0x1f8] sm:$0xff] %vm1179_vm2, %v1762_v53  ;;  %v2361_v26 = vpop.f32.mrb[34].mxu1 }
 0x2f5   :  { %v2362_v46 = vadd.f32 %v5504_v48, %v2361_v26  ;;  %v2363_v12 = vpop.f32.mrb[35].mxu1  ;;  %v2581_v19 = vmax.f32 %v2359_v4, 0.0 }
 0x2f6   :  { %v1859_v33 = vpop.permute.xlu0 %1858 }
 0x2f7   :  { %v2582_v20 = vmax.f32 %v2362_v46, 0.0  ;;  %1931 = vst.msk [vmem:[#allocation3 + $0x1e0] sm:$0xff] %vm1900_vm5, %v1859_v33  ;;  %1659 = vrot.lane.b32.xlu0 %v1762_v53, %s4387_s3 }
 0x2f9   :  { %v2641_v47 = vpack.c.bf16 %v2582_v20, %v2581_v19 }
 0x2fa   :  { %v2366_v62 = vpop.f32.mrb[36].mxu1  ;;  %v1656_v21 = vpop.permute.xlu0 %1655  ;;  %v2720_v52 = vld [vmem:[#allocation4 + $0x38] sm:$0xff] }
 0x2fb   :  { %2676 = vst.msk [vmem:[#allocation4 + $0x40] sm:$0xff] %vm2667_vm6, %v2641_v47  ;;  %v2367_v14 = vadd.f32 %v5504_v48, %v2366_v62  ;;  %v2368_v34 = vpop.f32.mrb[37].mxu1  ;;  %v2721_v39 = vmax.bf16 %v2720_v52, %v2719_v29  ;;  %v2066_v61 = vld [vmem:[#allocation3 + $0x1f8] sm:$0xff] }
 0x2fc   :  { %1727 = vst.msk [vmem:[#allocation3 + $0x1f0] sm:$0xff] %vm1695_vm4, %v1656_v21  ;;  %v2369_v56 = vpop.f32.mrb[38].mxu1 }
 0x2fd   :  { %v2370_v49 = vadd.f32 %v5504_v48, %v2369_v56  ;;  %v2371_v13 = vpop.f32.mrb[39].mxu1  ;;  %2723 = vrot.lane.b32.xlu0 %v2721_v39, %s4387_s3  ;;  %v2583_v15 = vmax.f32 %v2367_v14, 0.0 }
 0x2fe   :  { %v1453_v31 = vpop.permute.xlu0 %1452  ;;  %v2063_v36 = vld [vmem:[#allocation3 + $0x1e0] sm:$0xff] }
 0x2ff   :  { %v2584_v41 = vmax.f32 %v2370_v49, 0.0  ;;  %1523 = vst.msk [vmem:[#allocation3 + $0x200] sm:$0xff] %vm1490_vm3, %v1453_v31  ;;  %2533 = vmatmul.mubr.bf16.gmra.mrb[120].mxu1 %v2063_v36 }
 0x300   :  { %3906 = vmatprep.mubr.msk.bf16.mxu1 %vm1179_vm2, %v2066_v61 }
 0x301   :  { %v2642_v35 = vpack.c.bf16 %v2584_v41, %v2583_v15 }
 0x302   :  { %v2374_v23 = vpop.f32.mrb[40].mxu1 }
 0x303   :  { %2677 = vst.msk [vmem:[#allocation4 + $0x48] sm:$0xff] %vm2667_vm6, %v2642_v35  ;;  %v2375_v63 = vadd.f32 %v5504_v48, %v2374_v23  ;;  %v2376_v38 = vpop.f32.mrb[41].mxu1 }
 0x304   :  { %v2377_v1 = vpop.f32.mrb[42].mxu1  ;;  %v1861_v8 = vpop.permute.xlu1 %1860 }
 0x305   :  { %v2378_v16 = vadd.f32 %v5504_v48, %v2377_v1  ;;  %1932 = vst.msk [vmem:[#allocation3 + $0x1f0] sm:$0xff] %vm1900_vm5, %v1861_v8  ;;  %v2379_v54 = vpop.f32.mrb[43].mxu1  ;;  %v2585_v22 = vmax.f32 %v2375_v63, 0.0 }
 0x307   :  { %v2586_v58 = vmax.f32 %v2378_v16, 0.0 }
 0x308   :  { %v1658_v60 = vpop.permute.xlu1 %1657 }
 0x309   :  { %v2643_v55 = vpack.c.bf16 %v2586_v58, %v2585_v22  ;;  %1728 = vst.msk [vmem:[#allocation3 + $0x200] sm:$0xff] %vm1695_vm4, %v1658_v60 }
 0x30a   :  { %v2382_v51 = vpop.f32.mrb[44].mxu1 }
 0x30b   :  { %2678 = vst.msk [vmem:[#allocation4 + $0x50] sm:$0xff] %vm2667_vm6, %v2643_v55  ;;  %v2383_v37 = vadd.f32 %v5504_v48, %v2382_v51  ;;  %v2384_v42 = vpop.f32.mrb[45].mxu1 }
 0x30c   :  { %v2385_v11 = vpop.f32.mrb[46].mxu1  ;;  %v1455_v30 = vpop.permute.xlu1 %1454  ;;  %v2065_v27 = vld [vmem:[#allocation3 + $0x1f0] sm:$0xff] }
 0x30d   :  { %v2386_v43 = vadd.f32 %v5504_v48, %v2385_v11  ;;  %1524 = vst.msk [vmem:[#allocation3 + $0x210] sm:$0xff] %vm1490_vm3, %v1455_v30  ;;  %v2387_v32 = vpop.f32.mrb[47].mxu1  ;;  %2541 = vmatmul.mubr.bf16.gmra.mrb[124].mxu1 %v2065_v27  ;;  %v2587_v2 = vmax.f32 %v2383_v37, 0.0 }
 0x30e   :  { %3907 = vmatprep.mubr.msk.bf16.mxu1 %vm1179_vm2, %v2068_v7 }
 0x30f   :  { %v2588_v0 = vmax.f32 %v2386_v43, 0.0 }
 0x311   :  { %v2644_v24 = vpack.c.bf16 %v2588_v0, %v2587_v2 }
 0x312   :  { %v2390_v40 = vpop.f32.mrb[48].mxu1  ;;  %v2733_v45 = vld [vmem:[#allocation4 + $0x50] sm:$0xff] }
 0x313   :  { %2679 = vst.msk [vmem:[#allocation4 + $0x58] sm:$0xff] %vm2667_vm6, %v2644_v24  ;;  %v2391_v3 = vadd.f32 %v5504_v48, %v2390_v40  ;;  %v2392_v59 = vpop.f32.mrb[49].mxu1 }
 0x314   :  { %v2393_v57 = vpop.f32.mrb[50].mxu1 }
 0x315   :  { %v2394_v18 = vadd.f32 %v5504_v48, %v2393_v57  ;;  %v2395_v6 = vpop.f32.mrb[51].mxu1  ;;  %v2589_v10 = vmax.f32 %v2391_v3, 0.0 }
 0x317   :  { %v2590_v17 = vmax.f32 %v2394_v18, 0.0 }
 0x319   :  { %v2645_v25 = vpack.c.bf16 %v2590_v17, %v2589_v10  ;;  %v1865_v10 = vpop.permute.xlu1 %1864 }
 0x31a   :  { %v2398_v9 = vpop.f32.mrb[52].mxu1  ;;  %v2734_v28 = vld [vmem:[#allocation4 + $0x58] sm:$0xff] }
 0x31b   :  { %2680 = vst.msk [vmem:[#allocation4 + $0x60] sm:$0xff] %vm2667_vm6, %v2645_v25  ;;  %v2399_v44 = vadd.f32 %v5504_v48, %v2398_v9  ;;  %v2400_v53 = vpop.f32.mrb[53].mxu1  ;;  %v2735_v4 = vmax.bf16 %v2734_v28, %v2733_v45  ;;  %v2703_v45 = vld [vmem:[#allocation4 + $0x8] sm:$0xff] }
 0x31c   :  { %v2401_v50 = vpop.f32.mrb[54].mxu1 }
 0x31d   :  { %v2402_v26 = vadd.f32 %v5504_v48, %v2401_v50  ;;  %v2403_v46 = vpop.f32.mrb[55].mxu1  ;;  %2737 = vrot.lane.b32.xlu1 %v2735_v4, %s4387_s3  ;;  %v2591_v12 = vmax.f32 %v2399_v44, 0.0  ;;  %v2702_v4 = vld [vmem:[#allocation4] sm:$0xff] }
 0x31e   :  { %v2704_v50 = vmax.bf16 %v2703_v45, %v2702_v4  ;;  %v4322_v45 = vld [vmem:[%s5955_s5 + $0xd0] sm:$0xff]  }
 0x31f   :  { %v2592_v33 = vmax.f32 %v2402_v26, 0.0 }
 0x321   :  { %v2646_v19 = vpack.c.bf16 %v2592_v33, %v2591_v12 }
 0x322   :  { %v2406_v20 = vpop.f32.mrb[56].mxu1 }
 0x323   :  { %2681 = vst.msk [vmem:[#allocation4 + $0x68] sm:$0xff] %vm2667_vm6, %v2646_v19  ;;  %v2407_v47 = vadd.f32 %v5504_v48, %v2406_v20  ;;  %v2408_v62 = vpop.f32.mrb[57].mxu1 }
 0x324   :  { %v2409_v21 = vpop.f32.mrb[58].mxu1 }
 0x325   :  { %v2410_v29 = vadd.f32 %v5504_v48, %v2409_v21  ;;  %v2411_v52 = vpop.f32.mrb[59].mxu1  ;;  %v2593_v14 = vmax.f32 %v2407_v47, 0.0 }
 0x327   :  { %v2594_v34 = vmax.f32 %v2410_v29, 0.0 }
 0x329   :  { %v2647_v39 = vpack.c.bf16 %v2594_v34, %v2593_v14 }
 0x32a   :  { %v2414_v56 = vpop.f32.mrb[60].mxu1 }
 0x32b   :  { %2682 = vst.msk [vmem:[#allocation4 + $0x70] sm:$0xff] %vm2667_vm6, %v2647_v39  ;;  %v2415_v49 = vadd.f32 %v5504_v48, %v2414_v56  ;;  %v2416_v13 = vpop.f32.mrb[61].mxu1 }
 0x32c   :  { %v2417_v61 = vpop.f32.mrb[62].mxu1 }
 0x32d   :  { %v2418_v31 = vadd.f32 %v5504_v48, %v2417_v61  ;;  %v2419_v36 = vpop.f32.mrb[63].mxu1  ;;  %v2595_v15 = vmax.f32 %v2415_v49, 0.0 }
 0x32f   :  { %v2596_v41 = vmax.f32 %v2418_v31, 0.0 }
 0x331   :  { %v2648_v35 = vpack.c.bf16 %v2596_v41, %v2595_v15 }
 0x332   :  { %v2422_v23 = vpop.f32.mrb[64].mxu1  ;;  %v2747_v55 = vld [vmem:[#allocation4 + $0x70] sm:$0xff] }
 0x333   :  { %2683 = vst.msk [vmem:[#allocation4 + $0x78] sm:$0xff] %vm2667_vm6, %v2648_v35  ;;  %v2423_v63 = vadd.f32 %v5504_v48, %v2422_v23  ;;  %v2424_v38 = vpop.f32.mrb[65].mxu1 }
 0x334   :  { %v2425_v1 = vpop.f32.mrb[66].mxu1 }
 0x335   :  { %v2426_v8 = vadd.f32 %v5504_v48, %v2425_v1  ;;  %v2427_v16 = vpop.f32.mrb[67].mxu1  ;;  %v2597_v54 = vmax.f32 %v2423_v63, 0.0 }
 0x337   :  { %v2598_v22 = vmax.f32 %v2426_v8, 0.0 }
 0x339   :  { %v2649_v58 = vpack.c.bf16 %v2598_v22, %v2597_v54 }
 0x33a   :  { %v2430_v60 = vpop.f32.mrb[68].mxu1  ;;  %v2748_v51 = vld [vmem:[#allocation4 + $0x78] sm:$0xff] }
 0x33b   :  { %2684 = vst.msk [vmem:[#allocation4 + $0x80] sm:$0xff] %vm2667_vm6, %v2649_v58  ;;  %v2431_v37 = vadd.f32 %v5504_v48, %v2430_v60  ;;  %v2432_v42 = vpop.f32.mrb[69].mxu1  ;;  %v2749_v7 = vmax.bf16 %v2748_v51, %v2747_v55 }
 0x33c   :  { %v2433_v11 = vpop.f32.mrb[70].mxu1 }
 0x33d   :  { %v2434_v30 = vadd.f32 %v5504_v48, %v2433_v11  ;;  %v2435_v27 = vpop.f32.mrb[71].mxu1  ;;  %2751 = vrot.lane.b32.xlu0 %v2749_v7, %s4387_s3  ;;  %v2599_v43 = vmax.f32 %v2431_v37, 0.0  ;;  %v5674_v11 = vld [vmem:[%s5954_s4] ss:$0 sm:$0xff] }
 0x33e   :  { %v2717_v27 = vld [vmem:[#allocation4 + $0x28] sm:$0xff] }
 0x33f   :  { %v2600_v32 = vmax.f32 %v2434_v30, 0.0 }
 0x341   :  { %v2650_v2 = vpack.c.bf16 %v2600_v32, %v2599_v43  ;;  %v2070_v32 = vld [vmem:[#allocation3 + $0x218] sm:$0xff] }
 0x342   :  { %v2438_v0 = vpop.f32.mrb[72].mxu1 }
 0x343   :  { %2685 = vst.msk [vmem:[#allocation4 + $0x88] sm:$0xff] %vm2667_vm6, %v2650_v2  ;;  %v2439_v5 = vadd.f32 %v5504_v48, %v2438_v0  ;;  %v2440_v24 = vpop.f32.mrb[73].mxu1 }
 0x344   :  { %v2441_v40 = vpop.f32.mrb[74].mxu1  ;;  %v2716_v24 = vld [vmem:[#allocation4 + $0x20] sm:$0xff] }
 0x345   :  { %v2442_v3 = vadd.f32 %v5504_v48, %v2441_v40  ;;  %v2443_v59 = vpop.f32.mrb[75].mxu1  ;;  %v2601_v57 = vmax.f32 %v2439_v5, 0.0  ;;  %v2718_v40 = vmax.bf16 %v2717_v27, %v2716_v24 }
 0x347   :  { %v2602_v18 = vmax.f32 %v2442_v3, 0.0 }
 0x349   :  { %v2651_v6 = vpack.c.bf16 %v2602_v18, %v2601_v57  ;;  %v4319_v18 = vld [vmem:[%s5955_s5 + $0x80] sm:$0xff]  }
 0x34a   :  { %v2446_v17 = vpop.f32.mrb[76].mxu1 }
 0x34b   :  { %2686 = vst.msk [vmem:[#allocation4 + $0x90] sm:$0xff] %vm2667_vm6, %v2651_v6  ;;  %v2447_v25 = vadd.f32 %v5504_v48, %v2446_v17  ;;  %v2448_v9 = vpop.f32.mrb[77].mxu1 }
 0x34c   :  { %v2449_v28 = vpop.f32.mrb[78].mxu1  ;;  %v4321_v9 = vld [vmem:[%s5955_s5 + $0x88] sm:$0xff]  }
 0x34d   :  { %v2450_v44 = vadd.f32 %v5504_v48, %v2449_v28  ;;  %v2451_v53 = vpop.f32.mrb[79].mxu1  ;;  %v2603_v26 = vmax.f32 %v2447_v25, 0.0  ;;  %v4323_v28 = vld [vmem:[%s5955_s5 + $0x90] sm:$0xff]  }
 0x34f   :  { %v2604_v46 = vmax.f32 %v2450_v44, 0.0  ;;  %v2710_v12 = vpop.permute.xlu1 %2709  ;;  %v4324_v44 = vld [vmem:[%s5955_s5 + $0xd8] sm:$0xff]  }
 0x350   :  { %v5655_v33 = vsel %vm2667_vm6, %v2704_v50, %v2710_v12 }
 0x351   :  { %v2652_v19 = vpack.c.bf16 %v2604_v46, %v2603_v26 }
 0x352   :  { %v2454_v20 = vpop.f32.mrb[80].mxu1  ;;  %v2761_v49 = vld [vmem:[#allocation4 + $0x90] sm:$0xff] }
 0x353   :  { %2687 = vst.msk [vmem:[#allocation4 + $0x98] sm:$0xff] %vm2667_vm6, %v2652_v19  ;;  %v2455_v47 = vadd.f32 %v5504_v48, %v2454_v20  ;;  %v2456_v62 = vpop.f32.mrb[81].mxu1  ;;  %v4326_v20 = vld [vmem:[%s5955_s5 + $0xe0] sm:$0xff]  }
 0x354   :  { %v2457_v21 = vpop.f32.mrb[82].mxu1 }
 0x355   :  { %v2458_v29 = vadd.f32 %v5504_v48, %v2457_v21  ;;  %v2459_v52 = vpop.f32.mrb[83].mxu1  ;;  %v2605_v14 = vmax.f32 %v2455_v47, 0.0 }
 0x356   :  { %v4327_v52 = vld [vmem:[%s5955_s5 + $0xa0] sm:$0xff]  }
 0x357   :  { %v2606_v34 = vmax.f32 %v2458_v29, 0.0 }
 0x359   :  { %v2653_v39 = vpack.c.bf16 %v2606_v34, %v2605_v14  ;;  %v4328_v14 = vld [vmem:[%s5955_s5 + $0xe8] sm:$0xff]  }
 0x35a   :  { %v2462_v56 = vpop.f32.mrb[84].mxu1  ;;  %v2762_v13 = vld [vmem:[#allocation4 + $0x98] sm:$0xff] }
 0x35b   :  { %2688 = vst.msk [vmem:[#allocation4 + $0xa0] sm:$0xff] %vm2667_vm6, %v2653_v39  ;;  %v2463_v61 = vadd.f32 %v5504_v48, %v2462_v56  ;;  %v2464_v31 = vpop.f32.mrb[85].mxu1  ;;  %v2763_v36 = vmax.bf16 %v2762_v13, %v2761_v49  ;;  %v4329_v13 = vld [vmem:[%s5955_s5 + $0xa8] sm:$0xff]  }
 0x35c   :  { %v2465_v15 = vpop.f32.mrb[86].mxu1  ;;  %v4330_v31 = vld [vmem:[%s5955_s5 + $0xf0] sm:$0xff]  }
 0x35d   :  { %v2466_v41 = vadd.f32 %v5504_v48, %v2465_v15  ;;  %v2467_v35 = vpop.f32.mrb[87].mxu1  ;;  %2765 = vrot.lane.b32.xlu1 %v2763_v36, %s4387_s3  ;;  %v2607_v23 = vmax.f32 %v2463_v61, 0.0 }
 0x35f   :  { %v2608_v63 = vmax.f32 %v2466_v41, 0.0 }
 0x361   :  { %v2654_v38 = vpack.c.bf16 %v2608_v63, %v2607_v23  ;;  %v4331_v23 = vld [vmem:[%s5955_s5 + $0xb0] sm:$0xff]   ;;  %v4332_v63 = vld [vmem:[%s5955_s5 + $0xf8] sm:$0xff]  }
 0x362   :  { %v2470_v1 = vpop.f32.mrb[88].mxu1 }
 0x363   :  { %2689 = vst.msk [vmem:[#allocation4 + $0xa8] sm:$0xff] %vm2667_vm6, %v2654_v38  ;;  %v2471_v8 = vadd.f32 %v5504_v48, %v2470_v1  ;;  %v2472_v16 = vpop.f32.mrb[89].mxu1  ;;  %v2731_v1 = vld [vmem:[#allocation4 + $0x48] sm:$0xff] }
 0x364   :  { %v2473_v54 = vpop.f32.mrb[90].mxu1  ;;  %v4334_v16 = vld [vmem:[%s5955_s5 + $0x140] sm:$0xff]  }
 0x365   :  { %v2474_v22 = vadd.f32 %v5504_v48, %v2473_v54  ;;  %v2475_v58 = vpop.f32.mrb[91].mxu1  ;;  %v1863_v60 = vpop.permute.xlu0 %1862  ;;  %v2609_v55 = vmax.f32 %v2471_v8, 0.0  ;;  %v4333_v8 = vld [vmem:[%s5955_s5 + $0xb8] sm:$0xff]   ;;  %v2730_v54 = vld [vmem:[#allocation4 + $0x40] sm:$0xff] }
 0x366   :  { %1933 = vst.msk [vmem:[#allocation3 + $0x200] sm:$0xff] %vm1900_vm5, %v1863_v60 }
 0x367   :  { %v2610_v51 = vmax.f32 %v2474_v22, 0.0  ;;  %v2732_v22 = vmax.bf16 %v2731_v1, %v2730_v54  ;;  %v4348_v1 = vld [vmem:[%s5955_s5 + $0x178] sm:$0xff]  }
 0x368   :  { %v4349_v54 = vld [vmem:[%s5955_s5 + $0x138] sm:$0xff]  }
 0x369   :  { %v2655_v37 = vpack.c.bf16 %v2610_v51, %v2609_v55  ;;  %v1660_v42 = vpop.permute.xlu0 %1659 }
 0x36a   :  { %1729 = vst.msk [vmem:[#allocation3 + $0x210] sm:$0xff] %vm1695_vm4, %v1660_v42  ;;  %v2478_v7 = vpop.f32.mrb[92].mxu1 }
 0x36b   :  { %2690 = vst.msk [vmem:[#allocation4 + $0xb0] sm:$0xff] %vm2667_vm6, %v2655_v37  ;;  %v2479_v48 = vadd.f32 %v5674_v11, %v2478_v7  ;;  %v2480_v30 = vpop.f32.mrb[93].mxu1 }
 0x36c   :  { %1934 = vst.msk [vmem:[#allocation3 + $0x210] sm:$0xff] %vm1900_vm5, %v1865_v10  ;;  %v2481_v43 = vpop.f32.mrb[94].mxu1  ;;  %v4320_v10 = vld [vmem:[%s5955_s5 + $0xc8] sm:$0xff]  }
 0x36d   :  { %v2482_v2 = vadd.f32 %v5674_v11, %v2481_v43  ;;  %v2483_v0 = vpop.f32.mrb[95].mxu1  ;;  %v2067_v5 = vld [vmem:[#allocation3 + $0x200] sm:$0xff]  ;;  %v2611_v3 = vmax.f32 %v2479_v48, 0.0 }
 0x36e   :  { %2549 = vmatmul.mubr.bf16.gmra.mrb[128].mxu1 %v2067_v5 }
 0x36f   :  { %v2612_v59 = vmax.f32 %v2482_v2, 0.0  ;;  %v2724_v57 = vpop.permute.xlu0 %2723  ;;  %3908 = vmatprep.mubr.msk.bf16.mxu1 %vm1179_vm2, %v2070_v32 }
 0x370   :  { %v2727_v6 = vsel %vm2667_vm6, %v2718_v40, %v2724_v57 }
 0x371   :  { %v2656_v17 = vpack.c.bf16 %v2612_v59, %v2611_v3  ;;  %3413 = vmatprep.mubr.bf16.mxu0 %v2727_v6  ;;  %v2744_v6 = vld [vmem:[#allocation4 + $0x60] sm:$0xff] }
 0x372   :  { %3414 = vmatmul.mubr.bf16.vlgmr.msra.gmra.mrb[68].mxu0 %v5655_v33  ;;  %v2775_v4 = vld [vmem:[#allocation4 + $0xb0] sm:$0xff]  ;;  %v4325_v33 = vld [vmem:[%s5955_s5 + $0x98] sm:$0xff]  }
 0x373   :  { %2691 = vst.msk [vmem:[#allocation4 + $0xb8] sm:$0xff] %vm2667_vm6, %v2656_v17  ;;  %v2069_v25 = vld [vmem:[#allocation3 + $0x210] sm:$0xff]  ;;  %4052 = vmatpush3.bf16.msra.mxu0 %v4319_v18  ;;  %v2745_v18 = vld [vmem:[#allocation4 + $0x68] sm:$0xff] }
 0x374   :  { %4053 = vmatprep.subr.bf16.mxu0 %v4320_v10  ;;  %v2746_v10 = vmax.bf16 %v2745_v18, %v2744_v6 }
 0x376   :  { %2557 = vmatmul.mubr.bf16.gmra.mrb[132].mxu1 %v2069_v25  ;;  %v4335_v25 = vld [vmem:[%s5955_s5 + $0x100] sm:$0xff]  }
 0x377   :  { %4054 = vmatpush3.bf16.msra.mxu0 %v4321_v9 }
 0x378   :  { %4055 = vmatprep.subr.bf16.mxu0 %v4322_v45  ;;  %v4336_v45 = vld [vmem:[%s5955_s5 + $0x148] sm:$0xff]  }
 0x37a   :  { %v2486_v53 = vpop.f32.mrb[96].mxu1  ;;  %v2776_v50 = vld [vmem:[#allocation4 + $0xb8] sm:$0xff] }
 0x37b   :  { %v2487_v26 = vadd.f32 %v5674_v11, %v2486_v53  ;;  %v2488_v46 = vpop.f32.mrb[97].mxu1  ;;  %v2777_v12 = vmax.bf16 %v2776_v50, %v2775_v4  ;;  %4056 = vmatpush3.bf16.msra.mxu0 %v4323_v28  ;;  %v4337_v4 = vld [vmem:[%s5955_s5 + $0x108] sm:$0xff]   ;;  %v4338_v50 = vld [vmem:[%s5955_s5 + $0x150] sm:$0xff]  }
 0x37c   :  { %v2489_v19 = vpop.f32.mrb[98].mxu1  ;;  %4057 = vmatprep.subr.bf16.mxu0 %v4324_v44  ;;  %v4340_v46 = vld [vmem:[%s5955_s5 + $0x158] sm:$0xff]  }
 0x37d   :  { %v2490_v47 = vadd.f32 %v5674_v11, %v2489_v19  ;;  %v2491_v62 = vpop.f32.mrb[99].mxu1  ;;  %2779 = vrot.lane.b32.xlu0 %v2777_v12, %s4387_s3  ;;  %v2613_v21 = vmax.f32 %v2487_v26, 0.0  ;;  %v4339_v26 = vld [vmem:[%s5955_s5 + $0x110] sm:$0xff]  }
 0x37e   :  { %v4342_v62 = vld [vmem:[%s5955_s5 + $0x160] sm:$0xff]  }
 0x37f   :  { %v2614_v29 = vmax.f32 %v2490_v47, 0.0  ;;  %4058 = vmatpush3.bf16.msra.mxu0 %v4325_v33 }
 0x380   :  { %4059 = vmatprep.subr.bf16.mxu0 %v4326_v20  ;;  %v4341_v20 = vld [vmem:[%s5955_s5 + $0x118] sm:$0xff]  }
 0x381   :  { %v2657_v34 = vpack.c.bf16 %v2614_v29, %v2613_v21 }
 0x382   :  { %v2494_v39 = vpop.f32.mrb[100].mxu1 }
 0x383   :  { %2692 = vst.msk [vmem:[#allocation4 + $0xc0] sm:$0xff] %vm2667_vm6, %v2657_v34  ;;  %v2495_v56 = vadd.f32 %v5674_v11, %v2494_v39  ;;  %v2496_v49 = vpop.f32.mrb[101].mxu1  ;;  %4060 = vmatpush3.bf16.msra.mxu0 %v4327_v52  ;;  %v4343_v34 = vld [vmem:[%s5955_s5 + $0x120] sm:$0xff]   ;;  %v4344_v39 = vld [vmem:[%s5955_s5 + $0x168] sm:$0xff]  }
 0x384   :  { %v2497_v61 = vpop.f32.mrb[102].mxu1  ;;  %4061 = vmatprep.subr.bf16.mxu0 %v4328_v14 }
 0x385   :  { %v2498_v36 = vadd.f32 %v5674_v11, %v2497_v61  ;;  %v2499_v15 = vpop.f32.mrb[103].mxu1  ;;  %v2615_v41 = vmax.f32 %v2495_v56, 0.0 }
 0x387   :  { %v2616_v35 = vmax.f32 %v2498_v36, 0.0  ;;  %4062 = vmatpush3.bf16.msra.mxu0 %v4329_v13  ;;  %v4345_v13 = vld [vmem:[%s5955_s5 + $0x128] sm:$0xff]   ;;  %v4346_v36 = vld [vmem:[%s5955_s5 + $0x170] sm:$0xff]  }
 0x388   :  { %4063 = vmatprep.subr.bf16.mxu0 %v4330_v31 }
 0x389   :  { %v2658_v38 = vpack.c.bf16 %v2616_v35, %v2615_v41 }
 0x38b   :  { %2693 = vst.msk [vmem:[#allocation4 + $0xc8] sm:$0xff] %vm2667_vm6, %v2658_v38  ;;  %4064 = vmatpush3.bf16.msra.mxu0 %v4331_v23  ;;  %v4347_v23 = vld [vmem:[%s5955_s5 + $0x130] sm:$0xff]  }
 0x38c   :  { %4065 = vmatprep.subr.bf16.mxu0 %v4332_v63 }
 0x38f   :  { %v2738_v58 = vpop.permute.xlu1 %2737  ;;  %4066 = vmatpush3.bf16.msra.mxu0 %v4333_v8 }
 0x390   :  { %v2741_v60 = vsel %vm2667_vm6, %v2732_v22, %v2738_v58  ;;  %4073 = vmatprep.subr.bf16.mxu0 %v4334_v16  ;;  %v2759_v16 = vld [vmem:[#allocation4 + $0x88] sm:$0xff]  ;;  %v4350_v22 = vld [vmem:[%s5955_s5 + $0x1c0] sm:$0xff]   ;;  %v2758_v58 = vld [vmem:[#allocation4 + $0x80] sm:$0xff] }
 0x39a   :  { %v2502_v55 = vpop.f32.mrb[104].mxu1 }
 0x39b   :  { %v2503_v51 = vadd.f32 %v5674_v11, %v2502_v55  ;;  %v2504_v37 = vpop.f32.mrb[105].mxu1 }
 0x39c   :  { %v2505_v42 = vpop.f32.mrb[106].mxu1 }
 0x39d   :  { %v2506_v7 = vadd.f32 %v5674_v11, %v2505_v42  ;;  %v2507_v48 = vpop.f32.mrb[107].mxu1  ;;  %v2617_v30 = vmax.f32 %v2503_v51, 0.0 }
 0x39f   :  { %v2618_v27 = vmax.f32 %v2506_v7, 0.0 }
 0x3a1   :  { %v2659_v43 = vpack.c.bf16 %v2618_v27, %v2617_v30 }
 0x3a2   :  { %v2510_v32 = vpop.f32.mrb[108].mxu1 }
 0x3a3   :  { %2694 = vst.msk [vmem:[#allocation4 + $0xd0] sm:$0xff] %vm2667_vm6, %v2659_v43  ;;  %v2511_v2 = vadd.f32 %v5674_v11, %v2510_v32  ;;  %v2512_v0 = vpop.f32.mrb[109].mxu1 }
 0x3a4   :  { %v2513_v5 = vpop.f32.mrb[110].mxu1 }
 0x3a5   :  { %v2514_v24 = vadd.f32 %v5674_v11, %v2513_v5  ;;  %v2515_v40 = vpop.f32.mrb[111].mxu1  ;;  %v2619_v3 = vmax.f32 %v2511_v2, 0.0 }
 0x3a7   :  { %v2620_v59 = vmax.f32 %v2514_v24, 0.0 }
 0x3a9   :  { %v2660_v57 = vpack.c.bf16 %v2620_v59, %v2619_v3 }
 0x3aa   :  { %v2789_v28 = vld [vmem:[#allocation4 + $0xd0] sm:$0xff] }
 0x3ab   :  { %2695 = vst.msk [vmem:[#allocation4 + $0xd8] sm:$0xff] %vm2667_vm6, %v2660_v57 }
 0x3af   :  { %v2752_v17 = vpop.permute.xlu0 %2751 }
 0x3b0   :  { %v2755_v9 = vsel %vm2667_vm6, %v2746_v10, %v2752_v17  ;;  %v2773_v10 = vld [vmem:[#allocation4 + $0xa8] sm:$0xff]  ;;  %v2772_v17 = vld [vmem:[#allocation4 + $0xa0] sm:$0xff] }
 0x3b1   :  { %3454 = vmatprep.mubr.bf16.mxu0 %v2755_v9 }
 0x3b2   :  { %v2790_v44 = vld [vmem:[#allocation4 + $0xd8] sm:$0xff]  ;;  %3455 = vmatmul.mubr.bf16.vlgmr.msra.gmra.mrb[72].mxu0 %v2741_v60  ;;  %v2760_v60 = vmax.bf16 %v2759_v16, %v2758_v58 }
 0x3b3   :  { %v2791_v53 = vmax.bf16 %v2790_v44, %v2789_v28  ;;  %4074 = vmatpush3.bf16.msra.mxu0 %v4335_v25  ;;  %v2774_v25 = vmax.bf16 %v2773_v10, %v2772_v17  ;;  %v4369_v10 = vld [vmem:[%s5955_s5 + $0x218] sm:$0xff]   ;;  %v4370_v17 = vld [vmem:[%s5956_s7] sm:$0xff]  }
 0x3b4   :  { %4075 = vmatprep.subr.bf16.mxu0 %v4336_v45  ;;  %v4351_v45 = vld [vmem:[%s5955_s5 + $0x180] sm:$0xff]  }
 0x3b5   :  { %2793 = vrot.lane.b32.xlu1 %v2791_v53, %s4387_s3 }
 0x3b7   :  { %4076 = vmatpush3.bf16.msra.mxu0 %v4337_v4  ;;  %v4352_v4 = vld [vmem:[%s5955_s5 + $0x1c8] sm:$0xff]  }
 0x3b8   :  { %4077 = vmatprep.subr.bf16.mxu0 %v4338_v50 }
 0x3ba   :  { %v2518_v12 = vpop.f32.mrb[112].mxu1 }
 0x3bb   :  { %v2519_v33 = vadd.f32 %v5674_v11, %v2518_v12  ;;  %v2520_v19 = vpop.f32.mrb[113].mxu1  ;;  %4078 = vmatpush3.bf16.msra.mxu0 %v4339_v26  ;;  %v4353_v26 = vld [vmem:[%s5955_s5 + $0x188] sm:$0xff]   ;;  %v4355_v12 = vld [vmem:[%s5955_s5 + $0x190] sm:$0xff]  }
 0x3bc   :  { %v2521_v47 = vpop.f32.mrb[114].mxu1  ;;  %4079 = vmatprep.subr.bf16.mxu0 %v4340_v46  ;;  %v4354_v46 = vld [vmem:[%s5955_s5 + $0x1d0] sm:$0xff]   ;;  %v4357_v19 = vld [vmem:[%s5955_s5 + $0x198] sm:$0xff]  }
 0x3bd   :  { %v2522_v21 = vadd.f32 %v5674_v11, %v2521_v47  ;;  %v2523_v29 = vpop.f32.mrb[115].mxu1  ;;  %v2621_v52 = vmax.f32 %v2519_v33, 0.0  ;;  %v4356_v33 = vld [vmem:[%s5955_s5 + $0x1d8] sm:$0xff]   ;;  %v4359_v47 = vld [vmem:[%s5955_s5 + $0x1a0] sm:$0xff]  }
 0x3be   :  { %v4362_v29 = vld [vmem:[%s5955_s5 + $0x1f0] sm:$0xff]  }
 0x3bf   :  { %v2622_v14 = vmax.f32 %v2522_v21, 0.0  ;;  %4080 = vmatpush3.bf16.msra.mxu0 %v4341_v20  ;;  %v4358_v20 = vld [vmem:[%s5955_s5 + $0x1e0] sm:$0xff]   ;;  %v4361_v21 = vld [vmem:[%s5955_s5 + $0x1a8] sm:$0xff]  }
 0x3c0   :  { %4081 = vmatprep.subr.bf16.mxu0 %v4342_v62  ;;  %v4360_v62 = vld [vmem:[%s5955_s5 + $0x1e8] sm:$0xff]  }
 0x3c1   :  { %v2661_v56 = vpack.c.bf16 %v2622_v14, %v2621_v52  ;;  %v4363_v52 = vld [vmem:[%s5955_s5 + $0x1b0] sm:$0xff]   ;;  %v4364_v14 = vld [vmem:[%s5955_s5 + $0x1f8] sm:$0xff]  }
 0x3c3   :  { %2696 = vst.msk [vmem:[#allocation4 + $0xe0] sm:$0xff] %vm2667_vm6, %v2661_v56  ;;  %v2526_v49 = vpop.f32.mrb[116].mxu1  ;;  %4082 = vmatpush3.bf16.msra.mxu0 %v4343_v34  ;;  %v4365_v34 = vld [vmem:[%s5955_s5 + $0x1b8] sm:$0xff]  }
 0x3c4   :  { %v2527_v61 = vadd.f32 %v5674_v11, %v2526_v49  ;;  %v2528_v31 = vpop.f32.mrb[117].mxu1  ;;  %4083 = vmatprep.subr.bf16.mxu0 %v4344_v39  ;;  %v4388_v39 = vmov 0.0   ;;  %v2787_v56 = vld [vmem:[#allocation4 + $0xc8] sm:$0xff]  ;;  %v2786_v49 = vld [vmem:[#allocation4 + $0xc0] sm:$0xff] }
 0x3c5   :  { %v2529_v15 = vpop.f32.mrb[118].mxu1 }
 0x3c6   :  { %v2530_v41 = vadd.f32 %v5674_v11, %v2529_v15  ;;  %v2531_v35 = vpop.f32.mrb[119].mxu1  ;;  %v2623_v63 = vmax.f32 %v2527_v61, 0.0 }
 0x3c7   :  { %4084 = vmatpush3.bf16.msra.mxu0 %v4345_v13  ;;  %v2788_v13 = vmax.bf16 %v2787_v56, %v2786_v49 }
 0x3c8   :  { %v2624_v38 = vmax.f32 %v2530_v41, 0.0  ;;  %4085 = vmatprep.subr.bf16.mxu0 %v4346_v36 }
 0x3ca   :  { %v2662_v8 = vpack.c.bf16 %v2624_v38, %v2623_v63 }
 0x3cb   :  { %4086 = vmatpush3.bf16.msra.mxu0 %v4347_v23 }
 0x3cc   :  { %2697 = vst.msk [vmem:[#allocation4 + $0xe8] sm:$0xff] %vm2667_vm6, %v2662_v8  ;;  %4087 = vmatprep.subr.bf16.mxu0 %v4348_v1 }
 0x3cf   :  { %v2766_v55 = vpop.permute.xlu1 %2765  ;;  %4088 = vmatpush3.bf16.msra.mxu0 %v4349_v54 }
 0x3d0   :  { %v2769_v51 = vsel %vm2667_vm6, %v2760_v60, %v2766_v55  ;;  %4095 = vmatprep.subr.bf16.mxu0 %v4350_v22 }
 0x3d2   :  { %v2534_v37 = vpop.f32.mrb[120].mxu1 }
 0x3d3   :  { %v2535_v42 = vadd.f32 %v5674_v11, %v2534_v37  ;;  %v2536_v7 = vpop.f32.mrb[121].mxu1 }
 0x3d4   :  { %v2537_v48 = vpop.f32.mrb[122].mxu1 }
 0x3d5   :  { %v2538_v30 = vadd.f32 %v5674_v11, %v2537_v48  ;;  %v2539_v27 = vpop.f32.mrb[123].mxu1  ;;  %v2625_v43 = vmax.f32 %v2535_v42, 0.0 }
 0x3d7   :  { %v2626_v32 = vmax.f32 %v2538_v30, 0.0 }
 0x3d9   :  { %v2663_v2 = vpack.c.bf16 %v2626_v32, %v2625_v43 }
 0x3db   :  { %2698 = vst.msk [vmem:[#allocation4 + $0xf0] sm:$0xff] %vm2667_vm6, %v2663_v2 }
 0x3e0   :  { %v2542_v0 = vpop.f32.mrb[124].mxu1 }
 0x3e1   :  { %v2543_v5 = vadd.f32 %v5674_v11, %v2542_v0  ;;  %v2544_v24 = vpop.f32.mrb[125].mxu1 }
 0x3e2   :  { %v2545_v40 = vpop.f32.mrb[126].mxu1  ;;  %v2803_v44 = vld [vmem:[#allocation4 + $0xf0] sm:$0xff]  ;;  %v2801_v24 = vld [vmem:[#allocation4 + $0xe8] sm:$0xff] }
 0x3e3   :  { %v2546_v3 = vadd.f32 %v5674_v11, %v2545_v40  ;;  %v2547_v59 = vpop.f32.mrb[127].mxu1  ;;  %v2627_v57 = vmax.f32 %v2543_v5, 0.0  ;;  %v2800_v40 = vld [vmem:[#allocation4 + $0xe0] sm:$0xff] }
 0x3e5   :  { %v2628_v18 = vmax.f32 %v2546_v3, 0.0  ;;  %v2802_v3 = vmax.bf16 %v2801_v24, %v2800_v40 }
 0x3e7   :  { %v2664_v6 = vpack.c.bf16 %v2628_v18, %v2627_v57  ;;  %v4366_v57 = vld [vmem:[%s5955_s5 + $0x200] sm:$0xff]   ;;  %v4367_v18 = vld [vmem:[%s5955_s5 + $0x208] sm:$0xff]  }
 0x3e9   :  { %2699 = vst.msk [vmem:[#allocation4 + $0xf8] sm:$0xff] %vm2667_vm6, %v2664_v6  ;;  %v4368_v6 = vld [vmem:[%s5955_s5 + $0x210] sm:$0xff]  }
 0x3ef   :  { %v2780_v9 = vpop.permute.xlu0 %2779 }
 0x3f0   :  { %v2783_v28 = vsel %vm2667_vm6, %v2774_v25, %v2780_v9  ;;  %v2804_v53 = vld [vmem:[#allocation4 + $0xf8] sm:$0xff] }
 0x3f1   :  { %v2805_v50 = vmax.bf16 %v2804_v53, %v2803_v44  ;;  %3495 = vmatprep.mubr.bf16.mxu0 %v2783_v28  ;;  %v4371_v9 = vld [vmem:[%s5956_s7 + $0x8] sm:$0xff]  }
 0x3f2   :  { %3496 = vmatmul.mubr.bf16.vlgmr.msra.gmra.mrb[76].mxu0 %v2769_v51 }
 0x3f3   :  { %2807 = vrot.lane.b32.xlu0 %v2805_v50, %s4387_s3  ;;  %4096 = vmatpush3.bf16.msra.mxu0 %v4351_v45  ;;  %v3909_v45 = vld [vmem:[%s5957_s6] ss:$0 sm:$0xff] }
 0x3f4   :  { %4097 = vmatprep.subr.bf16.mxu0 %v4352_v4 }
 0x3f7   :  { %4098 = vmatpush3.bf16.msra.mxu0 %v4353_v26 }
 0x3f8   :  { %4099 = vmatprep.subr.bf16.mxu0 %v4354_v46 }
 0x3fb   :  { %4100 = vmatpush3.bf16.msra.mxu0 %v4355_v12 }
 0x3fc   :  { %4101 = vmatprep.subr.bf16.mxu0 %v4356_v33 }
 0x3ff   :  { %4102 = vmatpush3.bf16.msra.mxu0 %v4357_v19 }
 0x400   :  { %4103 = vmatprep.subr.bf16.mxu0 %v4358_v20  ;;  %v4372_v20 = vld [vmem:[%s5956_s7 + $0x10] sm:$0xff]  }
 0x403   :  { %4104 = vmatpush3.bf16.msra.mxu0 %v4359_v47  ;;  %v4373_v47 = vld [vmem:[%s5956_s7 + $0x18] sm:$0xff]  }
 0x404   :  { %4105 = vmatprep.subr.bf16.mxu0 %v4360_v62  ;;  %v4374_v62 = vld [vmem:[%s5956_s7 + $0x20] sm:$0xff]  }
 0x407   :  { %4106 = vmatpush3.bf16.msra.mxu0 %v4361_v21 }
 0x408   :  { %4107 = vmatprep.subr.bf16.mxu0 %v4362_v29  ;;  %v4375_v29 = vld [vmem:[%s5956_s7 + $0x28] sm:$0xff]  }
 0x40b   :  { %4108 = vmatpush3.bf16.msra.mxu0 %v4363_v52 }
 0x40c   :  { %4109 = vmatprep.subr.bf16.mxu0 %v4364_v14 }
 0x40f   :  { %4110 = vmatpush3.bf16.msra.mxu0 %v4365_v34 }
 0x410   :  { %4206 = vmatprep.subr.bf16.mxu0 %v4388_v39 }
 0x427   :  { %v2794_v61 = vpop.permute.xlu1 %2793 }
 0x428   :  { %v2797_v31 = vsel %vm2667_vm6, %v2788_v13, %v2794_v61 }
 0x441   :  { %v2550_v36 = vpop.f32.mrb[128].mxu1 }
 0x442   :  { %v2551_v15 = vadd.f32 %v5674_v11, %v2550_v36  ;;  %v2552_v41 = vpop.f32.mrb[129].mxu1  ;;  %v4377_v36 = vld [vmem:[%s5956_s7 + $0x38] sm:$0xff]  }
 0x443   :  { %v2553_v35 = vpop.f32.mrb[130].mxu1 }
 0x444   :  { %v2554_v23 = vadd.f32 %v5674_v11, %v2553_v35  ;;  %v2555_v63 = vpop.f32.mrb[131].mxu1  ;;  %v2629_v1 = vmax.f32 %v2551_v15, 0.0 }
 0x445   :  { %v4045_v38 = vpop.f32.mrb[68].mxu0 }
 0x446   :  { %v2630_v8 = vmax.f32 %v2554_v23, 0.0  ;;  %v4046_v16 = vpop.f32.mrb[69].mxu0 }
 0x447   :  { %v4047_v54 = vadd.f32 %v4046_v16, %v4045_v38  ;;  %v4048_v22 = vpop.f32.mrb[70].mxu0 }
 0x448   :  { %v2665_v58 = vpack.c.bf16 %v2630_v8, %v2629_v1  ;;  %v4049_v60 = vpop.f32.mrb[71].mxu0 }
 0x449   :  { %v2558_v55 = vpop.f32.mrb[132].mxu1  ;;  %v4050_v51 = vadd.f32 %v4049_v60, %v4048_v22  ;;  %v3416_v53 = vadd.f32 %v4047_v54, %v3909_v45 }
 0x44a   :  { %2700 = vst.msk [vmem:[#allocation4 + $0x100] sm:$0xff] %vm2667_vm6, %v2665_v58  ;;  %v2559_v37 = vadd.f32 %v5674_v11, %v2558_v55  ;;  %v2560_v42 = vpop.f32.mrb[133].mxu1 }
 0x44b   :  { %v2561_v7 = vpop.f32.mrb[134].mxu1  ;;  %v3419_v46 = vadd.f32 %v4050_v51, %v3909_v45  ;;  %v4378_v42 = vld [vmem:[%s5958_s9] sm:$0xff]  }
 0x44c   :  { %v2631_v48 = vmax.f32 %v2559_v37, 0.0  ;;  %v2562_v30 = vadd.f32 %v5674_v11, %v2561_v7  ;;  %v2563_v27 = vpop.f32.mrb[135].mxu1 }
 0x44d   :  { %v4381_v27 = vld [vmem:[%s5958_s9 + $0x18] sm:$0xff]  }
 0x44e   :  { %v2632_v43 = vmax.f32 %v2562_v30, 0.0  ;;  %v4380_v30 = vld [vmem:[%s5958_s9 + $0x10] sm:$0xff]  }
 0x450   :  { %v2666_v32 = vpack.c.bf16 %v2632_v43, %v2631_v48  ;;  %v4379_v48 = vld [vmem:[%s5958_s9 + $0x8] sm:$0xff]   ;;  %v3979_v43 = vld [vmem:[%s5959_s8] ss:$0 sm:$0xff] }
 0x451   :  { %v2814_v2 = vld [vmem:[#allocation4 + $0x100] sm:$0xff] }
 0x452   :  { %2701 = vst.msk [vmem:[#allocation4 + $0x108] sm:$0xff] %vm2667_vm6, %v2666_v32 }
 0x459   :  { %v2815_v0 = vld [vmem:[#allocation4 + $0x108] sm:$0xff] }
 0x45a   :  { %v2816_v5 = vmax.bf16 %v2815_v0, %v2814_v2 }
 0x45c   :  { %2817 = vst.msk [vmem:[#allocation5 + $0x40] sm:$0xff] %vm2667_vm6, %v2816_v5 }
 0x463   :  { %v2826_v25 = vld [vmem:[#allocation5 + $0x40] sm:$0xff] }
 0x465   :  { %v2808_v59 = vpop.permute.xlu0 %2807 }
 0x466   :  { %v2811_v11 = vsel %vm2667_vm6, %v2802_v3, %v2808_v59 }
 0x467   :  { %3536 = vmatprep.mubr.bf16.mxu0 %v2811_v11 }
 0x468   :  { %3537 = vmatmul.mubr.bf16.vlgmr.msra.gmra.mrb[80].mxu0 %v2797_v31  ;;  %v4376_v31 = vld [vmem:[%s5956_s7 + $0x30] sm:$0xff]  }
 0x469   :  { %4207 = vmatpush3.bf16.msra.mxu0 %v4366_v57  ;;  %4214 = vmatprep.mubr.msk.bf16.mxu0 %vm4389_vm7, %v4388_v39 }
 0x46a   :  { %4208 = vmatprep.subr.bf16.mxu0 %v4388_v39 }
 0x46d   :  { %4209 = vmatpush3.bf16.msra.mxu0 %v4367_v18 }
 0x46e   :  { %4210 = vmatprep.subr.bf16.mxu0 %v4388_v39 }
 0x471   :  { %4211 = vmatpush3.bf16.msra.mxu0 %v4368_v6 }
 0x472   :  { %4212 = vmatprep.subr.bf16.mxu0 %v4388_v39 }
 0x475   :  { %4213 = vmatpush3.bf16.msra.mxu0 %v4369_v10 }
 0x476   :  { %4218 = vmatprep.subr.bf16.mxu0 %v4388_v39 }
 0x478   :  { %4215 = vmatmul.mubr.msk.bf16.vlgmr.msra.gmra.mrb[84].mxu0 %vm2667_vm6, %v2826_v25 }
 0x479   :  { %4219 = vmatpush3.bf16.msra.mxu0 %v4370_v17  ;;  %4234 = vmatprep.mubr.msk.bf16.mxu0 %vm4389_vm7, %v4388_v39 }
 0x47a   :  { %4220 = vmatprep.subr.bf16.mxu0 %v4388_v39 }
 0x47d   :  { %4221 = vmatpush3.bf16.msra.mxu0 %v4371_v9 }
 0x47e   :  { %4222 = vmatprep.subr.bf16.mxu0 %v4388_v39 }
 0x481   :  { %4223 = vmatpush3.bf16.msra.mxu0 %v4372_v20 }
 0x482   :  { %4224 = vmatprep.subr.bf16.mxu0 %v4388_v39 }
 0x485   :  { %v4067_v28 = vpop.f32.mrb[72].mxu0  ;;  %4225 = vmatpush3.bf16.msra.mxu0 %v4373_v47 }
 0x486   :  { %v4068_v44 = vpop.f32.mrb[73].mxu0  ;;  %4226 = vmatprep.subr.bf16.mxu0 %v4388_v39 }
 0x487   :  { %v4069_v4 = vadd.f32 %v4068_v44, %v4067_v28  ;;  %v4070_v50 = vpop.f32.mrb[74].mxu0 }
 0x488   :  { %v4071_v26 = vpop.f32.mrb[75].mxu0 }
 0x489   :  { %v3457_v12 = vadd.f32 %v4069_v4, %v3416_v53  ;;  %v4072_v33 = vadd.f32 %v4071_v26, %v4070_v50  ;;  %4227 = vmatpush3.bf16.msra.mxu0 %v4374_v62 }
 0x48a   :  { %4228 = vmatprep.subr.bf16.mxu0 %v4388_v39 }
 0x48b   :  { %v3460_v19 = vadd.f32 %v4072_v33, %v3419_v46 }
 0x48d   :  { %4229 = vmatpush3.bf16.msra.mxu0 %v4375_v29 }
 0x48e   :  { %4230 = vmatprep.subr.bf16.mxu0 %v4388_v39 }
 0x491   :  { %4231 = vmatpush3.bf16.msra.mxu0 %v4376_v31 }
 0x492   :  { %4232 = vmatprep.subr.bf16.mxu0 %v4388_v39 }
 0x495   :  { %4233 = vmatpush3.bf16.msra.mxu0 %v4377_v36 }
 0x496   :  { %4238 = vmatprep.subr.bf16.mxu0 %v4388_v39 }
 0x4c5   :  { %v4089_v21 = vpop.f32.mrb[76].mxu0 }
 0x4c6   :  { %v4090_v52 = vpop.f32.mrb[77].mxu0 }
 0x4c7   :  { %v4091_v14 = vadd.f32 %v4090_v52, %v4089_v21  ;;  %v4092_v34 = vpop.f32.mrb[78].mxu0 }
 0x4c8   :  { %v4093_v56 = vpop.f32.mrb[79].mxu0 }
 0x4c9   :  { %v3498_v49 = vadd.f32 %v4091_v14, %v3457_v12  ;;  %v4094_v13 = vadd.f32 %v4093_v56, %v4092_v34 }
 0x4cb   :  { %v3501_v61 = vadd.f32 %v4094_v13, %v3460_v19 }
 0x53b   :  { %v4111_v15 = vpop.f32.mrb[80].mxu0 }
 0x53c   :  { %v4112_v41 = vpop.f32.mrb[81].mxu0 }
 0x53d   :  { %v4113_v35 = vadd.f32 %v4112_v41, %v4111_v15  ;;  %v4114_v23 = vpop.f32.mrb[82].mxu0 }
 0x53e   :  { %v4115_v63 = vpop.f32.mrb[83].mxu0 }
 0x53f   :  { %v4116_v38 = vadd.f32 %v4115_v63, %v4114_v23  ;;  %v3539_v1 = vadd.f32 %v4113_v35, %v3498_v49 }
 0x541   :  { %v3542_v8 = vadd.f32 %v4116_v38, %v3501_v61 }
 0x54b   :  { %v3579_v16 = vpop.f32.mrb[84].mxu0 }
 0x54c   :  { %v3580_v54 = vadd.f32 %v3579_v16, %v3539_v1  ;;  %v4216_v22 = vpop.f32.mrb[85].mxu0 }
 0x54d   :  { %v3582_v58 = vpop.f32.mrb[86].mxu0 }
 0x54e   :  { %v3583_v60 = vadd.f32 %v3582_v58, %v3542_v8  ;;  %v4217_v55 = vpop.f32.mrb[87].mxu0  ;;  %v3586_v51 = vmax.f32 %v3580_v54, 0.0 }
 0x550   :  { %v3587_v37 = vmax.f32 %v3583_v60, 0.0 }
 0x552   :  { %v3588_v7 = vpack.c.bf16 %v3587_v37, %v3586_v51 }
 0x554   :  { %4235 = vmatmul.mubr.bf16.vlgmr.msra.gmra.mrb[88].mxu0 %v3588_v7 }
 0x555   :  { %4239 = vmatpush3.bf16.msra.mxu0 %v4378_v42  ;;  %4246 = vmatprep.mubr.msk.bf16.mxu0 %vm4389_vm7, %v4388_v39 }
 0x556   :  { %4240 = vmatprep.subr.bf16.mxu0 %v4388_v39 }
 0x559   :  { %4241 = vmatpush3.bf16.msra.mxu0 %v4379_v48 }
 0x55a   :  { %4242 = vmatprep.subr.bf16.mxu0 %v4388_v39 }
 0x55d   :  { %4243 = vmatpush3.bf16.msra.mxu0 %v4380_v30 }
 0x55e   :  { %4244 = vmatprep.subr.bf16.mxu0 %v4388_v39  ;;  %v3988_v39 = vld [vmem:[%s5960_s10] ss:$0 sm:$0xff] }
 0x561   :  { %4245 = vmatpush3.bf16.msra.mxu0 %v4381_v27 }
 0x627   :  { %v3694_v32 = vpop.f32.mrb[88].mxu0 }
 0x628   :  { %v3695_v2 = vadd.f32 %v3979_v43, %v3694_v32  ;;  %v4236_v0 = vpop.f32.mrb[89].mxu0 }
 0x629   :  { %v3697_v5 = vpop.f32.mrb[90].mxu0 }
 0x62a   :  { %v3698_v24 = vadd.f32 %v3979_v43, %v3697_v5  ;;  %v4237_v40 = vpop.f32.mrb[91].mxu0  ;;  %v3701_v3 = vmax.f32 %v3695_v2, 0.0 }
 0x62c   :  { %v3702_v59 = vmax.f32 %v3698_v24, 0.0 }
 0x62e   :  { %v3703_v57 = vpack.c.bf16 %v3702_v59, %v3701_v3 }
 0x630   :  { %4247 = vmatmul.mubr.msk.bf16.vlgmr.msra.gmra.mrb[92].mxu0 %vm2667_vm6, %v3703_v57 }
 0x703   :  { %v3780_v11 = vpop.f32.mrb[92].mxu0 }
 0x704   :  { %v3781_v18 = vadd.f32 %v3988_v39, %v3780_v11  ;;  %v4248_v6 = vpop.f32.mrb[93].mxu0 }
 0x705   :  { %v3783_v10 = vpop.f32.mrb[94].mxu0 }
 0x706   :  { %3788 = vst.msk [vmem:[%s5961_s11] sm:$0xff] %vm3787_vm8, %v3781_v18  ;;  %v3784_v17 = vadd.f32 %v3988_v39, %v3783_v10  ;;  %v4249_v25 = vpop.f32.mrb[95].mxu0 }
 0x708   :  { %3789 = vst.msk [vmem:[%s5961_s11 + $0x8] sm:$0xff] %vm3787_vm8, %v3784_v17 }

</bundles_post_ra>
